<compile_context>
chip_gen: v5e
topology: v5e:2x2
jax: 0.10.0
libtpu: 0.0.40
codegen_flags: <defaults>
</compile_context>

<pallas_src>
import math
import functools

import jax
import jax.numpy as jnp
from jax.experimental import pallas as pl
from jax.experimental.pallas import tpu as pltpu

# ---------------- model config (small, deterministic synthetic weights) ----
BATCH = 2
SEQ = 8
HIDDEN = 128
NUM_HEADS = 2
HEAD_DIM = HIDDEN // NUM_HEADS        # 64
FFN = 256
NUM_LAYERS = 2
VOCAB = 256
TYPE_VOCAB = 2
MAX_POS = 64
LN_EPS = 1e-12                        # BERT/RoBERTa layer-norm eps
DTYPE = jnp.float32                   # activations / vector path
WEIGHT_DTYPE = jnp.bfloat16           # MXU operand dtype for weight matrices

_VMEM = pl.BlockSpec(memory_space=pltpu.MemorySpace.VMEM)


# ------------------------------ in-kernel helpers ---------------------------
def _gelu(x):
    # TODO(synk): HF default hidden_act="gelu" is erf-based; tanh approximation
    # used here for robust Mosaic lowering (deviation ~1e-3).
    c = math.sqrt(2.0 / math.pi)
    return 0.5 * x * (1.0 + jnp.tanh(c * (x + 0.044715 * x * x * x)))


def _layernorm(x, gamma, beta, eps):
    mu = jnp.mean(x, axis=-1, keepdims=True)
    xc = x - mu
    var = jnp.mean(xc * xc, axis=-1, keepdims=True)
    return xc * jax.lax.rsqrt(var + eps) * gamma + beta


# ------------------------------- fused Pallas kernel ------------------------
def _lm_kernel(ids_ref, tt_ref, amask_ref, wemb_ref, wembT_ref, pos_ref,
               type_ref, embln_ref, wqkv_ref, bqkv_ref, wo_ref, w1_ref,
               b1_ref, w2_ref, vecs_ref, hw_ref, hvec_ref, db_ref,
               o_ref, ctx_ref, *, B, S, NH, DH, L, eps):
    """Whole LM forward on a [B*S, H] activation, fully VMEM-resident."""
    M = B * S
    H = NH * DH
    V = wemb_ref.shape[0]

    # ---- embeddings: in-kernel word-id gather via one-hot MXU matmul ----
    ids = ids_ref[...]                                             # [M,1] i32
    iota_v = jax.lax.broadcasted_iota(jnp.int32, (M, V), 1)
    onehot = jnp.where(ids == iota_v, 1.0, 0.0)                    # [M,V] f32
    word = jnp.dot(onehot, wemb_ref[...],
                   preferred_element_type=jnp.float32)             # exact rows

    pos = jnp.tile(pos_ref[...], (B, 1))                           # [M,H]
    tt = tt_ref[...]                                               # [M,1] f32
    typ = (1.0 - tt) * type_ref[0:1, :] + tt * type_ref[1:2, :]    # [M,H]

    h = _layernorm(word + pos + typ,
                   embln_ref[0:1, :], embln_ref[1:2, :], eps)      # [M,H] f32

    # additive attention mask built in-kernel, broadcast over query rows
    neg_mask = ((1.0 - amask_ref[...]) * -10000.0).reshape(B, 1, S)

    # -------------------- encoder layers (all weights stacked [L, ...]) -----
    for l in range(L):
        # fused QKV projection: one MXU pass -> [M, 3H]  (scale folded in Wq)
        qkv = jnp.dot(h.astype(WEIGHT_DTYPE), wqkv_ref[l],
                      preferred_element_type=jnp.float32) + bqkv_ref[l]
        q3 = qkv[:, 0:H].reshape(B, S, H)
        k3 = qkv[:, H:2 * H].reshape(B, S, H)
        v3 = qkv[:, 2 * H:3 * H].reshape(B, S, H)

        # per-head attention, batched over B, results written into ctx scratch
        for n in range(NH):
            lo, hi = n * DH, (n + 1) * DH
            qh = q3[:, :, lo:hi].astype(WEIGHT_DTYPE)              # [B,S,DH]
            kh = k3[:, :, lo:hi].astype(WEIGHT_DTYPE)
            vh = v3[:, :, lo:hi].astype(WEIGHT_DTYPE)
            s = jnp.einsum('bqd,bkd->bqk', qh, kh,
                           preferred_element_type=jnp.float32)     # [B,S,S]
            s = s + neg_mask
            s = s - jnp.max(s, axis=-1, keepdims=True)
            p = jnp.exp(s)
            p = p * pl.reciprocal(jnp.sum(p, axis=-1, keepdims=True),
                                  approx=True)
            c = jnp.einsum('bqk,bkd->bqd', p.astype(WEIGHT_DTYPE), vh,
                           preferred_element_type=jnp.float32)     # [B,S,DH]
            ctx_ref[:, lo:hi] = c.reshape(M, DH)

        vecs = vecs_ref[l]            # [6,H]: bo, ln1g, ln1b, b2, ln2g, ln2b

        # output projection + residual + LN1
        attn = jnp.dot(ctx_ref[...].astype(WEIGHT_DTYPE), wo_ref[l],
                       preferred_element_type=jnp.float32) + vecs[0:1, :]
        h1 = _layernorm(attn + h, vecs[1:2, :], vecs[2:3, :], eps)

        # FFN (gelu) + residual + LN2
        ff = _gelu(jnp.dot(h1.astype(WEIGHT_DTYPE), w1_ref[l],
                           preferred_element_type=jnp.float32) + b1_ref[l])
        ff = jnp.dot(ff.astype(WEIGHT_DTYPE), w2_ref[l],
                     preferred_element_type=jnp.float32) + vecs[3:4, :]
        h = _layernorm(ff + h1, vecs[4:5, :], vecs[5:6, :], eps)

    # -------------------- MLM head: dense+gelu, LN, tied decoder ------------
    hvec = hvec_ref[...]                                           # [3,H]
    t = _gelu(jnp.dot(h.astype(WEIGHT_DTYPE), hw_ref[...],
                      preferred_element_type=jnp.float32) + hvec[0:1, :])
    t = _layernorm(t, hvec[1:2, :], hvec[2:3, :], eps)
    logits = jnp.dot(t.astype(WEIGHT_DTYPE), wembT_ref[...],
                     preferred_element_type=jnp.float32) + db_ref[...]
    o_ref[...] = logits.astype(o_ref.dtype)                        # [M,V]


# --------------------------- parameter construction ------------------------
def init_params(key):
    def nrm(k, shape, scale=0.02):
        return (scale * jax.random.normal(k, shape)).astype(jnp.float32)

    keys = iter(jax.random.split(key, 64))
    word_emb = nrm(next(keys), (VOCAB, HIDDEN))
    ones_h = jnp.ones((HIDDEN,), DTYPE)
    zeros_h = jnp.zeros((HIDDEN,), DTYPE)

    p = {
        # f32 gather table (exact embedding rows) + pre-transposed bf16 tied
        # decoder weight (init-time transpose, no per-forward relayout).
        "word_emb": word_emb,
        "word_emb_T": word_emb.T.astype(WEIGHT_DTYPE),
        "pos_emb": nrm(next(keys), (MAX_POS, HIDDEN)),
        "type_emb": nrm(next(keys), (TYPE_VOCAB, HIDDEN)),
        "emb_ln": jnp.stack([ones_h, zeros_h], axis=0),             # [2,H]
        "head_w": nrm(next(keys), (HIDDEN, HIDDEN)).astype(WEIGHT_DTYPE),
        "head_vec": jnp.stack([zeros_h, ones_h, zeros_h], axis=0),  # [3,H]
        "dec_bias": jnp.zeros((1, VOCAB), DTYPE),
    }

    scale = 1.0 / math.sqrt(HEAD_DIM)
    wqkv_l, wo_l, w1_l, w2_l = [], [], [], []
    for _ in range(NUM_LAYERS):
        wq = nrm(next(keys), (HIDDEN, HIDDEN)) * scale   # attn scale folded in
        wk = nrm(next(keys), (HIDDEN, HIDDEN))
        wv = nrm(next(keys), (HIDDEN, HIDDEN))
        wqkv_l.append(jnp.concatenate([wq, wk, wv], axis=1).astype(WEIGHT_DTYPE))
        wo_l.append(nrm(next(keys), (HIDDEN, HIDDEN)).astype(WEIGHT_DTYPE))
        w1_l.append(nrm(next(keys), (HIDDEN, FFN)).astype(WEIGHT_DTYPE))
        w2_l.append(nrm(next(keys), (FFN, HIDDEN)).astype(WEIGHT_DTYPE))

    p["wqkv"] = jnp.stack(wqkv_l, axis=0)                 # [L, H, 3H] bf16
    p["wo"] = jnp.stack(wo_l, axis=0)                     # [L, H, H]  bf16
    p["w1"] = jnp.stack(w1_l, axis=0)                     # [L, H, FFN] bf16
    p["w2"] = jnp.stack(w2_l, axis=0)                     # [L, FFN, H] bf16
    p["bqkv"] = jnp.zeros((NUM_LAYERS, 1, 3 * HIDDEN), DTYPE)
    p["b1"] = jnp.zeros((NUM_LAYERS, 1, FFN), DTYPE)
    # packed per-layer vectors: rows = bo, ln1_g, ln1_b, b2, ln2_g, ln2_b
    vec6 = jnp.stack([zeros_h, ones_h, zeros_h, zeros_h, ones_h, zeros_h], 0)
    p["vecs"] = jnp.tile(vec6[None], (NUM_LAYERS, 1, 1))  # [L, 6, H]
    return p


# ------------------------------ forward pass --------------------------------
def lm_forward(params, input_ids, token_type_ids=None, attention_mask=None):
    B, S = input_ids.shape
    if token_type_ids is None:
        token_type_ids = jnp.zeros_like(input_ids)
    if attention_mask is None:
        attention_mask = jnp.ones_like(input_ids)
    M = B * S

    # TODO(synk): RoBERTa-style position ids add a padding offset; BERT-style
    # arange positions are used here (pos_emb rows 0..S-1, static slice).
    ids_col = input_ids.reshape(M, 1).astype(jnp.int32)
    tt_col = token_type_ids.reshape(M, 1).astype(jnp.float32)
    amask = attention_mask.astype(jnp.float32)                      # raw 0/1
    pos = params["pos_emb"][:S]                                     # [S, H]

    kern = functools.partial(_lm_kernel, B=B, S=S, NH=NUM_HEADS, DH=HEAD_DIM,
                             L=NUM_LAYERS, eps=LN_EPS)
    logits = pl.pallas_call(
        kern,
        out_shape=jax.ShapeDtypeStruct((M, VOCAB), jnp.float32),
        in_specs=[_VMEM] * 18,
        out_specs=_VMEM,
        scratch_shapes=[pltpu.VMEM((M, HIDDEN), jnp.float32)],      # ctx scratch
        compiler_params=pltpu.CompilerParams(
            vmem_limit_bytes=32 * 1024 * 1024),
    )(ids_col, tt_col, amask,
      params["word_emb"], params["word_emb_T"], pos, params["type_emb"],
      params["emb_ln"],
      params["wqkv"], params["bqkv"], params["wo"], params["w1"], params["b1"],
      params["w2"], params["vecs"],
      params["head_w"], params["head_vec"], params["dec_bias"])
    return logits.reshape(B, S, VOCAB)


# ----------------------------------- main -----------------------------------
if __name__ == "__main__":
    key = jax.random.PRNGKey(0)
    kp, ki, km = jax.random.split(key, 3)
    params = init_params(kp)

    input_ids = jax.random.randint(ki, (BATCH, SEQ), 0, VOCAB, dtype=jnp.int32)
    token_type_ids = jnp.zeros((BATCH, SEQ), dtype=jnp.int32)
    # mask out the last two tokens of the second sequence
    attention_mask = jnp.ones((BATCH, SEQ), dtype=jnp.int32)
    attention_mask = attention_mask.at[1, -2:].set(0)

    logits = jax.jit(lm_forward)(params, input_ids, token_type_ids,
                                 attention_mask)
    jax.block_until_ready(logits)

    assert logits.shape == (BATCH, SEQ, VOCAB)
    assert bool(jnp.all(jnp.isfinite(logits)))
    print("KERNEL_OK")
</pallas_src>

<mosaic_0001>
module attributes {stable_mosaic.version = 11 : i64} {
  func.func @_lm_kernel(%arg0: memref<16x1xi32, #tpu.memory_space<vmem>>, %arg1: memref<16x1xf32, #tpu.memory_space<vmem>>, %arg2: memref<2x8xf32, #tpu.memory_space<vmem>>, %arg3: memref<256x128xf32, #tpu.memory_space<vmem>>, %arg4: memref<128x256xbf16, #tpu.memory_space<vmem>>, %arg5: memref<8x128xf32, #tpu.memory_space<vmem>>, %arg6: memref<2x128xf32, #tpu.memory_space<vmem>>, %arg7: memref<2x128xf32, #tpu.memory_space<vmem>>, %arg8: memref<2x128x384xbf16, #tpu.memory_space<vmem>>, %arg9: memref<2x1x384xf32, #tpu.memory_space<vmem>>, %arg10: memref<2x128x128xbf16, #tpu.memory_space<vmem>>, %arg11: memref<2x128x256xbf16, #tpu.memory_space<vmem>>, %arg12: memref<2x1x256xf32, #tpu.memory_space<vmem>>, %arg13: memref<2x256x128xbf16, #tpu.memory_space<vmem>>, %arg14: memref<2x6x128xf32, #tpu.memory_space<vmem>>, %arg15: memref<128x128xbf16, #tpu.memory_space<vmem>>, %arg16: memref<3x128xf32, #tpu.memory_space<vmem>>, %arg17: memref<1x256xf32, #tpu.memory_space<vmem>>, %arg18: memref<16x256xf32, #tpu.memory_space<vmem>>, %arg19: memref<16x128xf32, #tpu.memory_space<vmem>>) attributes {dimension_semantics = [], scalar_prefetch = 0 : i64, scratch_operands = 1 : i64, tpu.core_type = #tpu.core_type<tc>} {
    %c0 = arith.constant 0 : index
    %c0_0 = arith.constant 0 : index
    %0 = vector.load %arg0[%c0, %c0_0] : memref<16x1xi32, #tpu.memory_space<vmem>>, vector<16x1xi32>
    %1 = tpu.iota {dimensions = array<i32: 1>} : vector<16x256xi32>
    %2 = vector.broadcast %0 : vector<16x1xi32> to vector<16x256xi32>
    %3 = arith.cmpi eq, %2, %1 : vector<16x256xi32>
    %cst = arith.constant 1.000000e+00 : f32
    %cst_1 = arith.constant 0.000000e+00 : f32
    %4 = vector.broadcast %cst : f32 to vector<16x256xf32>
    %5 = vector.broadcast %cst_1 : f32 to vector<16x256xf32>
    %6 = arith.select %3, %4, %5 : vector<16x256xi1>, vector<16x256xf32>
    %c0_2 = arith.constant 0 : index
    %c0_3 = arith.constant 0 : index
    %7 = vector.load %arg3[%c0_2, %c0_3] : memref<256x128xf32, #tpu.memory_space<vmem>>, vector<256x128xf32>
    %cst_4 = arith.constant dense<0.000000e+00> : vector<16x128xf32>
    %8 = tpu.matmul %6, %7, %cst_4 {dimension_numbers = #tpu.dot_dimension_numbers<[1], [0], [0], [1], [0, 0, 1, 1], [], []>} : vector<16x256xf32>, vector<256x128xf32>, vector<16x128xf32> -> vector<16x128xf32>
    %c0_5 = arith.constant 0 : index
    %c0_6 = arith.constant 0 : index
    %9 = vector.load %arg5[%c0_5, %c0_6] : memref<8x128xf32, #tpu.memory_space<vmem>>, vector<8x128xf32>
    %10 = tpu.concatenate %9, %9 in 0 : vector<8x128xf32>, vector<8x128xf32> -> vector<16x128xf32>
    %c0_7 = arith.constant 0 : index
    %c0_8 = arith.constant 0 : index
    %11 = vector.load %arg1[%c0_7, %c0_8] : memref<16x1xf32, #tpu.memory_space<vmem>>, vector<16x1xf32>
    %cst_9 = arith.constant 1.000000e+00 : f32
    %12 = vector.broadcast %cst_9 : f32 to vector<16x1xf32>
    %13 = arith.subf %12, %11 : vector<16x1xf32>
    %c0_10 = arith.constant 0 : index
    %c0_11 = arith.constant 0 : index
    %14 = vector.load %arg6[%c0_10, %c0_11] : memref<2x128xf32, #tpu.memory_space<vmem>>, vector<1x128xf32>
    %15 = vector.broadcast %13 : vector<16x1xf32> to vector<16x128xf32>
    %16 = vector.broadcast %14 : vector<1x128xf32> to vector<16x128xf32>
    %17 = arith.mulf %15, %16 : vector<16x128xf32>
    %c1 = arith.constant 1 : index
    %c0_12 = arith.constant 0 : index
    %18 = vector.load %arg6[%c1, %c0_12] : memref<2x128xf32, #tpu.memory_space<vmem>>, vector<1x128xf32>
    %19 = vector.broadcast %11 : vector<16x1xf32> to vector<16x128xf32>
    %20 = vector.broadcast %18 : vector<1x128xf32> to vector<16x128xf32>
    %21 = arith.mulf %19, %20 : vector<16x128xf32>
    %22 = arith.addf %17, %21 : vector<16x128xf32>
    %23 = arith.addf %8, %10 : vector<16x128xf32>
    %24 = arith.addf %23, %22 : vector<16x128xf32>
    %c0_13 = arith.constant 0 : index
    %c0_14 = arith.constant 0 : index
    %25 = vector.load %arg7[%c0_13, %c0_14] : memref<2x128xf32, #tpu.memory_space<vmem>>, vector<1x128xf32>
    %c1_15 = arith.constant 1 : index
    %c0_16 = arith.constant 0 : index
    %26 = vector.load %arg7[%c1_15, %c0_16] : memref<2x128xf32, #tpu.memory_space<vmem>>, vector<1x128xf32>
    %cst_17 = arith.constant dense<0.000000e+00> : vector<16xf32>
    %27 = vector.multi_reduction <add>, %24, %cst_17 [1] : vector<16x128xf32> to vector<16xf32>
    %28 = vector.shape_cast %27 : vector<16xf32> to vector<16x1xf32>
    %cst_18 = arith.constant 1.280000e+02 : f32
    %29 = vector.broadcast %cst_18 : f32 to vector<16x1xf32>
    %30 = arith.divf %28, %29 : vector<16x1xf32>
    %31 = vector.broadcast %30 : vector<16x1xf32> to vector<16x128xf32>
    %32 = arith.subf %24, %31 : vector<16x128xf32>
    %33 = arith.mulf %32, %32 : vector<16x128xf32>
    %cst_19 = arith.constant dense<0.000000e+00> : vector<16xf32>
    %34 = vector.multi_reduction <add>, %33, %cst_19 [1] : vector<16x128xf32> to vector<16xf32>
    %35 = vector.shape_cast %34 : vector<16xf32> to vector<16x1xf32>
    %cst_20 = arith.constant 1.280000e+02 : f32
    %36 = vector.broadcast %cst_20 : f32 to vector<16x1xf32>
    %37 = arith.divf %35, %36 : vector<16x1xf32>
    %cst_21 = arith.constant 9.99999996E-13 : f32
    %38 = vector.broadcast %cst_21 : f32 to vector<16x1xf32>
    %39 = arith.addf %37, %38 : vector<16x1xf32>
    %40 = math.rsqrt %39 : vector<16x1xf32>
    %41 = vector.broadcast %40 : vector<16x1xf32> to vector<16x128xf32>
    %42 = arith.mulf %32, %41 : vector<16x128xf32>
    %43 = vector.broadcast %25 : vector<1x128xf32> to vector<16x128xf32>
    %44 = arith.mulf %42, %43 : vector<16x128xf32>
    %45 = vector.broadcast %26 : vector<1x128xf32> to vector<16x128xf32>
    %46 = arith.addf %44, %45 : vector<16x128xf32>
    %c0_22 = arith.constant 0 : index
    %c0_23 = arith.constant 0 : index
    %47 = vector.load %arg2[%c0_22, %c0_23] : memref<2x8xf32, #tpu.memory_space<vmem>>, vector<2x8xf32>
    %cst_24 = arith.constant 1.000000e+00 : f32
    %48 = vector.broadcast %cst_24 : f32 to vector<2x8xf32>
    %49 = arith.subf %48, %47 : vector<2x8xf32>
    %cst_25 = arith.constant -1.000000e+04 : f32
    %50 = vector.broadcast %cst_25 : f32 to vector<2x8xf32>
    %51 = arith.mulf %49, %50 : vector<2x8xf32>
    %52 = vector.shape_cast %51 : vector<2x8xf32> to vector<2x1x8xf32>
    %53 = arith.truncf %46 : vector<16x128xf32> to vector<16x128xbf16>
    %c0_26 = arith.constant 0 : index
    %c0_27 = arith.constant 0 : index
    %c0_28 = arith.constant 0 : index
    %54 = vector.load %arg8[%c0_26, %c0_27, %c0_28] : memref<2x128x384xbf16, #tpu.memory_space<vmem>>, vector<1x128x384xbf16>
    %55 = vector.shape_cast %54 : vector<1x128x384xbf16> to vector<128x384xbf16>
    %cst_29 = arith.constant dense<0.000000e+00> : vector<16x384xf32>
    %56 = tpu.matmul %53, %55, %cst_29 {dimension_numbers = #tpu.dot_dimension_numbers<[1], [0], [0], [1], [0, 0, 1, 1], [], []>} : vector<16x128xbf16>, vector<128x384xbf16>, vector<16x384xf32> -> vector<16x384xf32>
    %c0_30 = arith.constant 0 : index
    %c0_31 = arith.constant 0 : index
    %c0_32 = arith.constant 0 : index
    %57 = vector.load %arg9[%c0_30, %c0_31, %c0_32] : memref<2x1x384xf32, #tpu.memory_space<vmem>>, vector<1x1x384xf32>
    %58 = vector.shape_cast %57 : vector<1x1x384xf32> to vector<1x384xf32>
    %59 = vector.broadcast %58 : vector<1x384xf32> to vector<16x384xf32>
    %60 = arith.addf %56, %59 : vector<16x384xf32>
    %61 = vector.extract_strided_slice %60 {offsets = [0, 0], sizes = [16, 128], strides = [1, 1]} : vector<16x384xf32> to vector<16x128xf32>
    %62 = vector.shape_cast %61 : vector<16x128xf32> to vector<2x8x128xf32>
    %63 = vector.extract_strided_slice %60 {offsets = [0, 128], sizes = [16, 128], strides = [1, 1]} : vector<16x384xf32> to vector<16x128xf32>
    %64 = vector.shape_cast %63 : vector<16x128xf32> to vector<2x8x128xf32>
    %65 = vector.extract_strided_slice %60 {offsets = [0, 256], sizes = [16, 128], strides = [1, 1]} : vector<16x384xf32> to vector<16x128xf32>
    %66 = vector.shape_cast %65 : vector<16x128xf32> to vector<2x8x128xf32>
    %67 = vector.extract_strided_slice %62 {offsets = [0, 0, 0], sizes = [2, 8, 64], strides = [1, 1, 1]} : vector<2x8x128xf32> to vector<2x8x64xf32>
    %68 = arith.truncf %67 : vector<2x8x64xf32> to vector<2x8x64xbf16>
    %69 = vector.extract_strided_slice %64 {offsets = [0, 0, 0], sizes = [2, 8, 64], strides = [1, 1, 1]} : vector<2x8x128xf32> to vector<2x8x64xf32>
    %70 = arith.truncf %69 : vector<2x8x64xf32> to vector<2x8x64xbf16>
    %71 = vector.extract_strided_slice %66 {offsets = [0, 0, 0], sizes = [2, 8, 64], strides = [1, 1, 1]} : vector<2x8x128xf32> to vector<2x8x64xf32>
    %72 = arith.truncf %71 : vector<2x8x64xf32> to vector<2x8x64xbf16>
    "tpu.trace_start"() <{level = 10 : i32, message = "bqd,bkd->bqk"}> : () -> ()
    %cst_33 = arith.constant dense<0.000000e+00> : vector<2x8x8xf32>
    %73 = tpu.matmul %68, %70, %cst_33 {dimension_numbers = #tpu.dot_dimension_numbers<[2], [2], [1], [1], [0, 0, 0, 1, 1, 1], [0], [0]>} : vector<2x8x64xbf16>, vector<2x8x64xbf16>, vector<2x8x8xf32> -> vector<2x8x8xf32>
    "tpu.trace_stop"() : () -> ()
    %74 = vector.broadcast %52 : vector<2x1x8xf32> to vector<2x8x8xf32>
    %75 = arith.addf %73, %74 : vector<2x8x8xf32>
    %cst_34 = arith.constant dense<0xFF800000> : vector<2x8xf32>
    %76 = vector.multi_reduction <maximumf>, %75, %cst_34 [2] : vector<2x8x8xf32> to vector<2x8xf32>
    %77 = vector.shape_cast %76 : vector<2x8xf32> to vector<2x8x1xf32>
    %78 = vector.broadcast %77 : vector<2x8x1xf32> to vector<2x8x8xf32>
    %79 = arith.subf %75, %78 : vector<2x8x8xf32>
    %80 = math.exp %79 : vector<2x8x8xf32>
    %cst_35 = arith.constant dense<0.000000e+00> : vector<2x8xf32>
    %81 = vector.multi_reduction <add>, %80, %cst_35 [2] : vector<2x8x8xf32> to vector<2x8xf32>
    %82 = vector.shape_cast %81 : vector<2x8xf32> to vector<2x8x1xf32>
    %83 = tpu.reciprocal %82 {approx = true} : vector<2x8x1xf32> -> vector<2x8x1xf32>
    %84 = vector.broadcast %83 : vector<2x8x1xf32> to vector<2x8x8xf32>
    %85 = arith.mulf %80, %84 : vector<2x8x8xf32>
    %86 = arith.truncf %85 : vector<2x8x8xf32> to vector<2x8x8xbf16>
    "tpu.trace_start"() <{level = 10 : i32, message = "bqk,bkd->bqd"}> : () -> ()
    %cst_36 = arith.constant dense<0.000000e+00> : vector<2x8x64xf32>
    %87 = tpu.matmul %86, %72, %cst_36 {dimension_numbers = #tpu.dot_dimension_numbers<[2], [1], [1], [2], [0, 0, 0, 1, 1, 2], [0], [0]>} : vector<2x8x8xbf16>, vector<2x8x64xbf16>, vector<2x8x64xf32> -> vector<2x8x64xf32>
    "tpu.trace_stop"() : () -> ()
    %88 = vector.shape_cast %87 : vector<2x8x64xf32> to vector<16x64xf32>
    %c0_37 = arith.constant 0 : index
    %c0_38 = arith.constant 0 : index
    %89 = vector.load %arg19[%c0_37, %c0_38] : memref<16x128xf32, #tpu.memory_space<vmem>>, vector<16x64xf32>
    tpu.vector_store %arg19[%c0_37, %c0_38], %88 {strides = array<i32>} : memref<16x128xf32, #tpu.memory_space<vmem>>, vector<16x64xf32>,
    %90 = vector.extract_strided_slice %62 {offsets = [0, 0, 64], sizes = [2, 8, 64], strides = [1, 1, 1]} : vector<2x8x128xf32> to vector<2x8x64xf32>
    %91 = arith.truncf %90 : vector<2x8x64xf32> to vector<2x8x64xbf16>
    %92 = vector.extract_strided_slice %64 {offsets = [0, 0, 64], sizes = [2, 8, 64], strides = [1, 1, 1]} : vector<2x8x128xf32> to vector<2x8x64xf32>
    %93 = arith.truncf %92 : vector<2x8x64xf32> to vector<2x8x64xbf16>
    %94 = vector.extract_strided_slice %66 {offsets = [0, 0, 64], sizes = [2, 8, 64], strides = [1, 1, 1]} : vector<2x8x128xf32> to vector<2x8x64xf32>
    %95 = arith.truncf %94 : vector<2x8x64xf32> to vector<2x8x64xbf16>
    "tpu.trace_start"() <{level = 10 : i32, message = "bqd,bkd->bqk"}> : () -> ()
    %cst_39 = arith.constant dense<0.000000e+00> : vector<2x8x8xf32>
    %96 = tpu.matmul %91, %93, %cst_39 {dimension_numbers = #tpu.dot_dimension_numbers<[2], [2], [1], [1], [0, 0, 0, 1, 1, 1], [0], [0]>} : vector<2x8x64xbf16>, vector<2x8x64xbf16>, vector<2x8x8xf32> -> vector<2x8x8xf32>
    "tpu.trace_stop"() : () -> ()
    %97 = vector.broadcast %52 : vector<2x1x8xf32> to vector<2x8x8xf32>
    %98 = arith.addf %96, %97 : vector<2x8x8xf32>
    %cst_40 = arith.constant dense<0xFF800000> : vector<2x8xf32>
    %99 = vector.multi_reduction <maximumf>, %98, %cst_40 [2] : vector<2x8x8xf32> to vector<2x8xf32>
    %100 = vector.shape_cast %99 : vector<2x8xf32> to vector<2x8x1xf32>
    %101 = vector.broadcast %100 : vector<2x8x1xf32> to vector<2x8x8xf32>
    %102 = arith.subf %98, %101 : vector<2x8x8xf32>
    %103 = math.exp %102 : vector<2x8x8xf32>
    %cst_41 = arith.constant dense<0.000000e+00> : vector<2x8xf32>
    %104 = vector.multi_reduction <add>, %103, %cst_41 [2] : vector<2x8x8xf32> to vector<2x8xf32>
    %105 = vector.shape_cast %104 : vector<2x8xf32> to vector<2x8x1xf32>
    %106 = tpu.reciprocal %105 {approx = true} : vector<2x8x1xf32> -> vector<2x8x1xf32>
    %107 = vector.broadcast %106 : vector<2x8x1xf32> to vector<2x8x8xf32>
    %108 = arith.mulf %103, %107 : vector<2x8x8xf32>
    %109 = arith.truncf %108 : vector<2x8x8xf32> to vector<2x8x8xbf16>
    "tpu.trace_start"() <{level = 10 : i32, message = "bqk,bkd->bqd"}> : () -> ()
    %cst_42 = arith.constant dense<0.000000e+00> : vector<2x8x64xf32>
    %110 = tpu.matmul %109, %95, %cst_42 {dimension_numbers = #tpu.dot_dimension_numbers<[2], [1], [1], [2], [0, 0, 0, 1, 1, 2], [0], [0]>} : vector<2x8x8xbf16>, vector<2x8x64xbf16>, vector<2x8x64xf32> -> vector<2x8x64xf32>
    "tpu.trace_stop"() : () -> ()
    %111 = vector.shape_cast %110 : vector<2x8x64xf32> to vector<16x64xf32>
    %c0_43 = arith.constant 0 : index
    %c64 = arith.constant 64 : index
    %112 = vector.load %arg19[%c0_43, %c64] : memref<16x128xf32, #tpu.memory_space<vmem>>, vector<16x64xf32>
    tpu.vector_store %arg19[%c0_43, %c64], %111 {strides = array<i32>} : memref<16x128xf32, #tpu.memory_space<vmem>>, vector<16x64xf32>,
    %c0_44 = arith.constant 0 : index
    %c0_45 = arith.constant 0 : index
    %c0_46 = arith.constant 0 : index
    %113 = vector.load %arg14[%c0_44, %c0_45, %c0_46] : memref<2x6x128xf32, #tpu.memory_space<vmem>>, vector<1x6x128xf32>
    %114 = vector.shape_cast %113 : vector<1x6x128xf32> to vector<6x128xf32>
    %c0_47 = arith.constant 0 : index
    %c0_48 = arith.constant 0 : index
    %115 = vector.load %arg19[%c0_47, %c0_48] : memref<16x128xf32, #tpu.memory_space<vmem>>, vector<16x128xf32>
    %116 = arith.truncf %115 : vector<16x128xf32> to vector<16x128xbf16>
    %c0_49 = arith.constant 0 : index
    %c0_50 = arith.constant 0 : index
    %c0_51 = arith.constant 0 : index
    %117 = vector.load %arg10[%c0_49, %c0_50, %c0_51] : memref<2x128x128xbf16, #tpu.memory_space<vmem>>, vector<1x128x128xbf16>
    %118 = vector.shape_cast %117 : vector<1x128x128xbf16> to vector<128x128xbf16>
    %cst_52 = arith.constant dense<0.000000e+00> : vector<16x128xf32>
    %119 = tpu.matmul %116, %118, %cst_52 {dimension_numbers = #tpu.dot_dimension_numbers<[1], [0], [0], [1], [0, 0, 1, 1], [], []>} : vector<16x128xbf16>, vector<128x128xbf16>, vector<16x128xf32> -> vector<16x128xf32>
    %120 = vector.extract_strided_slice %114 {offsets = [0, 0], sizes = [1, 128], strides = [1, 1]} : vector<6x128xf32> to vector<1x128xf32>
    %121 = vector.broadcast %120 : vector<1x128xf32> to vector<16x128xf32>
    %122 = arith.addf %119, %121 : vector<16x128xf32>
    %123 = arith.addf %122, %46 : vector<16x128xf32>
    %124 = vector.extract_strided_slice %114 {offsets = [1, 0], sizes = [1, 128], strides = [1, 1]} : vector<6x128xf32> to vector<1x128xf32>
    %125 = vector.extract_strided_slice %114 {offsets = [2, 0], sizes = [1, 128], strides = [1, 1]} : vector<6x128xf32> to vector<1x128xf32>
    %cst_53 = arith.constant dense<0.000000e+00> : vector<16xf32>
    %126 = vector.multi_reduction <add>, %123, %cst_53 [1] : vector<16x128xf32> to vector<16xf32>
    %127 = vector.shape_cast %126 : vector<16xf32> to vector<16x1xf32>
    %cst_54 = arith.constant 1.280000e+02 : f32
    %128 = vector.broadcast %cst_54 : f32 to vector<16x1xf32>
    %129 = arith.divf %127, %128 : vector<16x1xf32>
    %130 = vector.broadcast %129 : vector<16x1xf32> to vector<16x128xf32>
    %131 = arith.subf %123, %130 : vector<16x128xf32>
    %132 = arith.mulf %131, %131 : vector<16x128xf32>
    %cst_55 = arith.constant dense<0.000000e+00> : vector<16xf32>
    %133 = vector.multi_reduction <add>, %132, %cst_55 [1] : vector<16x128xf32> to vector<16xf32>
    %134 = vector.shape_cast %133 : vector<16xf32> to vector<16x1xf32>
    %cst_56 = arith.constant 1.280000e+02 : f32
    %135 = vector.broadcast %cst_56 : f32 to vector<16x1xf32>
    %136 = arith.divf %134, %135 : vector<16x1xf32>
    %cst_57 = arith.constant 9.99999996E-13 : f32
    %137 = vector.broadcast %cst_57 : f32 to vector<16x1xf32>
    %138 = arith.addf %136, %137 : vector<16x1xf32>
    %139 = math.rsqrt %138 : vector<16x1xf32>
    %140 = vector.broadcast %139 : vector<16x1xf32> to vector<16x128xf32>
    %141 = arith.mulf %131, %140 : vector<16x128xf32>
    %142 = vector.broadcast %124 : vector<1x128xf32> to vector<16x128xf32>
    %143 = arith.mulf %141, %142 : vector<16x128xf32>
    %144 = vector.broadcast %125 : vector<1x128xf32> to vector<16x128xf32>
    %145 = arith.addf %143, %144 : vector<16x128xf32>
    %146 = arith.truncf %145 : vector<16x128xf32> to vector<16x128xbf16>
    %c0_58 = arith.constant 0 : index
    %c0_59 = arith.constant 0 : index
    %c0_60 = arith.constant 0 : index
    %147 = vector.load %arg11[%c0_58, %c0_59, %c0_60] : memref<2x128x256xbf16, #tpu.memory_space<vmem>>, vector<1x128x256xbf16>
    %148 = vector.shape_cast %147 : vector<1x128x256xbf16> to vector<128x256xbf16>
    %cst_61 = arith.constant dense<0.000000e+00> : vector<16x256xf32>
    %149 = tpu.matmul %146, %148, %cst_61 {dimension_numbers = #tpu.dot_dimension_numbers<[1], [0], [0], [1], [0, 0, 1, 1], [], []>} : vector<16x128xbf16>, vector<128x256xbf16>, vector<16x256xf32> -> vector<16x256xf32>
    %c0_62 = arith.constant 0 : index
    %c0_63 = arith.constant 0 : index
    %c0_64 = arith.constant 0 : index
    %150 = vector.load %arg12[%c0_62, %c0_63, %c0_64] : memref<2x1x256xf32, #tpu.memory_space<vmem>>, vector<1x1x256xf32>
    %151 = vector.shape_cast %150 : vector<1x1x256xf32> to vector<1x256xf32>
    %152 = vector.broadcast %151 : vector<1x256xf32> to vector<16x256xf32>
    %153 = arith.addf %149, %152 : vector<16x256xf32>
    %cst_65 = arith.constant 5.000000e-01 : f32
    %154 = vector.broadcast %cst_65 : f32 to vector<16x256xf32>
    %155 = arith.mulf %154, %153 : vector<16x256xf32>
    %cst_66 = arith.constant 4.471500e-02 : f32
    %156 = vector.broadcast %cst_66 : f32 to vector<16x256xf32>
    %157 = arith.mulf %156, %153 : vector<16x256xf32>
    %158 = arith.mulf %157, %153 : vector<16x256xf32>
    %159 = arith.mulf %158, %153 : vector<16x256xf32>
    %160 = arith.addf %153, %159 : vector<16x256xf32>
    %cst_67 = arith.constant 0.797884583 : f32
    %161 = vector.broadcast %cst_67 : f32 to vector<16x256xf32>
    %162 = arith.mulf %161, %160 : vector<16x256xf32>
    %163 = math.tanh %162 : vector<16x256xf32>
    %cst_68 = arith.constant 1.000000e+00 : f32
    %164 = vector.broadcast %cst_68 : f32 to vector<16x256xf32>
    %165 = arith.addf %164, %163 : vector<16x256xf32>
    %166 = arith.mulf %155, %165 : vector<16x256xf32>
    %167 = arith.truncf %166 : vector<16x256xf32> to vector<16x256xbf16>
    %c0_69 = arith.constant 0 : index
    %c0_70 = arith.constant 0 : index
    %c0_71 = arith.constant 0 : index
    %168 = vector.load %arg13[%c0_69, %c0_70, %c0_71] : memref<2x256x128xbf16, #tpu.memory_space<vmem>>, vector<1x256x128xbf16>
    %169 = vector.shape_cast %168 : vector<1x256x128xbf16> to vector<256x128xbf16>
    %cst_72 = arith.constant dense<0.000000e+00> : vector<16x128xf32>
    %170 = tpu.matmul %167, %169, %cst_72 {dimension_numbers = #tpu.dot_dimension_numbers<[1], [0], [0], [1], [0, 0, 1, 1], [], []>} : vector<16x256xbf16>, vector<256x128xbf16>, vector<16x128xf32> -> vector<16x128xf32>
    %171 = vector.extract_strided_slice %114 {offsets = [3, 0], sizes = [1, 128], strides = [1, 1]} : vector<6x128xf32> to vector<1x128xf32>
    %172 = vector.broadcast %171 : vector<1x128xf32> to vector<16x128xf32>
    %173 = arith.addf %170, %172 : vector<16x128xf32>
    %174 = arith.addf %173, %145 : vector<16x128xf32>
    %175 = vector.extract_strided_slice %114 {offsets = [4, 0], sizes = [1, 128], strides = [1, 1]} : vector<6x128xf32> to vector<1x128xf32>
    %176 = vector.extract_strided_slice %114 {offsets = [5, 0], sizes = [1, 128], strides = [1, 1]} : vector<6x128xf32> to vector<1x128xf32>
    %cst_73 = arith.constant dense<0.000000e+00> : vector<16xf32>
    %177 = vector.multi_reduction <add>, %174, %cst_73 [1] : vector<16x128xf32> to vector<16xf32>
    %178 = vector.shape_cast %177 : vector<16xf32> to vector<16x1xf32>
    %cst_74 = arith.constant 1.280000e+02 : f32
    %179 = vector.broadcast %cst_74 : f32 to vector<16x1xf32>
    %180 = arith.divf %178, %179 : vector<16x1xf32>
    %181 = vector.broadcast %180 : vector<16x1xf32> to vector<16x128xf32>
    %182 = arith.subf %174, %181 : vector<16x128xf32>
    %183 = arith.mulf %182, %182 : vector<16x128xf32>
    %cst_75 = arith.constant dense<0.000000e+00> : vector<16xf32>
    %184 = vector.multi_reduction <add>, %183, %cst_75 [1] : vector<16x128xf32> to vector<16xf32>
    %185 = vector.shape_cast %184 : vector<16xf32> to vector<16x1xf32>
    %cst_76 = arith.constant 1.280000e+02 : f32
    %186 = vector.broadcast %cst_76 : f32 to vector<16x1xf32>
    %187 = arith.divf %185, %186 : vector<16x1xf32>
    %cst_77 = arith.constant 9.99999996E-13 : f32
    %188 = vector.broadcast %cst_77 : f32 to vector<16x1xf32>
    %189 = arith.addf %187, %188 : vector<16x1xf32>
    %190 = math.rsqrt %189 : vector<16x1xf32>
    %191 = vector.broadcast %190 : vector<16x1xf32> to vector<16x128xf32>
    %192 = arith.mulf %182, %191 : vector<16x128xf32>
    %193 = vector.broadcast %175 : vector<1x128xf32> to vector<16x128xf32>
    %194 = arith.mulf %192, %193 : vector<16x128xf32>
    %195 = vector.broadcast %176 : vector<1x128xf32> to vector<16x128xf32>
    %196 = arith.addf %194, %195 : vector<16x128xf32>
    %197 = arith.truncf %196 : vector<16x128xf32> to vector<16x128xbf16>
    %c1_78 = arith.constant 1 : index
    %c0_79 = arith.constant 0 : index
    %c0_80 = arith.constant 0 : index
    %198 = vector.load %arg8[%c1_78, %c0_79, %c0_80] : memref<2x128x384xbf16, #tpu.memory_space<vmem>>, vector<1x128x384xbf16>
    %199 = vector.shape_cast %198 : vector<1x128x384xbf16> to vector<128x384xbf16>
    %cst_81 = arith.constant dense<0.000000e+00> : vector<16x384xf32>
    %200 = tpu.matmul %197, %199, %cst_81 {dimension_numbers = #tpu.dot_dimension_numbers<[1], [0], [0], [1], [0, 0, 1, 1], [], []>} : vector<16x128xbf16>, vector<128x384xbf16>, vector<16x384xf32> -> vector<16x384xf32>
    %c1_82 = arith.constant 1 : index
    %c0_83 = arith.constant 0 : index
    %c0_84 = arith.constant 0 : index
    %201 = vector.load %arg9[%c1_82, %c0_83, %c0_84] : memref<2x1x384xf32, #tpu.memory_space<vmem>>, vector<1x1x384xf32>
    %202 = vector.shape_cast %201 : vector<1x1x384xf32> to vector<1x384xf32>
    %203 = vector.broadcast %202 : vector<1x384xf32> to vector<16x384xf32>
    %204 = arith.addf %200, %203 : vector<16x384xf32>
    %205 = vector.extract_strided_slice %204 {offsets = [0, 0], sizes = [16, 128], strides = [1, 1]} : vector<16x384xf32> to vector<16x128xf32>
    %206 = vector.shape_cast %205 : vector<16x128xf32> to vector<2x8x128xf32>
    %207 = vector.extract_strided_slice %204 {offsets = [0, 128], sizes = [16, 128], strides = [1, 1]} : vector<16x384xf32> to vector<16x128xf32>
    %208 = vector.shape_cast %207 : vector<16x128xf32> to vector<2x8x128xf32>
    %209 = vector.extract_strided_slice %204 {offsets = [0, 256], sizes = [16, 128], strides = [1, 1]} : vector<16x384xf32> to vector<16x128xf32>
    %210 = vector.shape_cast %209 : vector<16x128xf32> to vector<2x8x128xf32>
    %211 = vector.extract_strided_slice %206 {offsets = [0, 0, 0], sizes = [2, 8, 64], strides = [1, 1, 1]} : vector<2x8x128xf32> to vector<2x8x64xf32>
    %212 = arith.truncf %211 : vector<2x8x64xf32> to vector<2x8x64xbf16>
    %213 = vector.extract_strided_slice %208 {offsets = [0, 0, 0], sizes = [2, 8, 64], strides = [1, 1, 1]} : vector<2x8x128xf32> to vector<2x8x64xf32>
    %214 = arith.truncf %213 : vector<2x8x64xf32> to vector<2x8x64xbf16>
    %215 = vector.extract_strided_slice %210 {offsets = [0, 0, 0], sizes = [2, 8, 64], strides = [1, 1, 1]} : vector<2x8x128xf32> to vector<2x8x64xf32>
    %216 = arith.truncf %215 : vector<2x8x64xf32> to vector<2x8x64xbf16>
    "tpu.trace_start"() <{level = 10 : i32, message = "bqd,bkd->bqk"}> : () -> ()
    %cst_85 = arith.constant dense<0.000000e+00> : vector<2x8x8xf32>
    %217 = tpu.matmul %212, %214, %cst_85 {dimension_numbers = #tpu.dot_dimension_numbers<[2], [2], [1], [1], [0, 0, 0, 1, 1, 1], [0], [0]>} : vector<2x8x64xbf16>, vector<2x8x64xbf16>, vector<2x8x8xf32> -> vector<2x8x8xf32>
    "tpu.trace_stop"() : () -> ()
    %218 = vector.broadcast %52 : vector<2x1x8xf32> to vector<2x8x8xf32>
    %219 = arith.addf %217, %218 : vector<2x8x8xf32>
    %cst_86 = arith.constant dense<0xFF800000> : vector<2x8xf32>
    %220 = vector.multi_reduction <maximumf>, %219, %cst_86 [2] : vector<2x8x8xf32> to vector<2x8xf32>
    %221 = vector.shape_cast %220 : vector<2x8xf32> to vector<2x8x1xf32>
    %222 = vector.broadcast %221 : vector<2x8x1xf32> to vector<2x8x8xf32>
    %223 = arith.subf %219, %222 : vector<2x8x8xf32>
    %224 = math.exp %223 : vector<2x8x8xf32>
    %cst_87 = arith.constant dense<0.000000e+00> : vector<2x8xf32>
    %225 = vector.multi_reduction <add>, %224, %cst_87 [2] : vector<2x8x8xf32> to vector<2x8xf32>
    %226 = vector.shape_cast %225 : vector<2x8xf32> to vector<2x8x1xf32>
    %227 = tpu.reciprocal %226 {approx = true} : vector<2x8x1xf32> -> vector<2x8x1xf32>
    %228 = vector.broadcast %227 : vector<2x8x1xf32> to vector<2x8x8xf32>
    %229 = arith.mulf %224, %228 : vector<2x8x8xf32>
    %230 = arith.truncf %229 : vector<2x8x8xf32> to vector<2x8x8xbf16>
    "tpu.trace_start"() <{level = 10 : i32, message = "bqk,bkd->bqd"}> : () -> ()
    %cst_88 = arith.constant dense<0.000000e+00> : vector<2x8x64xf32>
    %231 = tpu.matmul %230, %216, %cst_88 {dimension_numbers = #tpu.dot_dimension_numbers<[2], [1], [1], [2], [0, 0, 0, 1, 1, 2], [0], [0]>} : vector<2x8x8xbf16>, vector<2x8x64xbf16>, vector<2x8x64xf32> -> vector<2x8x64xf32>
    "tpu.trace_stop"() : () -> ()
    %232 = vector.shape_cast %231 : vector<2x8x64xf32> to vector<16x64xf32>
    %c0_89 = arith.constant 0 : index
    %c0_90 = arith.constant 0 : index
    %233 = vector.load %arg19[%c0_89, %c0_90] : memref<16x128xf32, #tpu.memory_space<vmem>>, vector<16x64xf32>
    tpu.vector_store %arg19[%c0_89, %c0_90], %232 {strides = array<i32>} : memref<16x128xf32, #tpu.memory_space<vmem>>, vector<16x64xf32>,
    %234 = vector.extract_strided_slice %206 {offsets = [0, 0, 64], sizes = [2, 8, 64], strides = [1, 1, 1]} : vector<2x8x128xf32> to vector<2x8x64xf32>
    %235 = arith.truncf %234 : vector<2x8x64xf32> to vector<2x8x64xbf16>
    %236 = vector.extract_strided_slice %208 {offsets = [0, 0, 64], sizes = [2, 8, 64], strides = [1, 1, 1]} : vector<2x8x128xf32> to vector<2x8x64xf32>
    %237 = arith.truncf %236 : vector<2x8x64xf32> to vector<2x8x64xbf16>
    %238 = vector.extract_strided_slice %210 {offsets = [0, 0, 64], sizes = [2, 8, 64], strides = [1, 1, 1]} : vector<2x8x128xf32> to vector<2x8x64xf32>
    %239 = arith.truncf %238 : vector<2x8x64xf32> to vector<2x8x64xbf16>
    "tpu.trace_start"() <{level = 10 : i32, message = "bqd,bkd->bqk"}> : () -> ()
    %cst_91 = arith.constant dense<0.000000e+00> : vector<2x8x8xf32>
    %240 = tpu.matmul %235, %237, %cst_91 {dimension_numbers = #tpu.dot_dimension_numbers<[2], [2], [1], [1], [0, 0, 0, 1, 1, 1], [0], [0]>} : vector<2x8x64xbf16>, vector<2x8x64xbf16>, vector<2x8x8xf32> -> vector<2x8x8xf32>
    "tpu.trace_stop"() : () -> ()
    %241 = vector.broadcast %52 : vector<2x1x8xf32> to vector<2x8x8xf32>
    %242 = arith.addf %240, %241 : vector<2x8x8xf32>
    %cst_92 = arith.constant dense<0xFF800000> : vector<2x8xf32>
    %243 = vector.multi_reduction <maximumf>, %242, %cst_92 [2] : vector<2x8x8xf32> to vector<2x8xf32>
    %244 = vector.shape_cast %243 : vector<2x8xf32> to vector<2x8x1xf32>
    %245 = vector.broadcast %244 : vector<2x8x1xf32> to vector<2x8x8xf32>
    %246 = arith.subf %242, %245 : vector<2x8x8xf32>
    %247 = math.exp %246 : vector<2x8x8xf32>
    %cst_93 = arith.constant dense<0.000000e+00> : vector<2x8xf32>
    %248 = vector.multi_reduction <add>, %247, %cst_93 [2] : vector<2x8x8xf32> to vector<2x8xf32>
    %249 = vector.shape_cast %248 : vector<2x8xf32> to vector<2x8x1xf32>
    %250 = tpu.reciprocal %249 {approx = true} : vector<2x8x1xf32> -> vector<2x8x1xf32>
    %251 = vector.broadcast %250 : vector<2x8x1xf32> to vector<2x8x8xf32>
    %252 = arith.mulf %247, %251 : vector<2x8x8xf32>
    %253 = arith.truncf %252 : vector<2x8x8xf32> to vector<2x8x8xbf16>
    "tpu.trace_start"() <{level = 10 : i32, message = "bqk,bkd->bqd"}> : () -> ()
    %cst_94 = arith.constant dense<0.000000e+00> : vector<2x8x64xf32>
    %254 = tpu.matmul %253, %239, %cst_94 {dimension_numbers = #tpu.dot_dimension_numbers<[2], [1], [1], [2], [0, 0, 0, 1, 1, 2], [0], [0]>} : vector<2x8x8xbf16>, vector<2x8x64xbf16>, vector<2x8x64xf32> -> vector<2x8x64xf32>
    "tpu.trace_stop"() : () -> ()
    %255 = vector.shape_cast %254 : vector<2x8x64xf32> to vector<16x64xf32>
    %c0_95 = arith.constant 0 : index
    %c64_96 = arith.constant 64 : index
    %256 = vector.load %arg19[%c0_95, %c64_96] : memref<16x128xf32, #tpu.memory_space<vmem>>, vector<16x64xf32>
    tpu.vector_store %arg19[%c0_95, %c64_96], %255 {strides = array<i32>} : memref<16x128xf32, #tpu.memory_space<vmem>>, vector<16x64xf32>,
    %c1_97 = arith.constant 1 : index
    %c0_98 = arith.constant 0 : index
    %c0_99 = arith.constant 0 : index
    %257 = vector.load %arg14[%c1_97, %c0_98, %c0_99] : memref<2x6x128xf32, #tpu.memory_space<vmem>>, vector<1x6x128xf32>
    %258 = vector.shape_cast %257 : vector<1x6x128xf32> to vector<6x128xf32>
    %c0_100 = arith.constant 0 : index
    %c0_101 = arith.constant 0 : index
    %259 = vector.load %arg19[%c0_100, %c0_101] : memref<16x128xf32, #tpu.memory_space<vmem>>, vector<16x128xf32>
    %260 = arith.truncf %259 : vector<16x128xf32> to vector<16x128xbf16>
    %c1_102 = arith.constant 1 : index
    %c0_103 = arith.constant 0 : index
    %c0_104 = arith.constant 0 : index
    %261 = vector.load %arg10[%c1_102, %c0_103, %c0_104] : memref<2x128x128xbf16, #tpu.memory_space<vmem>>, vector<1x128x128xbf16>
    %262 = vector.shape_cast %261 : vector<1x128x128xbf16> to vector<128x128xbf16>
    %cst_105 = arith.constant dense<0.000000e+00> : vector<16x128xf32>
    %263 = tpu.matmul %260, %262, %cst_105 {dimension_numbers = #tpu.dot_dimension_numbers<[1], [0], [0], [1], [0, 0, 1, 1], [], []>} : vector<16x128xbf16>, vector<128x128xbf16>, vector<16x128xf32> -> vector<16x128xf32>
    %264 = vector.extract_strided_slice %258 {offsets = [0, 0], sizes = [1, 128], strides = [1, 1]} : vector<6x128xf32> to vector<1x128xf32>
    %265 = vector.broadcast %264 : vector<1x128xf32> to vector<16x128xf32>
    %266 = arith.addf %263, %265 : vector<16x128xf32>
    %267 = arith.addf %266, %196 : vector<16x128xf32>
    %268 = vector.extract_strided_slice %258 {offsets = [1, 0], sizes = [1, 128], strides = [1, 1]} : vector<6x128xf32> to vector<1x128xf32>
    %269 = vector.extract_strided_slice %258 {offsets = [2, 0], sizes = [1, 128], strides = [1, 1]} : vector<6x128xf32> to vector<1x128xf32>
    %cst_106 = arith.constant dense<0.000000e+00> : vector<16xf32>
    %270 = vector.multi_reduction <add>, %267, %cst_106 [1] : vector<16x128xf32> to vector<16xf32>
    %271 = vector.shape_cast %270 : vector<16xf32> to vector<16x1xf32>
    %cst_107 = arith.constant 1.280000e+02 : f32
    %272 = vector.broadcast %cst_107 : f32 to vector<16x1xf32>
    %273 = arith.divf %271, %272 : vector<16x1xf32>
    %274 = vector.broadcast %273 : vector<16x1xf32> to vector<16x128xf32>
    %275 = arith.subf %267, %274 : vector<16x128xf32>
    %276 = arith.mulf %275, %275 : vector<16x128xf32>
    %cst_108 = arith.constant dense<0.000000e+00> : vector<16xf32>
    %277 = vector.multi_reduction <add>, %276, %cst_108 [1] : vector<16x128xf32> to vector<16xf32>
    %278 = vector.shape_cast %277 : vector<16xf32> to vector<16x1xf32>
    %cst_109 = arith.constant 1.280000e+02 : f32
    %279 = vector.broadcast %cst_109 : f32 to vector<16x1xf32>
    %280 = arith.divf %278, %279 : vector<16x1xf32>
    %cst_110 = arith.constant 9.99999996E-13 : f32
    %281 = vector.broadcast %cst_110 : f32 to vector<16x1xf32>
    %282 = arith.addf %280, %281 : vector<16x1xf32>
    %283 = math.rsqrt %282 : vector<16x1xf32>
    %284 = vector.broadcast %283 : vector<16x1xf32> to vector<16x128xf32>
    %285 = arith.mulf %275, %284 : vector<16x128xf32>
    %286 = vector.broadcast %268 : vector<1x128xf32> to vector<16x128xf32>
    %287 = arith.mulf %285, %286 : vector<16x128xf32>
    %288 = vector.broadcast %269 : vector<1x128xf32> to vector<16x128xf32>
    %289 = arith.addf %287, %288 : vector<16x128xf32>
    %290 = arith.truncf %289 : vector<16x128xf32> to vector<16x128xbf16>
    %c1_111 = arith.constant 1 : index
    %c0_112 = arith.constant 0 : index
    %c0_113 = arith.constant 0 : index
    %291 = vector.load %arg11[%c1_111, %c0_112, %c0_113] : memref<2x128x256xbf16, #tpu.memory_space<vmem>>, vector<1x128x256xbf16>
    %292 = vector.shape_cast %291 : vector<1x128x256xbf16> to vector<128x256xbf16>
    %cst_114 = arith.constant dense<0.000000e+00> : vector<16x256xf32>
    %293 = tpu.matmul %290, %292, %cst_114 {dimension_numbers = #tpu.dot_dimension_numbers<[1], [0], [0], [1], [0, 0, 1, 1], [], []>} : vector<16x128xbf16>, vector<128x256xbf16>, vector<16x256xf32> -> vector<16x256xf32>
    %c1_115 = arith.constant 1 : index
    %c0_116 = arith.constant 0 : index
    %c0_117 = arith.constant 0 : index
    %294 = vector.load %arg12[%c1_115, %c0_116, %c0_117] : memref<2x1x256xf32, #tpu.memory_space<vmem>>, vector<1x1x256xf32>
    %295 = vector.shape_cast %294 : vector<1x1x256xf32> to vector<1x256xf32>
    %296 = vector.broadcast %295 : vector<1x256xf32> to vector<16x256xf32>
    %297 = arith.addf %293, %296 : vector<16x256xf32>
    %cst_118 = arith.constant 5.000000e-01 : f32
    %298 = vector.broadcast %cst_118 : f32 to vector<16x256xf32>
    %299 = arith.mulf %298, %297 : vector<16x256xf32>
    %cst_119 = arith.constant 4.471500e-02 : f32
    %300 = vector.broadcast %cst_119 : f32 to vector<16x256xf32>
    %301 = arith.mulf %300, %297 : vector<16x256xf32>
    %302 = arith.mulf %301, %297 : vector<16x256xf32>
    %303 = arith.mulf %302, %297 : vector<16x256xf32>
    %304 = arith.addf %297, %303 : vector<16x256xf32>
    %cst_120 = arith.constant 0.797884583 : f32
    %305 = vector.broadcast %cst_120 : f32 to vector<16x256xf32>
    %306 = arith.mulf %305, %304 : vector<16x256xf32>
    %307 = math.tanh %306 : vector<16x256xf32>
    %cst_121 = arith.constant 1.000000e+00 : f32
    %308 = vector.broadcast %cst_121 : f32 to vector<16x256xf32>
    %309 = arith.addf %308, %307 : vector<16x256xf32>
    %310 = arith.mulf %299, %309 : vector<16x256xf32>
    %311 = arith.truncf %310 : vector<16x256xf32> to vector<16x256xbf16>
    %c1_122 = arith.constant 1 : index
    %c0_123 = arith.constant 0 : index
    %c0_124 = arith.constant 0 : index
    %312 = vector.load %arg13[%c1_122, %c0_123, %c0_124] : memref<2x256x128xbf16, #tpu.memory_space<vmem>>, vector<1x256x128xbf16>
    %313 = vector.shape_cast %312 : vector<1x256x128xbf16> to vector<256x128xbf16>
    %cst_125 = arith.constant dense<0.000000e+00> : vector<16x128xf32>
    %314 = tpu.matmul %311, %313, %cst_125 {dimension_numbers = #tpu.dot_dimension_numbers<[1], [0], [0], [1], [0, 0, 1, 1], [], []>} : vector<16x256xbf16>, vector<256x128xbf16>, vector<16x128xf32> -> vector<16x128xf32>
    %315 = vector.extract_strided_slice %258 {offsets = [3, 0], sizes = [1, 128], strides = [1, 1]} : vector<6x128xf32> to vector<1x128xf32>
    %316 = vector.broadcast %315 : vector<1x128xf32> to vector<16x128xf32>
    %317 = arith.addf %314, %316 : vector<16x128xf32>
    %318 = arith.addf %317, %289 : vector<16x128xf32>
    %319 = vector.extract_strided_slice %258 {offsets = [4, 0], sizes = [1, 128], strides = [1, 1]} : vector<6x128xf32> to vector<1x128xf32>
    %320 = vector.extract_strided_slice %258 {offsets = [5, 0], sizes = [1, 128], strides = [1, 1]} : vector<6x128xf32> to vector<1x128xf32>
    %cst_126 = arith.constant dense<0.000000e+00> : vector<16xf32>
    %321 = vector.multi_reduction <add>, %318, %cst_126 [1] : vector<16x128xf32> to vector<16xf32>
    %322 = vector.shape_cast %321 : vector<16xf32> to vector<16x1xf32>
    %cst_127 = arith.constant 1.280000e+02 : f32
    %323 = vector.broadcast %cst_127 : f32 to vector<16x1xf32>
    %324 = arith.divf %322, %323 : vector<16x1xf32>
    %325 = vector.broadcast %324 : vector<16x1xf32> to vector<16x128xf32>
    %326 = arith.subf %318, %325 : vector<16x128xf32>
    %327 = arith.mulf %326, %326 : vector<16x128xf32>
    %cst_128 = arith.constant dense<0.000000e+00> : vector<16xf32>
    %328 = vector.multi_reduction <add>, %327, %cst_128 [1] : vector<16x128xf32> to vector<16xf32>
    %329 = vector.shape_cast %328 : vector<16xf32> to vector<16x1xf32>
    %cst_129 = arith.constant 1.280000e+02 : f32
    %330 = vector.broadcast %cst_129 : f32 to vector<16x1xf32>
    %331 = arith.divf %329, %330 : vector<16x1xf32>
    %cst_130 = arith.constant 9.99999996E-13 : f32
    %332 = vector.broadcast %cst_130 : f32 to vector<16x1xf32>
    %333 = arith.addf %331, %332 : vector<16x1xf32>
    %334 = math.rsqrt %333 : vector<16x1xf32>
    %335 = vector.broadcast %334 : vector<16x1xf32> to vector<16x128xf32>
    %336 = arith.mulf %326, %335 : vector<16x128xf32>
    %337 = vector.broadcast %319 : vector<1x128xf32> to vector<16x128xf32>
    %338 = arith.mulf %336, %337 : vector<16x128xf32>
    %339 = vector.broadcast %320 : vector<1x128xf32> to vector<16x128xf32>
    %340 = arith.addf %338, %339 : vector<16x128xf32>
    %c0_131 = arith.constant 0 : index
    %c0_132 = arith.constant 0 : index
    %341 = vector.load %arg16[%c0_131, %c0_132] : memref<3x128xf32, #tpu.memory_space<vmem>>, vector<3x128xf32>
    %342 = arith.truncf %340 : vector<16x128xf32> to vector<16x128xbf16>
    %c0_133 = arith.constant 0 : index
    %c0_134 = arith.constant 0 : index
    %343 = vector.load %arg15[%c0_133, %c0_134] : memref<128x128xbf16, #tpu.memory_space<vmem>>, vector<128x128xbf16>
    %cst_135 = arith.constant dense<0.000000e+00> : vector<16x128xf32>
    %344 = tpu.matmul %342, %343, %cst_135 {dimension_numbers = #tpu.dot_dimension_numbers<[1], [0], [0], [1], [0, 0, 1, 1], [], []>} : vector<16x128xbf16>, vector<128x128xbf16>, vector<16x128xf32> -> vector<16x128xf32>
    %345 = vector.extract_strided_slice %341 {offsets = [0, 0], sizes = [1, 128], strides = [1, 1]} : vector<3x128xf32> to vector<1x128xf32>
    %346 = vector.broadcast %345 : vector<1x128xf32> to vector<16x128xf32>
    %347 = arith.addf %344, %346 : vector<16x128xf32>
    %cst_136 = arith.constant 5.000000e-01 : f32
    %348 = vector.broadcast %cst_136 : f32 to vector<16x128xf32>
    %349 = arith.mulf %348, %347 : vector<16x128xf32>
    %cst_137 = arith.constant 4.471500e-02 : f32
    %350 = vector.broadcast %cst_137 : f32 to vector<16x128xf32>
    %351 = arith.mulf %350, %347 : vector<16x128xf32>
    %352 = arith.mulf %351, %347 : vector<16x128xf32>
    %353 = arith.mulf %352, %347 : vector<16x128xf32>
    %354 = arith.addf %347, %353 : vector<16x128xf32>
    %cst_138 = arith.constant 0.797884583 : f32
    %355 = vector.broadcast %cst_138 : f32 to vector<16x128xf32>
    %356 = arith.mulf %355, %354 : vector<16x128xf32>
    %357 = math.tanh %356 : vector<16x128xf32>
    %cst_139 = arith.constant 1.000000e+00 : f32
    %358 = vector.broadcast %cst_139 : f32 to vector<16x128xf32>
    %359 = arith.addf %358, %357 : vector<16x128xf32>
    %360 = arith.mulf %349, %359 : vector<16x128xf32>
    %361 = vector.extract_strided_slice %341 {offsets = [1, 0], sizes = [1, 128], strides = [1, 1]} : vector<3x128xf32> to vector<1x128xf32>
    %362 = vector.extract_strided_slice %341 {offsets = [2, 0], sizes = [1, 128], strides = [1, 1]} : vector<3x128xf32> to vector<1x128xf32>
    %cst_140 = arith.constant dense<0.000000e+00> : vector<16xf32>
    %363 = vector.multi_reduction <add>, %360, %cst_140 [1] : vector<16x128xf32> to vector<16xf32>
    %364 = vector.shape_cast %363 : vector<16xf32> to vector<16x1xf32>
    %cst_141 = arith.constant 1.280000e+02 : f32
    %365 = vector.broadcast %cst_141 : f32 to vector<16x1xf32>
    %366 = arith.divf %364, %365 : vector<16x1xf32>
    %367 = vector.broadcast %366 : vector<16x1xf32> to vector<16x128xf32>
    %368 = arith.subf %360, %367 : vector<16x128xf32>
    %369 = arith.mulf %368, %368 : vector<16x128xf32>
    %cst_142 = arith.constant dense<0.000000e+00> : vector<16xf32>
    %370 = vector.multi_reduction <add>, %369, %cst_142 [1] : vector<16x128xf32> to vector<16xf32>
    %371 = vector.shape_cast %370 : vector<16xf32> to vector<16x1xf32>
    %cst_143 = arith.constant 1.280000e+02 : f32
    %372 = vector.broadcast %cst_143 : f32 to vector<16x1xf32>
    %373 = arith.divf %371, %372 : vector<16x1xf32>
    %cst_144 = arith.constant 9.99999996E-13 : f32
    %374 = vector.broadcast %cst_144 : f32 to vector<16x1xf32>
    %375 = arith.addf %373, %374 : vector<16x1xf32>
    %376 = math.rsqrt %375 : vector<16x1xf32>
    %377 = vector.broadcast %376 : vector<16x1xf32> to vector<16x128xf32>
    %378 = arith.mulf %368, %377 : vector<16x128xf32>
    %379 = vector.broadcast %361 : vector<1x128xf32> to vector<16x128xf32>
    %380 = arith.mulf %378, %379 : vector<16x128xf32>
    %381 = vector.broadcast %362 : vector<1x128xf32> to vector<16x128xf32>
    %382 = arith.addf %380, %381 : vector<16x128xf32>
    %383 = arith.truncf %382 : vector<16x128xf32> to vector<16x128xbf16>
    %c0_145 = arith.constant 0 : index
    %c0_146 = arith.constant 0 : index
    %384 = vector.load %arg4[%c0_145, %c0_146] : memref<128x256xbf16, #tpu.memory_space<vmem>>, vector<128x256xbf16>
    %cst_147 = arith.constant dense<0.000000e+00> : vector<16x256xf32>
    %385 = tpu.matmul %383, %384, %cst_147 {dimension_numbers = #tpu.dot_dimension_numbers<[1], [0], [0], [1], [0, 0, 1, 1], [], []>} : vector<16x128xbf16>, vector<128x256xbf16>, vector<16x256xf32> -> vector<16x256xf32>
    %c0_148 = arith.constant 0 : index
    %c0_149 = arith.constant 0 : index
    %386 = vector.load %arg17[%c0_148, %c0_149] : memref<1x256xf32, #tpu.memory_space<vmem>>, vector<1x256xf32>
    %387 = vector.broadcast %386 : vector<1x256xf32> to vector<16x256xf32>
    %388 = arith.addf %385, %387 : vector<16x256xf32>
    %c0_150 = arith.constant 0 : index
    %c0_151 = arith.constant 0 : index
    %389 = vector.load %arg18[%c0_150, %c0_151] : memref<16x256xf32, #tpu.memory_space<vmem>>, vector<16x256xf32>
    tpu.vector_store %arg18[%c0_150, %c0_151], %388 {strides = array<i32>} : memref<16x256xf32, #tpu.memory_space<vmem>>, vector<16x256xf32>,
    return
  }
}

</mosaic_0001>

<bundles_post_ra>
// kernel: lm_forward.1
= control target key start
LH: loop header
LB: loop body
LE: loop exit
PB: predicated region body
PF: predicated region fallthrough
CT: control target
= control target key end

     0   :  { %s4137_s0 = inlined_call_operand.vmem [shape: s32[16,1], index: 0, kind: input, shape index: {}]   ;;  %s4138_s1 = inlined_call_operand.vmem [shape: f32[16,1], index: 1, kind: input, shape index: {}]   ;;  %s4139_s2 = inlined_call_operand.vmem [shape: f32[2,8], index: 2, kind: input, shape index: {}]   ;;  %s4140_s3 = inlined_call_operand.hbm [shape: f32[256,128], index: 3, kind: input, shape index: {}]   ;;  %s4141_s4 = inlined_call_operand.hbm [shape: bf16[128,256], index: 4, kind: input, shape index: {}]   ;;  %s4142_s5 = inlined_call_operand.vmem [shape: f32[8,128], index: 5, kind: input, shape index: {}]   ;;  %s4143_s6 = inlined_call_operand.vmem [shape: f32[2,128], index: 6, kind: input, shape index: {}]   ;;  %s4144_s7 = inlined_call_operand.vmem [shape: f32[2,128], index: 7, kind: input, shape index: {}]   ;;  %s4145_s8 = inlined_call_operand.hbm [shape: bf16[2,128,384], index: 8, kind: input, shape index: {}]   ;;  %s4146_s9 = inlined_call_operand.vmem [shape: f32[2,1,384], index: 9, kind: input, shape index: {}]   ;;  %s4147_s10 = inlined_call_operand.hbm [shape: bf16[2,128,128], index: 10, kind: input, shape index: {}]   ;;  %s4148_s11 = inlined_call_operand.hbm [shape: bf16[2,128,256], index: 11, kind: input, shape index: {}]   ;;  %s4149_s12 = inlined_call_operand.vmem [shape: f32[2,1,256], index: 12, kind: input, shape index: {}]   ;;  %s4150_s13 = inlined_call_operand.hbm [shape: bf16[2,256,128], index: 13, kind: input, shape index: {}]   ;;  %s4151_s14 = inlined_call_operand.vmem [shape: f32[2,6,128], index: 14, kind: input, shape index: {}]   ;;  %s4152_s15 = inlined_call_operand.hbm [shape: bf16[128,128], index: 15, kind: input, shape index: {}]   ;;  %s4153_s16 = inlined_call_operand.vmem [shape: f32[3,128], index: 16, kind: input, shape index: {}]   ;;  %s4154_s17 = inlined_call_operand.vmem [shape: f32[1,256], index: 17, kind: input, shape index: {}]   ;;  %s4155_s18 = inlined_call_operand.hbm [shape: f32[16,256], index: 18, kind: output, shape index: {}]  }
   0x1   :  { %4158 = sst [smem:[#allocation21_spill]] %s4137_s0 }
   0x2   :  { %4159 = sst [smem:[#allocation22_spill]] %s4138_s1 }
   0x3   :  { %4160 = sst [smem:[#allocation23_spill]] %s4139_s2 }
   0x4   :  { %23 = vsyncpa [#allocation4], 0 }
   0x5   :  { %24 = vsyncpa [#allocation7], 0 }
   0x6   :  { %25 = vsyncpa [#allocation10], 0 }
   0x7   :  { %26 = vsyncpa [#allocation13], 0 }
   0x8   :  { %27 = vsyncpa [#allocation5], 0  ;;  %s51_s29 = sshll.u32 %s4141_s4, 4  ;;  %s3698_s30 = smov [#allocation6]   ;;  %s52_s29 = int_to_ptr.hbm [resolvable:$true] %s51_s29 }
   0x9   :  { %s53_s0 = sshll.u32 %s3698_s30, 4  ;;  %s85_s20 = sshll.u32 %s4147_s10, 4  ;;  %s54_s0 = int_to_ptr.vmem [resolvable:$true] %s53_s0  ;;  %s86_s20 = int_to_ptr.hbm [resolvable:$true] %s85_s20 }
   0xa   :  { %s3699_s21 = smov 128   ;;  %s3700_s22 = smov 8  }
   0xb   :  { %59 = dma.hbm_to_vmem [thread:$0]  %s52_s29, 2048, %s54_s0, [#allocation7], %s3699_s21, %s3699_s21, %s3700_s22  }
   0xc   :  { %s3701_s2 = smov [#allocation9]   ;;  %s3702_s24 = smov 64  }
   0xd   :  { %s87_s23 = sshll.u32 %s3701_s2, 4  ;;  %s3703_s4 = smov 4   ;;  %s88_s23 = int_to_ptr.vmem [resolvable:$true] %s87_s23 }
   0xe   :  { %93 = dma.hbm_to_vmem [thread:$0]  %s86_s20, 2048, %s88_s23, [#allocation10], %s3702_s24, %s3702_s24, %s3703_s4  }
   0xf   :  { %s113_s10 = sshll.u32 %s4150_s13, 4  ;;  %s3704_s27 = smov [#allocation12]   ;;  %s114_s10 = int_to_ptr.hbm [resolvable:$true] %s113_s10 }
  0x10   :  { %s115_s28 = sshll.u32 %s3704_s27, 4  ;;  %s38_s0 = sshll.u32 %s4140_s3, 4  ;;  %s116_s28 = int_to_ptr.vmem [resolvable:$true] %s115_s28  ;;  %s39_s0 = int_to_ptr.hbm [resolvable:$true] %s38_s0 }
  0x11   :  { %121 = dma.hbm_to_vmem [thread:$0]  %s114_s10, 4096, %s116_s28, [#allocation13], %s3702_s24, %s3702_s24, %s3703_s4  }
  0x12   :  { %s3705_s19 = smov [#allocation3]   ;;  %s70_s23 = sshll.u32 %s4145_s8, 4  ;;  %s71_s23 = int_to_ptr.hbm [resolvable:$true] %s70_s23 }
  0x13   :  { %s40_s1 = sshll.u32 %s3705_s19, 4  ;;  %s3706_s13 = smov [#allocation8]   ;;  %s41_s1 = int_to_ptr.vmem [resolvable:$true] %s40_s1 }
  0x14   :  { %46 = dma.hbm_to_vmem [thread:$0]  %s39_s0, 4096, %s41_s1, [#allocation4], %s3699_s21, %s3699_s21, %s3700_s22  }
  0x15   :  { %s72_s25 = sshll.u32 %s3706_s13, 4  ;;  %s98_s10 = sshll.u32 %s4148_s11, 4  ;;  %s73_s25 = int_to_ptr.vmem [resolvable:$true] %s72_s25  ;;  %s99_s10 = int_to_ptr.hbm [resolvable:$true] %s98_s10 }
  0x16   :  { %s3707_s27 = smov 192   ;;  %s3708_s28 = smov 12  }
  0x17   :  { %78 = dma.hbm_to_vmem [thread:$0]  %s71_s23, 6144, %s73_s25, [#allocation7], %s3707_s27, %s3707_s27, %s3708_s28  }
  0x18   :  { %s3709_s30 = smov [#allocation11]   ;;  %s128_s20 = sshll.u32 %s4152_s15, 4  ;;  %s129_s20 = int_to_ptr.hbm [resolvable:$true] %s128_s20 }
  0x19   :  { %s100_s29 = sshll.u32 %s3709_s30, 4  ;;  %s3710_s0 = smov [#allocation14]   ;;  %s101_s29 = int_to_ptr.vmem [resolvable:$true] %s100_s29 }
  0x1a   :  { %106 = dma.hbm_to_vmem [thread:$0]  %s99_s10, 4096, %s101_s29, [#allocation10], %s3699_s21, %s3699_s21, %s3700_s22  }
  0x1b   :  { %s130_s1 = sshll.u32 %s3710_s0, 4  ;;  %s131_s1 = int_to_ptr.vmem [resolvable:$true] %s130_s1 }
  0x1c   :  { %136 = dma.hbm_to_vmem [thread:$0]  %s129_s20, 1024, %s131_s1, [#allocation13], %s3702_s24, %s3702_s24, %s3703_s4  }
  0x1d   :  { %3688 = dma.done.wait [#allocation4], 4096  }
  0x1e   :  { %3689 = vsyncadd [#allocation4], 4294963200 }
  0x1f   :  { %3690 = dma.done.wait [#allocation7], 8192  }
  0x20   :  { %3691 = vsyncadd [#allocation7], 4294959104 }
  0x21   :  { %3692 = dma.done.wait [#allocation10], 6144  }
  0x22   :  { %3693 = vsyncadd [#allocation10], 4294961152 }
  0x23   :  { %3694 = dma.done.wait [#allocation13], 5120  }
  0x24   :  { %3695 = vsyncadd [#allocation13], 4294962176  ;;  %v3711_v0 = vmov 0   ;;  %s4161_s21 = sld [smem:[#allocation21_spill]]  ;;  %v204_v2 = vld [vmem:[#allocation3 + $0x78] sm:$0xff]  ;;  %v203_v4 = vld [vmem:[#allocation3 + $0x70] sm:$0xff]  ;;  %v172_v39 = vlaneseq }
  0x25   :  { %3411 = vset.pattern.permute.xlu0 %v3711_v0  ;;  %3412 = vset.pattern.permute.xlu1 %v3711_v0  ;;  %v220_v3 = vld [vmem:[#allocation3 + $0xf8] sm:$0xff]  ;;  %v219_v5 = vld [vmem:[#allocation3 + $0xf0] sm:$0xff]  ;;  %v202_v6 = vld [vmem:[#allocation3 + $0x68] sm:$0xff]  ;;  %s4162_s13 = sld [smem:[#allocation22_spill]]  ;;  %v3712_v43 = vmov 1.0   ;;  %vm652_vm11 = vcmask 1043456  }
  0x26   :  { %3413 = vset.pattern.permute.xlu2 %v3711_v0  ;;  %256 = vmatpush.msra.mxu0 %v204_v2  ;;  %v218_v7 = vld [vmem:[#allocation3 + $0xe8] sm:$0xff]  ;;  %v201_v8 = vld [vmem:[#allocation3 + $0x60] sm:$0xff]  ;;  %v200_v11 = vld [vmem:[#allocation3 + $0x58] sm:$0xff]  ;;  %v173_v40 = vand.u32 127, %v172_v39  ;;  %vm585_vm12 = vcmask 523264   ;;  %s4163_s11 = sld [smem:[#allocation23_spill]] }
  0x27   :  { %279 = vmatpush.msra.mxu1 %v220_v3  ;;  %v217_v9 = vld [vmem:[#allocation3 + $0xe0] sm:$0xff]  ;;  %v216_v12 = vld [vmem:[#allocation3 + $0xd8] sm:$0xff]  ;;  %v199_v13 = vld [vmem:[#allocation3 + $0x50] sm:$0xff]  ;;  %vm624_vm13 = vcmask 64512   ;;  %vm828_vm14 = vcmask 1048064   ;;  %s3714_s26 = smov [#allocation15]  }
  0x28   :  { %257 = vmatpush.msra.mxu0 %v203_v4  ;;  %v215_v14 = vld [vmem:[#allocation3 + $0xd0] sm:$0xff]  ;;  %v198_v15 = vld [vmem:[#allocation3 + $0x48] sm:$0xff]  ;;  %v197_v17 = vld [vmem:[#allocation3 + $0x40] sm:$0xff]  ;;  %v174_v41 = vadd.s32 128, %v173_v40  ;;  %v3713_v4 = vmov 128.0   ;;  %s2591_s10 = sshll.u32 %s3714_s26, 4  ;;  %s2592_s10 = int_to_ptr.vmem [resolvable:$true] %s2591_s10 }
  0x29   :  { %280 = vmatpush.msra.mxu1 %v219_v5  ;;  %v214_v16 = vld [vmem:[#allocation3 + $0xc8] sm:$0xff]  ;;  %v213_v18 = vld [vmem:[#allocation3 + $0xc0] sm:$0xff]  ;;  %v196_v19 = vld [vmem:[#allocation3 + $0x38] sm:$0xff]  ;;  %3418 = vrcp.f32 %v3713_v4  ;;  %s2593_s30 = sshll.u32 %s4155_s18, 4  ;;  %s3716_s29 = smov 16   ;;  %s2594_s30 = int_to_ptr.hbm [resolvable:$true] %s2593_s30 }
  0x2a   :  { %v170_v1 = vld [vmem:[%s4161_s21] sm:$0xff]  ;;  %258 = vmatpush.msra.mxu0 %v202_v6  ;;  %v171_v10 = vld [vmem:[%s4161_s21 + $0x8] sm:$0xff]  ;;  %v194_v23 = vld [vmem:[#allocation3 + $0x28] sm:$0xff] }
  0x2b   :  { %176 = vperm.xlu0 %3411, %v170_v1   ;;  %281 = vmatpush.msra.mxu1 %v218_v7  ;;  %v212_v20 = vld [vmem:[#allocation3 + $0xb8] sm:$0xff]  ;;  %v195_v21 = vld [vmem:[#allocation3 + $0x30] sm:$0xff]  ;;  %v210_v24 = vld [vmem:[#allocation3 + $0xa8] sm:$0xff] }
  0x2c   :  { %259 = vmatpush.msra.mxu0 %v201_v8  ;;  %v211_v22 = vld [vmem:[#allocation3 + $0xb0] sm:$0xff]  ;;  %v193_v25 = vld [vmem:[#allocation3 + $0x20] sm:$0xff]  ;;  %v192_v27 = vld [vmem:[#allocation3 + $0x18] sm:$0xff] }
  0x2d   :  { %282 = vmatpush.msra.mxu1 %v217_v9  ;;  %v209_v26 = vld [vmem:[#allocation3 + $0xa0] sm:$0xff]  ;;  %v208_v28 = vld [vmem:[#allocation3 + $0x98] sm:$0xff]  ;;  %v191_v29 = vld [vmem:[#allocation3 + $0x10] sm:$0xff] }
  0x2e   :  { %260 = vmatpush.msra.mxu0 %v200_v11  ;;  %v207_v30 = vld [vmem:[#allocation3 + $0x90] sm:$0xff]  ;;  %v190_v31 = vld [vmem:[#allocation3 + $0x8] sm:$0xff]  ;;  %v189_v33 = vld [vmem:[#allocation3] sm:$0xff] }
  0x2f   :  { %283 = vmatpush.msra.mxu1 %v216_v12  ;;  %v206_v32 = vld [vmem:[#allocation3 + $0x88] sm:$0xff]  ;;  %v205_v34 = vld [vmem:[#allocation3 + $0x80] sm:$0xff]  ;;  %v222_v35 = vld [vmem:[%s4162_s13] sm:$0xff]  ;;  %v3419_v5 = vpop.eup %3418 }
  0x30   :  { %261 = vmatpush.msra.mxu0 %v199_v13  ;;  %v224_v36 = vsub.f32 1.0, %v222_v35  ;;  %243 = vperm.xlu2 %3413, %v222_v35   ;;  %v223_v37 = vld [vmem:[%s4162_s13 + $0x8] sm:$0xff]  ;;  %v3414_v45 = vld [vmem:[%s4143_s6 + $0x1] ss:$0 sm:$0xff]  ;;  %v3415_v46 = vld [vmem:[%s4143_s6] ss:$0 sm:$0xff]  ;;  %vm315_vm4 = vweird.f32 %v3419_v5 }
  0x31   :  { %284 = vmatpush.msra.mxu1 %v215_v14  ;;  %v225_v38 = vsub.f32 1.0, %v223_v37  ;;  %v221_v51 = vld [vmem:[%s4142_s5] sm:$0xff]  ;;  %v311_v6 = vmul.f32 128.0, %v3419_v5  ;;  %v3255_v39 = vld [vmem:[#allocation8 + $0x7c] sm:$0xf] }
  0x32   :  { %262 = vmatpush.msra.mxu0 %v198_v15  ;;  %229 = vperm.xlu1 %3412, %v224_v36   ;;  %v2641_v4 = vld [vmem:[#allocation8 + $0x3c] sm:$0xf0] }
  0x33   :  { %179 = vperm.xlu0 %3411, %v171_v10   ;;  %285 = vmatpush.msra.mxu1 %v214_v16  ;;  %v312_v7 = vsub.f32 1.0, %v311_v6  ;;  %v3248_v6 = vld [vmem:[#allocation8 + $0x40] sm:$0xf0] }
  0x34   :  { %263 = vmatpush.msra.mxu0 %v197_v17 }
  0x35   :  { %286 = vmatpush.msra.mxu1 %v213_v18  ;;  %v313_v8 = vmul.f32 %v3419_v5, %v312_v7 }
  0x36   :  { %264 = vmatpush.msra.mxu0 %v196_v19  ;;  %v2699_v19 = vld [vmem:[#allocation8 + $0xa8] sm:$0xf] }
  0x37   :  { %287 = vmatpush.msra.mxu1 %v212_v20  ;;  %v314_v9 = vadd.f32 %v3419_v5, %v313_v8  ;;  %v3262_v20 = vld [vmem:[#allocation8 + $0xb0] sm:$0xf0] }
  0x38   :  { %265 = vmatpush.msra.mxu0 %v195_v21  ;;  %248 = vperm.xlu2 %3413, %v223_v37   ;;  %v3261_v21 = vld [vmem:[#allocation8 + $0xac] sm:$0xf]  ;;  %v2675_v37 = vld [vmem:[#allocation8 + $0x78] sm:$0xf] }
  0x39   :  { %288 = vmatpush.msra.mxu1 %v211_v22  ;;  %v3872_v10 = vsel %vm315_vm4, %v3419_v5, %v314_v9  ;;  %v2700_v22 = vor.u32 %v3262_v20, %v2699_v19  ;;  %v2647_v5 = vld [vmem:[#allocation8 + $0x38] sm:$0xf] }
  0x3a   :  { %266 = vmatpush.msra.mxu0 %v194_v23  ;;  %234 = vperm.xlu1 %3412, %v225_v38   ;;  %v2701_v23 = vld [vmem:[#allocation8 + $0xb4] sm:$0xf0]  ;;  %v3256_v38 = vld [vmem:[#allocation8 + $0x80] sm:$0xf0]  ;;  %v2648_v8 = vor.u32 %v3248_v6, %v2647_v5 }
  0x3b   :  { %289 = vmatpush.msra.mxu1 %v210_v24  ;;  %v2707_v24 = vld [vmem:[#allocation8 + $0xb0] sm:$0xf]  ;;  %533 = vmatpush.bf16.msra.mxu2 %v2700_v22  ;;  %v2627_v9 = vld [vmem:[#allocation8 + $0x18] sm:$0xf]  ;;  %v3241_v22 = vld [vmem:[#allocation8 + $0x8] sm:$0xf0] }
  0x3c   :  { %267 = vmatpush.msra.mxu0 %v193_v25  ;;  %v3263_v25 = vld [vmem:[#allocation8 + $0xb8] sm:$0xf0] }
  0x3d   :  { %290 = vmatpush.msra.mxu1 %v209_v26  ;;  %v2704_v26 = vor.u32 %v3261_v21, %v2701_v23  ;;  %v2615_v21 = vld [vmem:[#allocation8] sm:$0xf]  ;;  %v3240_v23 = vld [vmem:[#allocation8 + $0x4] sm:$0xf] }
  0x3e   :  { %268 = vmatpush.msra.mxu0 %v192_v27  ;;  %v2708_v27 = vor.u32 %v3263_v25, %v2707_v24  ;;  %v2616_v25 = vor.u32 %v3241_v22, %v2615_v21 }
  0x3f   :  { %291 = vmatpush.msra.mxu1 %v208_v28  ;;  %547 = vmatpush.bf16.msra.mxu3 %v2704_v26  ;;  %v2687_v28 = vld [vmem:[#allocation8 + $0x90] sm:$0xf] }
  0x40   :  { %269 = vmatpush.msra.mxu0 %v191_v29  ;;  %v3259_v29 = vld [vmem:[#allocation8 + $0x98] sm:$0xf0]  ;;  %v2617_v26 = vld [vmem:[#allocation8 + $0xc] sm:$0xf0] }
  0x41   :  { %292 = vmatpush.msra.mxu1 %v207_v30  ;;  %v3258_v30 = vld [vmem:[#allocation8 + $0x94] sm:$0xf] }
  0x42   :  { %270 = vmatpush.msra.mxu0 %v190_v31  ;;  %v2688_v31 = vor.u32 %v3259_v29, %v2687_v28  ;;  %v3242_v28 = vld [vmem:[#allocation8 + $0x10] sm:$0xf0] }
  0x43   :  { %293 = vmatpush.msra.mxu1 %v206_v32  ;;  %v2689_v32 = vld [vmem:[#allocation8 + $0x9c] sm:$0xf0] }
  0x44   :  { %271 = vmatpush.msra.mxu0 %v189_v33  ;;  %v2695_v33 = vld [vmem:[#allocation8 + $0x98] sm:$0xf]  ;;  %v2692_v35 = vor.u32 %v3258_v30, %v2689_v32  ;;  %534 = vmatpush.bf16.msra.mxu2 %v2688_v31  ;;  %v2620_v30 = vor.u32 %v3240_v23, %v2617_v26  ;;  %v359_v26 = vld [vmem:[%s4163_s11] sm:$0x3] }
  0x45   :  { %294 = vmatpush.msra.mxu1 %v205_v34  ;;  %v3260_v34 = vld [vmem:[#allocation8 + $0xa0] sm:$0xf0] }
  0x46   :  { %561 = vmatpush.bf16.msrb.mxu0 %v2708_v27  ;;  %v2696_v36 = vor.u32 %v3260_v34, %v2695_v33  ;;  %548 = vmatpush.bf16.msra.mxu3 %v2692_v35  ;;  %v2623_v27 = vld [vmem:[#allocation8 + $0x8] sm:$0xf] }
  0x47   :  { %v2624_v31 = vor.u32 %v3242_v28, %v2623_v27  ;;  %v360_v27 = vsub.f32 1.0, %v359_v26 }
  0x49   :  { %v361_v28 = vmul.f32 -10000.0, %v360_v27 }
  0x4a   :  { %562 = vmatpush.bf16.msrb.mxu0 %v2696_v36 }
  0x8a   :  { %v244_v47 = vpop.permute.xlu2 %243 }
  0x8b   :  { %v252_v49 = vmul.f32 %v3414_v45, %v244_v47  ;;  %v3253_v47 = vld [vmem:[#allocation8 + $0x68] sm:$0xf0] }
  0x92   :  { %v249_v57 = vpop.permute.xlu2 %248 }
  0x93   :  { %v253_v60 = vmul.f32 %v3414_v45, %v249_v57  ;;  %v3249_v57 = vld [vmem:[#allocation8 + $0x4c] sm:$0xf] }
  0x9d   :  { %v177_v42 = vpop.permute.xlu0 %176 }
  0x9e   :  { %vm181_vm0 = vcmp.eq.s32.totalorder %v177_v42, %v173_v40  ;;  %vm182_vm1 = vcmp.eq.s32.totalorder %v177_v42, %v174_v41  ;;  %v2683_v42 = vld [vmem:[#allocation8 + $0x80] sm:$0xf] }
  0x9f   :  { %2609 = vmatmul.msk.f32.vlgmr.msra.gmra.mxu0 %vm181_vm0, %v3712_v43  ;;  %2611 = vmatmul.msk.f32.vlgmr.msra.gmra.mxu1 %vm182_vm1, %v3712_v43 }
  0xa4   :  { %v230_v48 = vpop.permute.xlu1 %229 }
  0xa5   :  { %v180_v44 = vpop.permute.xlu0 %179  ;;  %v238_v50 = vmul.f32 %v3415_v46, %v230_v48  ;;  %v3252_v48 = vld [vmem:[#allocation8 + $0x64] sm:$0xf] }
  0xa6   :  { %vm183_vm2 = vcmp.eq.s32.totalorder %v180_v44, %v173_v40  ;;  %vm184_vm3 = vcmp.eq.s32.totalorder %v180_v44, %v174_v41  ;;  %v2676_v40 = vor.u32 %v3256_v38, %v2675_v37  ;;  %v2677_v41 = vld [vmem:[#allocation8 + $0x84] sm:$0xf0] }
  0xa7   :  { %2610 = vmatmul.msk.f32.gmra.mxu0 %vm183_vm2, %v3712_v43  ;;  %2612 = vmatmul.msk.f32.gmra.mxu1 %vm184_vm3, %v3712_v43  ;;  %v254_v54 = vadd.f32 %v252_v49, %v238_v50  ;;  %v3257_v43 = vld [vmem:[#allocation8 + $0x88] sm:$0xf0]  ;;  %v2680_v44 = vor.u32 %v3255_v39, %v2677_v41  ;;  %v2665_v50 = vld [vmem:[#allocation8 + $0x6c] sm:$0xf0] }
  0xa8   :  { %v2684_v45 = vor.u32 %v3257_v43, %v2683_v42  ;;  %535 = vmatpush.bf16.msra.mxu2 %v2676_v40 }
  0xa9   :  { %549 = vmatpush.bf16.msra.mxu3 %v2680_v44 }
  0xaa   :  { %563 = vmatpush.bf16.msrb.mxu0 %v2684_v45 }
  0xac   :  { %v235_v58 = vpop.permute.xlu1 %234 }
  0xad   :  { %v239_v61 = vmul.f32 %v3415_v46, %v235_v58  ;;  %v2663_v46 = vld [vmem:[#allocation8 + $0x60] sm:$0xf] }
  0xae   :  { %v2664_v49 = vor.u32 %v3253_v47, %v2663_v46 }
  0xaf   :  { %v255_v1 = vadd.f32 %v253_v60, %v239_v61  ;;  %v2659_v60 = vld [vmem:[#allocation8 + $0x50] sm:$0xf]  ;;  %v3251_v61 = vld [vmem:[#allocation8 + $0x58] sm:$0xf0] }
  0xb0   :  { %536 = vmatpush.bf16.msra.mxu2 %v2664_v49  ;;  %v3416_v49 = vld [vmem:[%s4144_s7] ss:$0 sm:$0xff] }
 0x11c   :  { %v273_v52 = vpop.f32.mrf.mxu0  ;;  %v296_v53 = vpop.f32.mrf.mxu1 }
 0x11d   :  { %v274_v55 = vadd.f32 %v273_v52, %v221_v51  ;;  %v3254_v52 = vld [vmem:[#allocation8 + $0x70] sm:$0xf0] }
 0x11f   :  { %v297_v56 = vadd.f32 %v296_v53, %v274_v55  ;;  %v2668_v53 = vor.u32 %v3252_v48, %v2665_v50  ;;  %v2651_v55 = vld [vmem:[#allocation8 + $0x48] sm:$0xf] }
 0x121   :  { %v302_v59 = vadd.f32 %v297_v56, %v254_v54  ;;  %550 = vmatpush.bf16.msra.mxu3 %v2668_v53  ;;  %v3250_v56 = vld [vmem:[#allocation8 + $0x50] sm:$0xf0] }
 0x122   :  { %v2652_v58 = vor.u32 %v3250_v56, %v2651_v55 }
 0x123   :  { %306 = vadd.xlane.f32.xlu0 %v302_v59 }
 0x124   :  { %v276_v62 = vpop.f32.mrf.mxu0  ;;  %v299_v0 = vpop.f32.mrf.mxu1  ;;  %537 = vmatpush.bf16.msra.mxu2 %v2652_v58 }
 0x125   :  { %v277_v63 = vadd.f32 %v276_v62, %v221_v51  ;;  %v2671_v51 = vld [vmem:[#allocation8 + $0x68] sm:$0xf] }
 0x126   :  { %v2672_v54 = vor.u32 %v3254_v52, %v2671_v51 }
 0x127   :  { %v300_v2 = vadd.f32 %v299_v0, %v277_v63  ;;  %v2660_v63 = vor.u32 %v3251_v61, %v2659_v60  ;;  %v2639_v0 = vld [vmem:[#allocation8 + $0x30] sm:$0xf] }
 0x128   :  { %564 = vmatpush.bf16.msrb.mxu0 %v2672_v54  ;;  %v3417_v54 = vld [vmem:[%s4144_s7 + $0x1] ss:$0 sm:$0xff] }
 0x129   :  { %v303_v3 = vadd.f32 %v300_v2, %v255_v1  ;;  %v3247_v1 = vld [vmem:[#allocation8 + $0x38] sm:$0xf0]  ;;  %v3246_v2 = vld [vmem:[#allocation8 + $0x34] sm:$0xf] }
 0x12a   :  { %v2644_v7 = vor.u32 %v3246_v2, %v2641_v4 }
 0x12b   :  { %308 = vadd.xlane.f32.xlu1 %v303_v3 }
 0x12c   :  { %565 = vmatpush.bf16.msrb.mxu0 %v2660_v63 }
 0x130   :  { %566 = vmatpush.bf16.msrb.mxu0 %v2648_v8 }
 0x196   :  { %v307_v11 = vpop.xlane.xlu0 %306 }
 0x197   :  { %v317_v12 = vmul.f32 %v3872_v10, %v307_v11  ;;  %v3244_v11 = vld [vmem:[#allocation8 + $0x20] sm:$0xf0] }
 0x199   :  { %v3875_v13 = vsub.f32 %v302_v59, %v317_v12  ;;  %v2653_v59 = vld [vmem:[#allocation8 + $0x54] sm:$0xf0]  ;;  %v3243_v12 = vld [vmem:[#allocation8 + $0x1c] sm:$0xf] }
 0x19a   :  { %v2656_v62 = vor.u32 %v3249_v57, %v2653_v59 }
 0x19b   :  { %v321_v14 = vmul.f32 %v3875_v13, %v3875_v13 }
 0x19c   :  { %551 = vmatpush.bf16.msra.mxu3 %v2656_v62 }
 0x19d   :  { %323 = vadd.xlane.f32.xlu2 %v321_v14  ;;  %v2628_v14 = vor.u32 %v3244_v11, %v2627_v9 }
 0x19e   :  { %v309_v15 = vpop.xlane.xlu1 %308 }
 0x19f   :  { %v318_v16 = vmul.f32 %v3872_v10, %v309_v15  ;;  %v2629_v15 = vld [vmem:[#allocation8 + $0x24] sm:$0xf0] }
 0x1a0   :  { %552 = vmatpush.bf16.msra.mxu3 %v2644_v7  ;;  %v2632_v19 = vor.u32 %v3243_v12, %v2629_v15 }
 0x1a1   :  { %v3880_v17 = vsub.f32 %v303_v3, %v318_v16  ;;  %v2640_v3 = vor.u32 %v3247_v1, %v2639_v0  ;;  %v2635_v16 = vld [vmem:[#allocation8 + $0x20] sm:$0xf] }
 0x1a3   :  { %v322_v18 = vmul.f32 %v3880_v17, %v3880_v17  ;;  %538 = vmatpush.bf16.msra.mxu2 %v2640_v3 }
 0x1a4   :  { %553 = vmatpush.bf16.msra.mxu3 %v2632_v19 }
 0x1a5   :  { %325 = vadd.xlane.f32.xlu2 %v322_v18  ;;  %v3245_v18 = vld [vmem:[#allocation8 + $0x28] sm:$0xf0] }
 0x1a6   :  { %v2636_v20 = vor.u32 %v3245_v18, %v2635_v16 }
 0x1a7   :  { %539 = vmatpush.bf16.msra.mxu2 %v2628_v14 }
 0x1a8   :  { %567 = vmatpush.bf16.msrb.mxu0 %v2636_v20  ;;  %554 = vmatpush.bf16.msra.mxu3 %v2620_v30 }
 0x1ab   :  { %540 = vmatpush.bf16.msra.mxu2 %v2616_v25 }
 0x1ac   :  { %568 = vmatpush.bf16.msrb.mxu0 %v2624_v31 }
 0x210   :  { %v324_v24 = vpop.xlane.xlu2 %323 }
 0x211   :  { %v327_v29 = vmul.f32 %v324_v24, %v3872_v10 }
 0x213   :  { %v329_v32 = vadd.f32 1e-12, %v327_v29  ;;  %v3920_v29 = vperm.slane %v361_v28, 0 }
 0x215   :  { %3420 = vrsqrt.f32 %v329_v32  ;;  %vm337_vm6 = vweird.f32 %v329_v32 }
 0x218   :  { %v326_v33 = vpop.xlane.xlu2 %325 }
 0x219   :  { %v328_v34 = vmul.f32 %v326_v33, %v3872_v10  ;;  %v363_v33 = vrot.slane %v361_v28, 1 }
 0x21b   :  { %v3421_v35 = vpop.eup %3420  ;;  %v330_v36 = vadd.f32 1e-12, %v328_v34 }
 0x21c   :  { %v332_v37 = vmul.f32 %v3421_v35, %v329_v32  ;;  %vm338_vm5 = vweird.f32 %v3421_v35 }
 0x21d   :  { %3422 = vrsqrt.f32 %v330_v36  ;;  %vm339_vm7 = vmor %vm337_vm6, %vm338_vm5  ;;  %vm347_vm9 = vweird.f32 %v330_v36 }
 0x21e   :  { %v333_v38 = vmul.f32 %v3421_v35, %v332_v37 }
 0x220   :  { %v334_v39 = vmul.f32 0.5, %v333_v38 }
 0x222   :  { %v335_v40 = vsub.f32 1.5, %v334_v39 }
 0x223   :  { %v3423_v41 = vpop.eup %3422 }
 0x224   :  { %v336_v42 = vmul.f32 %v3421_v35, %v335_v40  ;;  %v342_v43 = vmul.f32 %v3423_v41, %v330_v36  ;;  %vm348_vm8 = vweird.f32 %v3423_v41 }
 0x225   :  { %vm349_vm10 = vmor %vm347_vm9, %vm348_vm8 }
 0x226   :  { %v343_v44 = vmul.f32 %v3423_v41, %v342_v43  ;;  %v340_v45 = vsel %vm339_vm7, %v3421_v35, %v336_v42  ;;  %v3924_v35 = vperm.slane %v363_v33, 0 }
 0x227   :  { %v351_v48 = vmul.f32 %v340_v45, %v3875_v13 }
 0x228   :  { %v344_v46 = vmul.f32 0.5, %v343_v44 }
 0x229   :  { %v354_v53 = vmul.f32 %v3416_v49, %v351_v48 }
 0x22a   :  { %v345_v47 = vsub.f32 1.5, %v344_v46 }
 0x22b   :  { %v3894_v56 = vadd.f32 %v3417_v54, %v354_v53 }
 0x22c   :  { %v346_v50 = vmul.f32 %v3423_v41, %v345_v47 }
 0x22e   :  { %v350_v51 = vsel %vm349_vm10, %v3423_v41, %v346_v50 }
 0x22f   :  { %v352_v52 = vmul.f32 %v350_v51, %v3880_v17  ;;  %v397_v17 = vld [vmem:[%s4146_s9] sm:$0x7] }
 0x230   :  { %v401_v58 = vperm.slane %v397_v17, 2  ;;  %v400_v61 = vperm.slane %v397_v17, 1  ;;  %v399_v3 = vperm.slane %v397_v17, 0 }
 0x231   :  { %v355_v55 = vmul.f32 %v3416_v49, %v352_v52 }
 0x233   :  { %v3896_v57 = vadd.f32 %v3417_v54, %v355_v55 }
 0x235   :  { %v364_v13 = vpack.c.bf16 %v3896_v57, %v3894_v56 }
 0x237   :  { %541 = vmatmul.bf16.vlgmr.msra.gmra.mxu2 %v364_v13  ;;  %555 = vmatmul.bf16.vlgmr.msra.gmra.mxu3 %v364_v13 }
 0x238   :  { %569 = vmatmul.bf16.vlgmr.msrb.gmra.mxu0 %v364_v13 }
 0x2b5   :  { %v570_v59 = vpop.f32.mrf.mxu0 }
 0x2b6   :  { %v571_v60 = vadd.f32 %v570_v59, %v401_v58 }
 0x2b8   :  { %v3903_v62 = vpack.c.bf16 %v571_v60, %v571_v60 }
 0x2ba   :  { %v556_v63 = vpop.f32.mrf.mxu3  ;;  %v654_v0 = vsel %vm652_vm11, %v3903_v62, 0  ;;  %v542_v2 = vpop.f32.mrf.mxu2 }
 0x2bb   :  { %v557_v1 = vadd.f32 %v556_v63, %v400_v61  ;;  %663 = vmatpush.bf16.msrb.mxu3 %v654_v0  ;;  %v543_v11 = vadd.f32 %v542_v2, %v399_v3 }
 0x2bd   :  { %v577_v4 = vpack.c.bf16 %v557_v1, %v557_v1  ;;  %v572_v5 = vpop.f32.mrf.mxu0  ;;  %v575_v18 = vpack.c.bf16 %v543_v11, %v543_v11 }
 0x2be   :  { %v573_v6 = vadd.f32 %v572_v5, %v401_v58  ;;  %v773_v58 = vunpack.c.l.b16 %v3903_v62 }
 0x2bf   :  { %v590_v7 = vsel %vm585_vm12, %v577_v4, 0  ;;  %v696_v8 = vunpack.c.l.b16 %v577_v4  ;;  %v691_v13 = vunpack.c.l.b16 %v575_v18 }
 0x2c0   :  { %v3908_v9 = vpack.c.bf16 %v573_v6, %v573_v6  ;;  %599 = vmatpush.bf16.xpose.msrb.mxu1 %v590_v7  ;;  %v774_v59 = vpack.c.b16 %v773_v58, %v773_v58  ;;  %v3264_v58 = vld [vmem:[#allocation9] sm:$0xff] }
 0x2c1   :  { %v697_v12 = vpack.c.b16 %v696_v8, %v696_v8  ;;  %v692_v17 = vpack.c.b16 %v691_v13, %v691_v13  ;;  %v3266_v13 = vld [vmem:[#allocation9 + $0x10] sm:$0xff] }
 0x2c2   :  { %v673_v14 = vsel %vm652_vm11, %v3908_v9, 0  ;;  %v558_v15 = vpop.f32.mrf.mxu3  ;;  %v544_v20 = vpop.f32.mrf.mxu2 }
 0x2c3   :  { %v559_v16 = vadd.f32 %v558_v15, %v400_v61  ;;  %698 = vrot.lane.b32.xlu2 %v697_v12, %s3702_s24  ;;  %v545_v22 = vadd.f32 %v544_v20, %v399_v3 }
 0x2c5   :  { %v578_v19 = vpack.c.bf16 %v559_v16, %v559_v16  ;;  %v576_v23 = vpack.c.bf16 %v545_v22, %v545_v22 }
 0x2c7   :  { %2709 = vmatmul.msk.bf16.vlgmr.msrb.gmra.mxu1 %vm585_vm12, %v575_v18  ;;  %v609_v21 = vsel %vm585_vm12, %v578_v19, 0  ;;  %v725_v39 = vunpack.c.l.b16 %v578_v19  ;;  %v720_v42 = vunpack.c.l.b16 %v576_v23 }
 0x2c8   :  { %682 = vmatpush.bf16.msra.mxu1 %v673_v14  ;;  %618 = vmatpush.bf16.xpose.msrb.mxu2 %v609_v21 }
 0x2c9   :  { %v726_v41 = vpack.c.b16 %v725_v39, %v725_v39  ;;  %v721_v43 = vpack.c.b16 %v720_v42, %v720_v42 }
 0x2cf   :  { %2710 = vmatmul.msk.bf16.vlgmr.msrb.gmra.mxu2 %vm585_vm12, %v576_v23 }
 0x31d   :  { %v699_v24 = vpop.permute.xlu2 %698 }
 0x31e   :  { %v704_v25 = vsel %vm585_vm12, %v699_v24, 0 }
 0x31f   :  { %713 = vmatpush.bf16.xpose.msra.mxu2 %v704_v25 }
 0x344   :  { %v601_v30 = vpop.f32.mrf.mxu1 }
 0x345   :  { %v602_v31 = vadd.f32 %v601_v30, %v3920_v29 }
 0x347   :  { %v625_v32 = vsel %vm624_vm13, %v602_v31, -inf }
 0x348   :  { %626 = vmax.xlane.f32.xlu0 %v625_v32 }
 0x34c   :  { %v603_v34 = vpop.f32.mrf.mxu1 }
 0x352   :  { %v620_v36 = vpop.f32.mrf.mxu2 }
 0x353   :  { %v621_v37 = vadd.f32 %v620_v36, %v3924_v35  ;;  %v797_v36 = vunpack.c.l.b16 %v3908_v9  ;;  %v3271_v9 = vld [vmem:[#allocation9 + $0x38] sm:$0xff] }
 0x354   :  { %900 = vmatpush.bf16.msrb.mxu2 %v3271_v9  ;;  %v2777_v9 = vld [vmem:[#allocation11 + $0x38] sm:$0xf0] }
 0x355   :  { %v628_v38 = vsel %vm624_vm13, %v621_v37, -inf }
 0x356   :  { %629 = vmax.xlane.f32.xlu2 %v628_v38 }
 0x35a   :  { %v622_v40 = vpop.f32.mrf.mxu2 }
 0x35c   :  { %727 = vrot.lane.b32.xlu0 %v726_v41, %s3702_s24 }
 0x364   :  { %722 = vrot.lane.b32.xlu0 %v721_v43, %s3702_s24 }
 0x3bb   :  { %v627_v44 = vpop.xlane.xlu0 %626 }
 0x3bc   :  { %v631_v45 = vsub.f32 %v602_v31, %v627_v44 }
 0x3be   :  { %v633_v46 = vmul.f32 1.442695, %v631_v45 }
 0x3c0   :  { %3424 = vpow2.f32 %v633_v46 }
 0x3c6   :  { %v3425_v47 = vpop.eup %3424 }
 0x3c7   :  { %v637_v48 = vsel %vm624_vm13, %v3425_v47, 0.0 }
 0x3c8   :  { %638 = vadd.xlane.f32.xlu1 %v637_v48  ;;  %v3270_v48 = vld [vmem:[#allocation9 + $0x30] sm:$0xff] }
 0x3c9   :  { %v630_v49 = vpop.xlane.xlu2 %629  ;;  %901 = vmatpush.bf16.msrb.mxu2 %v3270_v48 }
 0x3ca   :  { %v632_v50 = vsub.f32 %v621_v37, %v630_v49  ;;  %v798_v37 = vpack.c.b16 %v797_v36, %v797_v36  ;;  %v3269_v49 = vld [vmem:[#allocation9 + $0x28] sm:$0xff]  ;;  %v2793_v36 = vld [vmem:[#allocation11 + $0x58] sm:$0xf0] }
 0x3cc   :  { %v635_v51 = vmul.f32 1.442695, %v632_v50 }
 0x3cd   :  { %902 = vmatpush.bf16.msrb.mxu2 %v3269_v49  ;;  %v2767_v49 = vld [vmem:[#allocation11 + $0x20] sm:$0xf] }
 0x3ce   :  { %3426 = vpow2.f32 %v635_v51  ;;  %v728_v52 = vpop.permute.xlu0 %727  ;;  %v3268_v51 = vld [vmem:[#allocation9 + $0x20] sm:$0xff] }
 0x3cf   :  { %v733_v53 = vsel %vm585_vm12, %v728_v52, 0 }
 0x3d0   :  { %742 = vmatpush.bf16.xpose.msra.mxu3 %v733_v53 }
 0x3d1   :  { %903 = vmatpush.bf16.msrb.mxu2 %v3268_v51  ;;  %v3276_v51 = vld [vmem:[#allocation11 + $0x24] sm:$0xf] }
 0x3d4   :  { %v3427_v54 = vpop.eup %3426 }
 0x3d5   :  { %v640_v55 = vsel %vm624_vm13, %v3427_v54, 0.0 }
 0x3d6   :  { %641 = vadd.xlane.f32.xlu2 %v640_v55  ;;  %v723_v7 = vpop.permute.xlu0 %722  ;;  %v3267_v55 = vld [vmem:[#allocation9 + $0x18] sm:$0xff] }
 0x3d7   :  { %904 = vmatpush.bf16.msrb.mxu2 %v3267_v55  ;;  %v2759_v55 = vld [vmem:[#allocation11 + $0x10] sm:$0xf] }
 0x3db   :  { %905 = vmatpush.bf16.msrb.mxu2 %v3266_v13  ;;  %v3275_v13 = vld [vmem:[#allocation11 + $0x14] sm:$0xf0] }
 0x3e1   :  { %693 = vrot.lane.b32.xlu1 %v692_v17, %s3702_s24  ;;  %v3265_v17 = vld [vmem:[#allocation9 + $0x8] sm:$0xff] }
 0x3e2   :  { %906 = vmatpush.bf16.msrb.mxu2 %v3265_v17  ;;  %v3274_v17 = vld [vmem:[#allocation11 + $0x14] sm:$0xf] }
 0x3e6   :  { %907 = vmatpush.bf16.msrb.mxu2 %v3264_v58  ;;  %v2760_v58 = vor.u32 %v3275_v13, %v2759_v55  ;;  %v3288_v55 = vld [vmem:[#allocation12] sm:$0xff] }
 0x3ee   :  { %775 = vrot.lane.b32.xlu2 %v774_v59, %s3702_s24 }
 0x43b   :  { %v639_v60 = vpop.xlane.xlu1 %638 }
 0x43c   :  { %3428 = vrcp.f32 %v639_v60 }
 0x442   :  { %v3429_v61 = vpop.eup %3428 }
 0x443   :  { %v645_v63 = vmul.f32 %v3429_v61, %v3425_v47 }
 0x445   :  { %v647_v0 = vpack.c.bf16 %v645_v63, %v645_v63 }
 0x447   :  { %2711 = vmatmul.msk.bf16.vlgmr.msrb.gmra.mxu3 %vm624_vm13, %v647_v0 }
 0x449   :  { %v642_v1 = vpop.xlane.xlu2 %641 }
 0x44a   :  { %3430 = vrcp.f32 %v642_v1  ;;  %v3961_v1 = vld [vmem:[%s4151_s14] sm:$0x3f] }
 0x450   :  { %v3431_v2 = vpop.eup %3430 }
 0x451   :  { %v646_v3 = vmul.f32 %v3431_v2, %v3427_v54  ;;  %v776_v4 = vpop.permute.xlu2 %775  ;;  %v851_v2 = vperm.slane %v3961_v1, 0 }
 0x452   :  { %v781_v5 = vsel %vm652_vm11, %v776_v4, 0 }
 0x453   :  { %v648_v6 = vpack.c.bf16 %v646_v3, %v646_v3  ;;  %790 = vmatpush.bf16.msra.mxu0 %v781_v5  ;;  %v694_v62 = vpop.permute.xlu1 %693 }
 0x454   :  { %2713 = vmatmul.msk.bf16.vlgmr.msra.gmra.mxu2 %vm585_vm12, %v694_v62 }
 0x455   :  { %2712 = vmatmul.msk.bf16.vlgmr.msra.gmra.mxu1 %vm624_vm13, %v648_v6 }
 0x457   :  { %2714 = vmatmul.msk.bf16.vlgmr.msra.gmra.mxu3 %vm585_vm12, %v723_v7 }
 0x4ca   :  { %v665_v8 = vpop.f32.mrf.mxu3 }
 0x4cb   :  { %688 = vst.msk [vmem:[#allocation2] sm:$0xff] %vm585_vm12, %v665_v8 }
 0x4d2   :  { %v667_v11 = vpop.f32.mrf.mxu3  ;;  %v684_v12 = vpop.f32.mrf.mxu1 }
 0x4d3   :  { %689 = vst.msk [vmem:[#allocation2 + $0x8] sm:$0xff] %vm585_vm12, %v684_v12 }
 0x4d7   :  { %v715_v14 = vpop.f32.mrf.mxu2 }
 0x4d8   :  { %v716_v15 = vadd.f32 %v715_v14, %v3920_v29 }
 0x4da   :  { %v686_v16 = vpop.f32.mrf.mxu1  ;;  %v744_v18 = vpop.f32.mrf.mxu3  ;;  %v748_v19 = vsel %vm624_vm13, %v716_v15, -inf }
 0x4db   :  { %v745_v20 = vadd.f32 %v744_v18, %v3924_v35  ;;  %749 = vmax.xlane.f32.xlu1 %v748_v19  ;;  %v3287_v19 = vld [vmem:[#allocation11 + $0x74] sm:$0xf0] }
 0x4dd   :  { %v751_v21 = vsel %vm624_vm13, %v745_v20, -inf }
 0x4de   :  { %752 = vmax.xlane.f32.xlu0 %v751_v21 }
 0x4df   :  { %v717_v22 = vpop.f32.mrf.mxu2 }
 0x4e0   :  { %v2809_v22 = vld [vmem:[#allocation11 + $0x78] sm:$0xf0] }
 0x4e2   :  { %v746_v23 = vpop.f32.mrf.mxu3 }
 0x54e   :  { %v750_v24 = vpop.xlane.xlu1 %749 }
 0x54f   :  { %v754_v25 = vsub.f32 %v716_v15, %v750_v24  ;;  %v2799_v24 = vld [vmem:[#allocation11 + $0x60] sm:$0xf] }
 0x551   :  { %v756_v26 = vmul.f32 1.442695, %v754_v25  ;;  %v753_v27 = vpop.xlane.xlu0 %752  ;;  %v3285_v25 = vld [vmem:[#allocation11 + $0x64] sm:$0xf0] }
 0x552   :  { %v755_v28 = vsub.f32 %v745_v20, %v753_v27  ;;  %v3286_v20 = vld [vmem:[#allocation11 + $0x74] sm:$0xf]  ;;  %v2800_v27 = vor.u32 %v3285_v25, %v2799_v24 }
 0x553   :  { %3432 = vpow2.f32 %v756_v26  ;;  %v2812_v23 = vor.u32 %v3286_v20, %v2809_v22  ;;  %v3284_v26 = vld [vmem:[#allocation11 + $0x64] sm:$0xf] }
 0x554   :  { %v758_v30 = vmul.f32 1.442695, %v755_v28  ;;  %v2801_v28 = vld [vmem:[#allocation11 + $0x68] sm:$0xf0] }
 0x555   :  { %1079 = vmatpush.bf16.msrb.mxu0 %v2812_v23 }
 0x556   :  { %3434 = vpow2.f32 %v758_v30  ;;  %v2804_v30 = vor.u32 %v3284_v26, %v2801_v28 }
 0x559   :  { %v3433_v31 = vpop.eup %3432  ;;  %1080 = vmatpush.bf16.msrb.mxu0 %v2804_v30 }
 0x55a   :  { %v760_v32 = vsel %vm624_vm13, %v3433_v31, 0.0 }
 0x55b   :  { %761 = vadd.xlane.f32.xlu1 %v760_v32  ;;  %v3283_v32 = vld [vmem:[#allocation11 + $0x54] sm:$0xf0] }
 0x55c   :  { %v3435_v33 = vpop.eup %3434 }
 0x55d   :  { %v763_v34 = vsel %vm624_vm13, %v3435_v33, 0.0 }
 0x55e   :  { %764 = vadd.xlane.f32.xlu0 %v763_v34 }
 0x574   :  { %799 = vrot.lane.b32.xlu1 %v798_v37, %s3702_s24 }
 0x5ce   :  { %v762_v38 = vpop.xlane.xlu1 %761 }
 0x5cf   :  { %3436 = vrcp.f32 %v762_v38  ;;  %v2783_v38 = vld [vmem:[#allocation11 + $0x40] sm:$0xf] }
 0x5d1   :  { %v765_v42 = vpop.xlane.xlu0 %764 }
 0x5d2   :  { %3438 = vrcp.f32 %v765_v42  ;;  %v2785_v42 = vld [vmem:[#allocation11 + $0x48] sm:$0xf0] }
 0x5d5   :  { %v3437_v39 = vpop.eup %3436 }
 0x5d6   :  { %v768_v40 = vmul.f32 %v3437_v39, %v3433_v31  ;;  %v2791_v31 = vld [vmem:[#allocation11 + $0x50] sm:$0xf]  ;;  %v3281_v39 = vld [vmem:[#allocation11 + $0x44] sm:$0xf0] }
 0x5d7   :  { %v2792_v34 = vor.u32 %v3283_v32, %v2791_v31 }
 0x5d8   :  { %v770_v41 = vpack.c.bf16 %v768_v40, %v768_v40  ;;  %v3439_v43 = vpop.eup %3438  ;;  %v3280_v40 = vld [vmem:[#allocation11 + $0x44] sm:$0xf] }
 0x5d9   :  { %v769_v44 = vmul.f32 %v3439_v43, %v3435_v33  ;;  %v3282_v33 = vld [vmem:[#allocation11 + $0x54] sm:$0xf]  ;;  %v2788_v43 = vor.u32 %v3280_v40, %v2785_v42  ;;  %v3295_v40 = vld [vmem:[#allocation12 + $0x38] sm:$0xff]  ;;  %v3300_v42 = vld [vmem:[#allocation12 + $0x60] sm:$0xff] }
 0x5da   :  { %2715 = vmatmul.msk.bf16.vlgmr.msra.gmra.mxu0 %vm624_vm13, %v770_v41  ;;  %v2796_v37 = vor.u32 %v3282_v33, %v2793_v36  ;;  %v2784_v41 = vor.u32 %v3281_v39, %v2783_v38  ;;  %v959_v33 = vperm.slane %v3961_v1, 2  ;;  %v3302_v39 = vld [vmem:[#allocation12 + $0x70] sm:$0xff] }
 0x5db   :  { %v771_v47 = vpack.c.bf16 %v769_v44, %v769_v44  ;;  %v2775_v44 = vld [vmem:[#allocation11 + $0x30] sm:$0xf] }
 0x5dc   :  { %1081 = vmatpush.bf16.msrb.mxu0 %v2796_v37 }
 0x5e0   :  { %1082 = vmatpush.bf16.msrb.mxu0 %v2788_v43  ;;  %v3293_v43 = vld [vmem:[#allocation12 + $0x28] sm:$0xff] }
 0x5e6   :  { %v800_v45 = vpop.permute.xlu1 %799 }
 0x5e7   :  { %v805_v46 = vsel %vm652_vm11, %v800_v45, 0  ;;  %v3279_v45 = vld [vmem:[#allocation11 + $0x34] sm:$0xf0] }
 0x5e8   :  { %814 = vmatpush.bf16.msrb.mxu1 %v805_v46  ;;  %v3278_v46 = vld [vmem:[#allocation11 + $0x34] sm:$0xf] }
 0x5e9   :  { %v2780_v48 = vor.u32 %v3278_v46, %v2777_v9  ;;  %v3298_v46 = vld [vmem:[#allocation12 + $0x50] sm:$0xff]  ;;  %v3297_v9 = vld [vmem:[#allocation12 + $0x48] sm:$0xff] }
 0x5eb   :  { %2716 = vmatmul.msk.bf16.vlgmr.msrb.gmra.mxu1 %vm624_vm13, %v771_v47  ;;  %v2776_v47 = vor.u32 %v3279_v45, %v2775_v44  ;;  %1083 = vmatpush.bf16.msrb.mxu0 %v2780_v48  ;;  %v3299_v44 = vld [vmem:[#allocation12 + $0x58] sm:$0xff]  ;;  %v3292_v45 = vld [vmem:[#allocation12 + $0x20] sm:$0xff]  ;;  %v979_v48 = vld [vmem:[%s4149_s12] sm:$0x3] }
 0x5ec   :  { %1260 = vmatpush.bf16.msra.mxu1 %v3295_v40 }
 0x657   :  { %v792_v50 = vpop.f32.mrf.mxu0 }
 0x658   :  { %822 = vrot.lane.b32.xlu0 %v792_v50, %s3702_s24  ;;  %v3277_v50 = vld [vmem:[#allocation11 + $0x24] sm:$0xf0] }
 0x65f   :  { %v794_v52 = vpop.f32.mrf.mxu0 }
 0x660   :  { %v2768_v52 = vor.u32 %v3277_v50, %v2767_v49  ;;  %v3290_v49 = vld [vmem:[#allocation12 + $0x10] sm:$0xff]  ;;  %v3296_v50 = vld [vmem:[#allocation12 + $0x40] sm:$0xff] }
 0x668   :  { %v816_v53 = vpop.f32.mrf.mxu1 }
 0x669   :  { %824 = vrot.lane.b32.xlu2 %v816_v53, %s3702_s24  ;;  %v2769_v53 = vld [vmem:[#allocation11 + $0x28] sm:$0xf0] }
 0x670   :  { %v818_v54 = vpop.f32.mrf.mxu1 }
 0x671   :  { %v2772_v54 = vor.u32 %v3276_v51, %v2769_v53  ;;  %v982_v51 = vperm.slane %v979_v48, 1 }
 0x673   :  { %1084 = vmatpush.bf16.msrb.mxu0 %v2772_v54 }
 0x6c3   :  { %v825_v59 = vpop.permute.xlu2 %824 }
 0x6c4   :  { %830 = vst.msk [vmem:[#allocation2 + $0x8] sm:$0xff] %vm828_vm14, %v825_v59  ;;  %v2761_v59 = vld [vmem:[#allocation11 + $0x18] sm:$0xf0] }
 0x6ca   :  { %v823_v60 = vpop.permute.xlu0 %822 }
 0x6cb   :  { %829 = vst.msk [vmem:[#allocation2] sm:$0xff] %vm828_vm14, %v823_v60  ;;  %v833_v63 = vld [vmem:[#allocation2 + $0x8] sm:$0xff]  ;;  %v2751_v60 = vld [vmem:[#allocation11] sm:$0xf] }
 0x6d2   :  { %v832_v61 = vld [vmem:[#allocation2] sm:$0xff] }
 0x6d3   :  { %v834_v0 = vpack.c.bf16 %v833_v63, %v832_v61  ;;  %v3273_v61 = vld [vmem:[#allocation11 + $0x4] sm:$0xf0] }
 0x6d5   :  { %908 = vmatmul.bf16.vlgmr.msrb.gmra.mxu2 %v834_v0  ;;  %v2764_v0 = vor.u32 %v3274_v17, %v2761_v59  ;;  %v981_v17 = vperm.slane %v979_v48, 0 }
 0x6d7   :  { %1085 = vmatpush.bf16.msrb.mxu0 %v2764_v0 }
 0x758   :  { %v909_v3 = vpop.f32.mrf.mxu2 }
 0x759   :  { %v910_v4 = vadd.f32 %v909_v3, %v851_v2  ;;  %v2753_v3 = vld [vmem:[#allocation11 + $0x8] sm:$0xf0] }
 0x75b   :  { %v914_v5 = vadd.f32 %v910_v4, %v3894_v56 }
 0x75d   :  { %916 = vadd.xlane.f32.xlu0 %v914_v5 }
 0x760   :  { %v911_v6 = vpop.f32.mrf.mxu2 }
 0x761   :  { %v912_v62 = vadd.f32 %v911_v6, %v851_v2  ;;  %v3272_v2 = vld [vmem:[#allocation11 + $0x4] sm:$0xf] }
 0x762   :  { %v2756_v6 = vor.u32 %v3272_v2, %v2753_v3 }
 0x763   :  { %v915_v7 = vadd.f32 %v912_v62, %v3896_v57  ;;  %v2807_v57 = vld [vmem:[#allocation11 + $0x70] sm:$0xf] }
 0x764   :  { %v2808_v21 = vor.u32 %v3287_v19, %v2807_v57  ;;  %1086 = vmatpush.bf16.msrb.mxu0 %v2756_v6 }
 0x765   :  { %918 = vadd.xlane.f32.xlu1 %v915_v7 }
 0x766   :  { %1065 = vmatpush.bf16.msrb.mxu3 %v2808_v21 }
 0x76a   :  { %1066 = vmatpush.bf16.msrb.mxu3 %v2800_v27  ;;  %v956_v27 = vperm.slane %v3961_v1, 1 }
 0x76e   :  { %1067 = vmatpush.bf16.msrb.mxu3 %v2792_v34 }
 0x772   :  { %1068 = vmatpush.bf16.msrb.mxu3 %v2784_v41  ;;  %v3294_v41 = vld [vmem:[#allocation12 + $0x30] sm:$0xff] }
 0x773   :  { %1261 = vmatpush.bf16.msra.mxu1 %v3294_v41 }
 0x776   :  { %1069 = vmatpush.bf16.msrb.mxu3 %v2776_v47  ;;  %v3291_v47 = vld [vmem:[#allocation12 + $0x18] sm:$0xff] }
 0x777   :  { %1262 = vmatpush.bf16.msra.mxu1 %v3293_v43 }
 0x77a   :  { %1070 = vmatpush.bf16.msrb.mxu3 %v2768_v52  ;;  %v3289_v52 = vld [vmem:[#allocation12 + $0x8] sm:$0xff] }
 0x77b   :  { %1263 = vmatpush.bf16.msra.mxu1 %v3292_v45 }
 0x77e   :  { %1071 = vmatpush.bf16.msrb.mxu3 %v2760_v58 }
 0x77f   :  { %1264 = vmatpush.bf16.msra.mxu1 %v3291_v47 }
 0x783   :  { %1265 = vmatpush.bf16.msra.mxu1 %v3290_v49 }
 0x787   :  { %1266 = vmatpush.bf16.msra.mxu1 %v3289_v52 }
 0x78b   :  { %1267 = vmatpush.bf16.msra.mxu1 %v3288_v55 }
 0x7d0   :  { %v917_v8 = vpop.xlane.xlu0 %916 }
 0x7d1   :  { %v920_v11 = vmul.f32 %v917_v8, %v3872_v10 }
 0x7d3   :  { %v3967_v12 = vsub.f32 %v914_v5, %v920_v11  ;;  %v2752_v5 = vor.u32 %v3273_v61, %v2751_v60 }
 0x7d5   :  { %v924_v14 = vmul.f32 %v3967_v12, %v3967_v12  ;;  %1072 = vmatpush.bf16.msrb.mxu3 %v2752_v5 }
 0x7d7   :  { %926 = vadd.xlane.f32.xlu2 %v924_v14 }
 0x7d8   :  { %v919_v15 = vpop.xlane.xlu1 %918 }
 0x7d9   :  { %v921_v16 = vmul.f32 %v919_v15, %v3872_v10 }
 0x7db   :  { %v3972_v18 = vsub.f32 %v915_v7, %v921_v16 }
 0x7dd   :  { %v925_v56 = vmul.f32 %v3972_v18, %v3972_v18 }
 0x7df   :  { %928 = vadd.xlane.f32.xlu0 %v925_v56 }
 0x84a   :  { %v927_v63 = vpop.xlane.xlu2 %926 }
 0x84b   :  { %v930_v4 = vmul.f32 %v927_v63, %v3872_v10 }
 0x84d   :  { %v932_v62 = vadd.f32 1e-12, %v930_v4 }
 0x84f   :  { %3440 = vrsqrt.f32 %v932_v62  ;;  %vm940_vm0 = vweird.f32 %v932_v62 }
 0x852   :  { %v929_v7 = vpop.xlane.xlu0 %928 }
 0x853   :  { %v931_v8 = vmul.f32 %v929_v7, %v3872_v10 }
 0x855   :  { %v3441_v11 = vpop.eup %3440  ;;  %v933_v14 = vadd.f32 1e-12, %v931_v8 }
 0x856   :  { %v935_v15 = vmul.f32 %v3441_v11, %v932_v62  ;;  %vm941_vm15 = vweird.f32 %v3441_v11 }
 0x857   :  { %3442 = vrsqrt.f32 %v933_v14  ;;  %vm942_vm1 = vmor %vm940_vm0, %vm941_vm15  ;;  %vm950_vm3 = vweird.f32 %v933_v14 }
 0x858   :  { %v936_v16 = vmul.f32 %v3441_v11, %v935_v15 }
 0x85a   :  { %v937_v56 = vmul.f32 0.5, %v936_v16 }
 0x85c   :  { %v938_v57 = vsub.f32 1.5, %v937_v56 }
 0x85d   :  { %v3443_v19 = vpop.eup %3442 }
 0x85e   :  { %v939_v20 = vmul.f32 %v3441_v11, %v938_v57  ;;  %v945_v21 = vmul.f32 %v3443_v19, %v933_v14  ;;  %vm951_vm2 = vweird.f32 %v3443_v19 }
 0x85f   :  { %vm952_vm4 = vmor %vm950_vm3, %vm951_vm2 }
 0x860   :  { %v946_v22 = vmul.f32 %v3443_v19, %v945_v21  ;;  %v943_v23 = vsel %vm942_vm1, %v3441_v11, %v939_v20 }
 0x861   :  { %v954_v26 = vmul.f32 %v943_v23, %v3967_v12  ;;  %v3303_v12 = vld [vmem:[#allocation12 + $0x78] sm:$0xff] }
 0x862   :  { %v947_v24 = vmul.f32 0.5, %v946_v22  ;;  %1274 = vmatpush.bf16.msra.mxu2 %v3303_v12 }
 0x863   :  { %v957_v32 = vmul.f32 %v956_v27, %v954_v26 }
 0x864   :  { %v948_v25 = vsub.f32 1.5, %v947_v24 }
 0x865   :  { %v3982_v36 = vadd.f32 %v959_v33, %v957_v32 }
 0x866   :  { %v949_v28 = vmul.f32 %v3443_v19, %v948_v25  ;;  %1275 = vmatpush.bf16.msra.mxu2 %v3302_v39 }
 0x868   :  { %v953_v30 = vsel %vm952_vm4, %v3443_v19, %v949_v28 }
 0x869   :  { %v955_v31 = vmul.f32 %v953_v30, %v3972_v18  ;;  %v3301_v18 = vld [vmem:[#allocation12 + $0x68] sm:$0xff] }
 0x86a   :  { %1276 = vmatpush.bf16.msra.mxu2 %v3301_v18 }
 0x86b   :  { %v958_v34 = vmul.f32 %v956_v27, %v955_v31 }
 0x86d   :  { %v3984_v37 = vadd.f32 %v959_v33, %v958_v34 }
 0x86e   :  { %1277 = vmatpush.bf16.msra.mxu2 %v3300_v42 }
 0x86f   :  { %v962_v38 = vpack.c.bf16 %v3984_v37, %v3982_v36 }
 0x871   :  { %1073 = vmatmul.bf16.vlgmr.msrb.gmra.mxu3 %v962_v38  ;;  %1087 = vmatmul.bf16.vlgmr.msrb.gmra.mxu0 %v962_v38 }
 0x872   :  { %1278 = vmatpush.bf16.msra.mxu2 %v3299_v44  ;;  %v1163_v44 = vperm.slane %v3961_v1, 3 }
 0x876   :  { %1279 = vmatpush.bf16.msra.mxu2 %v3298_v46 }
 0x87a   :  { %1280 = vmatpush.bf16.msra.mxu2 %v3297_v9 }
 0x87e   :  { %1281 = vmatpush.bf16.msra.mxu2 %v3296_v50 }
 0x8ee   :  { %v1088_v53 = vpop.f32.mrf.mxu0 }
 0x8ef   :  { %v1089_v54 = vadd.f32 %v1088_v53, %v982_v51 }
 0x8f1   :  { %v1098_v13 = vmul.f32 0.044715, %v1089_v54  ;;  %v1094_v27 = vmul.f32 0.5, %v1089_v54 }
 0x8f3   :  { %v1102_v58 = vmul.f32 %v1098_v13, %v1089_v54 }
 0x8f4   :  { %v1074_v59 = vpop.f32.mrf.mxu3 }
 0x8f5   :  { %v1106_v60 = vmul.f32 %v1102_v58, %v1089_v54  ;;  %v1075_v61 = vadd.f32 %v1074_v59, %v981_v17 }
 0x8f6   :  { %v1090_v63 = vpop.f32.mrf.mxu0 }
 0x8f7   :  { %v1110_v0 = vadd.f32 %v1106_v60, %v1089_v54  ;;  %v1097_v2 = vmul.f32 0.044715, %v1075_v61  ;;  %v1091_v3 = vadd.f32 %v1090_v63, %v982_v51  ;;  %v1093_v39 = vmul.f32 0.5, %v1075_v61  ;;  %v3325_v63 = vld [vmem:[#allocation8 + $0x16c] sm:$0xf] }
 0x8f9   :  { %v1101_v4 = vmul.f32 %v1097_v2, %v1075_v61  ;;  %v1100_v5 = vmul.f32 0.044715, %v1091_v3  ;;  %v1114_v6 = vmul.f32 0.7978846, %v1110_v0  ;;  %v1096_v28 = vmul.f32 0.5, %v1091_v3 }
 0x8fa   :  { %v2966_v2 = vld [vmem:[#allocation8 + $0x174] sm:$0xf0] }
 0x8fb   :  { %v1105_v62 = vmul.f32 %v1101_v4, %v1075_v61  ;;  %v1104_v7 = vmul.f32 %v1100_v5, %v1091_v3  ;;  %3444 = vtanh.f32 %v1114_v6  ;;  %v3327_v4 = vld [vmem:[#allocation8 + $0x178] sm:$0xf0]  ;;  %v2969_v5 = vor.u32 %v3325_v63, %v2966_v2  ;;  %v3309_v63 = vld [vmem:[#allocation8 + $0xe8] sm:$0xf0] }
 0x8fc   :  { %v1076_v8 = vpop.f32.mrf.mxu3 }
 0x8fd   :  { %v1109_v11 = vadd.f32 %v1105_v62, %v1075_v61  ;;  %v1108_v14 = vmul.f32 %v1104_v7, %v1091_v3  ;;  %v1077_v15 = vadd.f32 %v1076_v8, %v981_v17  ;;  %v3326_v61 = vld [vmem:[#allocation8 + $0x170] sm:$0xf0]  ;;  %1521 = vmatpush.bf16.msra.mxu0 %v2969_v5  ;;  %v2952_v62 = vld [vmem:[#allocation8 + $0x150] sm:$0xf]  ;;  %v3323_v7 = vld [vmem:[#allocation8 + $0x158] sm:$0xf0] }
 0x8fe   :  { %v3322_v8 = vld [vmem:[#allocation8 + $0x154] sm:$0xf]  ;;  %v3305_v5 = vld [vmem:[#allocation8 + $0xc8] sm:$0xf0] }
 0x8ff   :  { %v1112_v16 = vadd.f32 %v1108_v14, %v1091_v3  ;;  %v1099_v56 = vmul.f32 0.044715, %v1077_v15  ;;  %v1113_v57 = vmul.f32 0.7978846, %v1109_v11  ;;  %v1095_v40 = vmul.f32 0.5, %v1077_v15 }
 0x900   :  { %v2972_v3 = vld [vmem:[#allocation8 + $0x170] sm:$0xf]  ;;  %v2953_v11 = vor.u32 %v3323_v7, %v2952_v62  ;;  %v2954_v14 = vld [vmem:[#allocation8 + $0x15c] sm:$0xf0] }
 0x901   :  { %v1116_v19 = vmul.f32 0.7978846, %v1112_v16  ;;  %v1103_v20 = vmul.f32 %v1099_v56, %v1077_v15  ;;  %v3445_v22 = vpop.eup %3444  ;;  %v2973_v6 = vor.u32 %v3327_v4, %v2972_v3  ;;  %v3324_v16 = vld [vmem:[#allocation8 + $0x160] sm:$0xf0]  ;;  %v2957_v56 = vor.u32 %v3322_v8, %v2954_v14  ;;  %v2880_v4 = vld [vmem:[#allocation8 + $0xc0] sm:$0xf] }
 0x902   :  { %v1122_v25 = vadd.f32 1.0, %v3445_v22  ;;  %v2881_v7 = vor.u32 %v3305_v5, %v2880_v4  ;;  %v2882_v8 = vld [vmem:[#allocation8 + $0xcc] sm:$0xf0]  ;;  %v3306_v14 = vld [vmem:[#allocation8 + $0xd0] sm:$0xf0] }
 0x903   :  { %v1107_v21 = vmul.f32 %v1103_v20, %v1077_v15  ;;  %3446 = vtanh.f32 %v1116_v19  ;;  %1535 = vmatpush.bf16.msrb.mxu1 %v2973_v6  ;;  %1522 = vmatpush.bf16.msra.mxu0 %v2957_v56  ;;  %v2940_v19 = vld [vmem:[#allocation8 + $0x138] sm:$0xf]  ;;  %v3320_v20 = vld [vmem:[#allocation8 + $0x140] sm:$0xf0] }
 0x904   :  { %3448 = vtanh.f32 %v1113_v57  ;;  %v1126_v32 = vmul.f32 %v1122_v25, %v1094_v27  ;;  %v2941_v22 = vor.u32 %v3320_v20, %v2940_v19  ;;  %v3321_v25 = vld [vmem:[#allocation8 + $0x148] sm:$0xf0]  ;;  %v3304_v6 = vld [vmem:[#allocation8 + $0xc4] sm:$0xf] }
 0x905   :  { %v1111_v23 = vadd.f32 %v1107_v21, %v1077_v15  ;;  %v2960_v15 = vld [vmem:[#allocation8 + $0x158] sm:$0xf]  ;;  %v3319_v21 = vld [vmem:[#allocation8 + $0x13c] sm:$0xf] }
 0x906   :  { %v2961_v57 = vor.u32 %v3324_v16, %v2960_v15  ;;  %v2885_v15 = vor.u32 %v3304_v6, %v2882_v8 }
 0x907   :  { %v1115_v24 = vmul.f32 0.7978846, %v1111_v23  ;;  %v2942_v23 = vld [vmem:[#allocation8 + $0x144] sm:$0xf0] }
 0x908   :  { %1536 = vmatpush.bf16.msrb.mxu1 %v2961_v57 }
 0x909   :  { %v3447_v26 = vpop.eup %3446  ;;  %3450 = vtanh.f32 %v1115_v24  ;;  %v2948_v24 = vld [vmem:[#allocation8 + $0x140] sm:$0xf] }
 0x90a   :  { %v1124_v30 = vadd.f32 1.0, %v3447_v26  ;;  %v3449_v31 = vpop.eup %3448  ;;  %v2945_v26 = vor.u32 %v3319_v21, %v2942_v23  ;;  %v2949_v27 = vor.u32 %v3321_v25, %v2948_v24 }
 0x90b   :  { %v1121_v38 = vadd.f32 1.0, %v3449_v31  ;;  %v3316_v31 = vld [vmem:[#allocation8 + $0x124] sm:$0xf] }
 0x90c   :  { %v1128_v33 = vmul.f32 %v1124_v30, %v1096_v28  ;;  %1523 = vmatpush.bf16.msra.mxu0 %v2945_v26  ;;  %1537 = vmatpush.bf16.msrb.mxu1 %v2949_v27  ;;  %v2928_v28 = vld [vmem:[#allocation8 + $0x120] sm:$0xf]  ;;  %v3317_v30 = vld [vmem:[#allocation8 + $0x128] sm:$0xf0] }
 0x90d   :  { %v1125_v41 = vmul.f32 %v1121_v38, %v1093_v39  ;;  %v3318_v38 = vld [vmem:[#allocation8 + $0x130] sm:$0xf0] }
 0x90e   :  { %v1130_v34 = vpack.c.bf16 %v1128_v33, %v1126_v32  ;;  %v2929_v32 = vor.u32 %v3317_v30, %v2928_v28  ;;  %v2930_v33 = vld [vmem:[#allocation8 + $0x12c] sm:$0xf0] }
 0x90f   :  { %v3451_v12 = vpop.eup %3450 }
 0x910   :  { %1282 = vmatmul.bf16.vlgmr.msra.gmra.mxu2 %v1130_v34  ;;  %v1123_v18 = vadd.f32 1.0, %v3451_v12  ;;  %v2936_v34 = vld [vmem:[#allocation8 + $0x128] sm:$0xf]  ;;  %v2933_v12 = vor.u32 %v3316_v31, %v2930_v33 }
 0x911   :  { %v2937_v39 = vor.u32 %v3318_v38, %v2936_v34  ;;  %v1330_v38 = vperm.slane %v3961_v1, 4 }
 0x912   :  { %v1127_v42 = vmul.f32 %v1123_v18, %v1095_v40  ;;  %1524 = vmatpush.bf16.msra.mxu0 %v2933_v12  ;;  %v2916_v40 = vld [vmem:[#allocation8 + $0x108] sm:$0xf]  ;;  %v3314_v18 = vld [vmem:[#allocation8 + $0x110] sm:$0xf0] }
 0x913   :  { %1538 = vmatpush.bf16.msrb.mxu1 %v2937_v39 }
 0x914   :  { %v1129_v43 = vpack.c.bf16 %v1127_v42, %v1125_v41  ;;  %v3313_v41 = vld [vmem:[#allocation8 + $0x10c] sm:$0xf]  ;;  %v2917_v42 = vor.u32 %v3314_v18, %v2916_v40 }
 0x916   :  { %1268 = vmatmul.bf16.vlgmr.msra.gmra.mxu1 %v1129_v43  ;;  %v2918_v43 = vld [vmem:[#allocation8 + $0x114] sm:$0xf0] }
 0x993   :  { %v1269_v45 = vpop.f32.mrf.mxu1  ;;  %v1283_v46 = vpop.f32.mrf.mxu2 }
 0x994   :  { %v1270_v47 = vadd.f32 %v1269_v45, %v1163_v44  ;;  %v3315_v45 = vld [vmem:[#allocation8 + $0x118] sm:$0xf0] }
 0x996   :  { %v1284_v9 = vadd.f32 %v1283_v46, %v1270_v47  ;;  %v2921_v46 = vor.u32 %v3313_v41, %v2918_v43  ;;  %v1333_v41 = vperm.slane %v3961_v1, 5 }
 0x998   :  { %v1288_v48 = vadd.f32 %v1284_v9, %v3982_v36  ;;  %1525 = vmatpush.bf16.msra.mxu0 %v2921_v46  ;;  %v2904_v9 = vld [vmem:[#allocation8 + $0xf0] sm:$0xf] }
 0x99a   :  { %1290 = vadd.xlane.f32.xlu1 %v1288_v48 }
 0x99b   :  { %v1271_v49 = vpop.f32.mrf.mxu1  ;;  %v1285_v51 = vpop.f32.mrf.mxu2 }
 0x99c   :  { %v1272_v50 = vadd.f32 %v1271_v49, %v1163_v44  ;;  %v2924_v44 = vld [vmem:[#allocation8 + $0x110] sm:$0xf]  ;;  %v3310_v49 = vld [vmem:[#allocation8 + $0xf4] sm:$0xf] }
 0x99d   :  { %v2925_v47 = vor.u32 %v3315_v45, %v2924_v44 }
 0x99e   :  { %v1286_v52 = vadd.f32 %v1285_v51, %v1272_v50  ;;  %v2906_v51 = vld [vmem:[#allocation8 + $0xfc] sm:$0xf0] }
 0x99f   :  { %1539 = vmatpush.bf16.msrb.mxu1 %v2925_v47 }
 0x9a0   :  { %v1289_v53 = vadd.f32 %v1286_v52, %v3984_v37  ;;  %v2964_v37 = vld [vmem:[#allocation8 + $0x168] sm:$0xf]  ;;  %v2912_v52 = vld [vmem:[#allocation8 + $0xf8] sm:$0xf] }
 0x9a1   :  { %v2965_v0 = vor.u32 %v3326_v61, %v2964_v37  ;;  %v2894_v37 = vld [vmem:[#allocation8 + $0xe4] sm:$0xf0]  ;;  %v2900_v61 = vld [vmem:[#allocation8 + $0xe0] sm:$0xf] }
 0x9a2   :  { %1292 = vadd.xlane.f32.xlu2 %v1289_v53  ;;  %v2901_v3 = vor.u32 %v3309_v63, %v2900_v61 }
 0x9a3   :  { %1507 = vmatpush.bf16.msra.mxu3 %v2965_v0 }
 0x9a7   :  { %1508 = vmatpush.bf16.msra.mxu3 %v2953_v11  ;;  %v2888_v11 = vld [vmem:[#allocation8 + $0xc8] sm:$0xf] }
 0x9a8   :  { %v2889_v16 = vor.u32 %v3306_v14, %v2888_v11 }
 0x9ab   :  { %1509 = vmatpush.bf16.msra.mxu3 %v2941_v22 }
 0x9af   :  { %1510 = vmatpush.bf16.msra.mxu3 %v2929_v32 }
 0x9b3   :  { %1511 = vmatpush.bf16.msra.mxu3 %v2917_v42 }
 0xa0d   :  { %v1291_v54 = vpop.xlane.xlu1 %1290 }
 0xa0e   :  { %v1294_v55 = vmul.f32 %v1291_v54, %v3872_v10  ;;  %v2909_v54 = vor.u32 %v3310_v49, %v2906_v51 }
 0xa10   :  { %v3995_v13 = vsub.f32 %v1288_v48, %v1294_v55  ;;  %v3311_v48 = vld [vmem:[#allocation8 + $0xf8] sm:$0xf0]  ;;  %1526 = vmatpush.bf16.msra.mxu0 %v2909_v54 }
 0xa11   :  { %v2905_v50 = vor.u32 %v3311_v48, %v2904_v9 }
 0xa12   :  { %v1298_v17 = vmul.f32 %v3995_v13, %v3995_v13 }
 0xa13   :  { %1512 = vmatpush.bf16.msra.mxu3 %v2905_v50 }
 0xa14   :  { %1300 = vadd.xlane.f32.xlu0 %v1298_v17  ;;  %v2892_v17 = vld [vmem:[#allocation8 + $0xd8] sm:$0xf] }
 0xa15   :  { %v1293_v58 = vpop.xlane.xlu2 %1292 }
 0xa16   :  { %v1295_v36 = vmul.f32 %v1293_v58, %v3872_v10  ;;  %v3308_v58 = vld [vmem:[#allocation8 + $0xe0] sm:$0xf0] }
 0xa18   :  { %v4000_v59 = vsub.f32 %v1289_v53, %v1295_v36  ;;  %v3312_v53 = vld [vmem:[#allocation8 + $0x100] sm:$0xf0]  ;;  %v3307_v36 = vld [vmem:[#allocation8 + $0xdc] sm:$0xf] }
 0xa19   :  { %v2913_v55 = vor.u32 %v3312_v53, %v2912_v52  ;;  %v2897_v2 = vor.u32 %v3307_v36, %v2894_v37 }
 0xa1a   :  { %v1299_v60 = vmul.f32 %v4000_v59, %v4000_v59 }
 0xa1b   :  { %1540 = vmatpush.bf16.msrb.mxu1 %v2913_v55  ;;  %1527 = vmatpush.bf16.msra.mxu0 %v2897_v2 }
 0xa1c   :  { %1302 = vadd.xlane.f32.xlu1 %v1299_v60  ;;  %v2893_v60 = vor.u32 %v3308_v58, %v2892_v17 }
 0xa1e   :  { %1513 = vmatpush.bf16.msra.mxu3 %v2893_v60 }
 0xa1f   :  { %1541 = vmatpush.bf16.msrb.mxu1 %v2901_v3  ;;  %1528 = vmatpush.bf16.msra.mxu0 %v2885_v15 }
 0xa22   :  { %1514 = vmatpush.bf16.msra.mxu3 %v2881_v7 }
 0xa23   :  { %1542 = vmatpush.bf16.msrb.mxu1 %v2889_v16 }
 0xa87   :  { %v1301_v0 = vpop.xlane.xlu0 %1300 }
 0xa88   :  { %v1304_v62 = vmul.f32 %v1301_v0, %v3872_v10 }
 0xa8a   :  { %v1306_v56 = vadd.f32 1e-12, %v1304_v62 }
 0xa8c   :  { %3452 = vrsqrt.f32 %v1306_v56  ;;  %vm1314_vm6 = vweird.f32 %v1306_v56 }
 0xa8f   :  { %v1303_v57 = vpop.xlane.xlu1 %1302 }
 0xa90   :  { %v1305_v19 = vmul.f32 %v1303_v57, %v3872_v10 }
 0xa92   :  { %v3453_v20 = vpop.eup %3452  ;;  %v1307_v21 = vadd.f32 1e-12, %v1305_v19 }
 0xa93   :  { %v1309_v22 = vmul.f32 %v3453_v20, %v1306_v56  ;;  %vm1315_vm5 = vweird.f32 %v3453_v20 }
 0xa94   :  { %3454 = vrsqrt.f32 %v1307_v21  ;;  %vm1316_vm7 = vmor %vm1314_vm6, %vm1315_vm5  ;;  %vm1324_vm9 = vweird.f32 %v1307_v21 }
 0xa95   :  { %v1310_v23 = vmul.f32 %v3453_v20, %v1309_v22 }
 0xa97   :  { %v1311_v24 = vmul.f32 0.5, %v1310_v23 }
 0xa99   :  { %v1312_v25 = vsub.f32 1.5, %v1311_v24 }
 0xa9a   :  { %v3455_v26 = vpop.eup %3454 }
 0xa9b   :  { %v1313_v27 = vmul.f32 %v3453_v20, %v1312_v25  ;;  %v1319_v28 = vmul.f32 %v3455_v26, %v1307_v21  ;;  %vm1325_vm8 = vweird.f32 %v3455_v26 }
 0xa9c   :  { %vm1326_vm10 = vmor %vm1324_vm9, %vm1325_vm8 }
 0xa9d   :  { %v1320_v30 = vmul.f32 %v3455_v26, %v1319_v28  ;;  %v1317_v31 = vsel %vm1316_vm7, %v3453_v20, %v1313_v27 }
 0xa9e   :  { %v1328_v34 = vmul.f32 %v1317_v31, %v3995_v13  ;;  %v2877_v13 = vld [vmem:[%s4146_s9 + $0x3] sm:$0x7] }
 0xa9f   :  { %v1321_v32 = vmul.f32 0.5, %v1320_v30  ;;  %v1374_v46 = vperm.slane %v2877_v13, 1  ;;  %v1373_v50 = vperm.slane %v2877_v13, 0 }
 0xaa0   :  { %v1331_v18 = vmul.f32 %v1330_v38, %v1328_v34 }
 0xaa1   :  { %v1322_v33 = vsub.f32 1.5, %v1321_v32 }
 0xaa2   :  { %v4010_v43 = vadd.f32 %v1333_v41, %v1331_v18 }
 0xaa3   :  { %v1323_v12 = vmul.f32 %v3455_v26, %v1322_v33 }
 0xaa5   :  { %v1327_v39 = vsel %vm1326_vm10, %v3455_v26, %v1323_v12 }
 0xaa6   :  { %v1329_v40 = vmul.f32 %v1327_v39, %v4000_v59  ;;  %v1375_v59 = vperm.slane %v2877_v13, 2 }
 0xaa8   :  { %v1332_v42 = vmul.f32 %v1330_v38, %v1329_v40 }
 0xaaa   :  { %v4012_v44 = vadd.f32 %v1333_v41, %v1332_v42 }
 0xaac   :  { %v1336_v45 = vpack.c.bf16 %v4012_v44, %v4010_v43 }
 0xaae   :  { %1515 = vmatmul.bf16.vlgmr.msra.gmra.mxu3 %v1336_v45  ;;  %1529 = vmatmul.bf16.vlgmr.msra.gmra.mxu0 %v1336_v45 }
 0xaaf   :  { %1543 = vmatmul.bf16.vlgmr.msrb.gmra.mxu1 %v1336_v45 }
 0xb2b   :  { %v1530_v47 = vpop.f32.mrf.mxu0 }
 0xb2c   :  { %v1531_v9 = vadd.f32 %v1530_v47, %v1374_v46  ;;  %v1544_v1 = vpop.f32.mrf.mxu1 }
 0xb2d   :  { %v1545_v48 = vadd.f32 %v1544_v1, %v1375_v59 }
 0xb2e   :  { %v1551_v49 = vpack.c.bf16 %v1531_v9, %v1531_v9 }
 0xb2f   :  { %v4019_v51 = vpack.c.bf16 %v1545_v48, %v1545_v48 }
 0xb30   :  { %v1559_v52 = vsel %vm585_vm12, %v1551_v49, 0  ;;  %v1663_v53 = vunpack.c.l.b16 %v1551_v49 }
 0xb31   :  { %v1621_v54 = vsel %vm652_vm11, %v4019_v51, 0  ;;  %v1516_v55 = vpop.f32.mrf.mxu3  ;;  %1568 = vmatpush.bf16.xpose.msrb.mxu2 %v1559_v52  ;;  %v1740_v48 = vunpack.c.l.b16 %v4019_v51 }
 0xb32   :  { %v1517_v17 = vadd.f32 %v1516_v55, %v1373_v50  ;;  %1630 = vmatpush.bf16.msrb.mxu0 %v1621_v54  ;;  %v1664_v58 = vpack.c.b16 %v1663_v53, %v1663_v53 }
 0xb33   :  { %v1532_v36 = vpop.f32.mrf.mxu0  ;;  %v1741_v49 = vpack.c.b16 %v1740_v48, %v1740_v48 }
 0xb34   :  { %v1549_v60 = vpack.c.bf16 %v1517_v17, %v1517_v17  ;;  %v1533_v37 = vadd.f32 %v1532_v36, %v1374_v46  ;;  %v1546_v61 = vpop.f32.mrf.mxu1  ;;  %1665 = vrot.lane.b32.xlu2 %v1664_v58, %s3702_s24 }
 0xb35   :  { %v1547_v63 = vadd.f32 %v1546_v61, %v1375_v59 }
 0xb36   :  { %v1552_v0 = vpack.c.bf16 %v1533_v37, %v1533_v37  ;;  %v1658_v2 = vunpack.c.l.b16 %v1549_v60 }
 0xb37   :  { %v4025_v3 = vpack.c.bf16 %v1547_v63, %v1547_v63 }
 0xb38   :  { %v1578_v4 = vsel %vm585_vm12, %v1552_v0, 0  ;;  %2974 = vmatmul.msk.bf16.vlgmr.msrb.gmra.mxu2 %vm585_vm12, %v1549_v60  ;;  %v1659_v5 = vpack.c.b16 %v1658_v2, %v1658_v2  ;;  %v1692_v6 = vunpack.c.l.b16 %v1552_v0 }
 0xb39   :  { %v1640_v62 = vsel %vm652_vm11, %v4025_v3, 0  ;;  %v1518_v7 = vpop.f32.mrf.mxu3  ;;  %1587 = vmatpush.bf16.xpose.msrb.mxu3 %v1578_v4 }
 0xb3a   :  { %v1519_v8 = vadd.f32 %v1518_v7, %v1373_v50  ;;  %1649 = vmatpush.bf16.msra.mxu1 %v1640_v62  ;;  %1660 = vrot.lane.b32.xlu1 %v1659_v5, %s3702_s24  ;;  %v1693_v11 = vpack.c.b16 %v1692_v6, %v1692_v6  ;;  %v1764_v6 = vunpack.c.l.b16 %v4025_v3 }
 0xb3c   :  { %v1550_v14 = vpack.c.bf16 %v1519_v8, %v1519_v8  ;;  %1694 = vrot.lane.b32.xlu0 %v1693_v11, %s3702_s24  ;;  %v1765_v62 = vpack.c.b16 %v1764_v6, %v1764_v6  ;;  %v3058_v6 = vld [vmem:[#allocation11 + $0xd0] sm:$0xf] }
 0xb3e   :  { %v1687_v15 = vunpack.c.l.b16 %v1550_v14 }
 0xb40   :  { %2975 = vmatmul.msk.bf16.vlgmr.msrb.gmra.mxu3 %vm585_vm12, %v1550_v14  ;;  %v1688_v16 = vpack.c.b16 %v1687_v15, %v1687_v15 }
 0xb44   :  { %1689 = vrot.lane.b32.xlu0 %v1688_v16, %s3702_s24 }
 0xb8e   :  { %v1666_v56 = vpop.permute.xlu2 %1665 }
 0xb8f   :  { %v1671_v57 = vsel %vm585_vm12, %v1666_v56, 0 }
 0xb90   :  { %1680 = vmatpush.bf16.xpose.msra.mxu2 %v1671_v57 }
 0xbac   :  { %v1661_v19 = vpop.permute.xlu1 %1660 }
 0xbad   :  { %2978 = vmatmul.msk.bf16.vlgmr.msra.gmra.mxu2 %vm585_vm12, %v1661_v19 }
 0xbae   :  { %v1695_v20 = vpop.permute.xlu0 %1694 }
 0xbaf   :  { %v1700_v21 = vsel %vm585_vm12, %v1695_v20, 0 }
 0xbb0   :  { %1709 = vmatpush.bf16.xpose.msra.mxu3 %v1700_v21 }
 0xbb6   :  { %v1690_v22 = vpop.permute.xlu0 %1689 }
 0xbb7   :  { %2979 = vmatmul.msk.bf16.vlgmr.msra.gmra.mxu3 %vm585_vm12, %v1690_v22 }
 0xbbb   :  { %v1570_v23 = vpop.f32.mrf.mxu2 }
 0xbbc   :  { %v1571_v24 = vadd.f32 %v1570_v23, %v3920_v29 }
 0xbbe   :  { %v1593_v25 = vsel %vm624_vm13, %v1571_v24, -inf }
 0xbbf   :  { %1594 = vmax.xlane.f32.xlu2 %v1593_v25 }
 0xbc3   :  { %v1572_v26 = vpop.f32.mrf.mxu2  ;;  %v1589_v27 = vpop.f32.mrf.mxu3 }
 0xbc4   :  { %v1590_v28 = vadd.f32 %v1589_v27, %v3924_v35  ;;  %v3335_v26 = vld [vmem:[#allocation9 + $0x78] sm:$0xff]  ;;  %v3334_v27 = vld [vmem:[#allocation9 + $0x70] sm:$0xff] }
 0xbc5   :  { %1868 = vmatpush.bf16.msrb.mxu2 %v3335_v26  ;;  %v3034_v26 = vld [vmem:[#allocation11 + $0xa0] sm:$0xf] }
 0xbc6   :  { %v1596_v30 = vsel %vm624_vm13, %v1590_v28, -inf }
 0xbc7   :  { %1597 = vmax.xlane.f32.xlu1 %v1596_v30 }
 0xbc9   :  { %1869 = vmatpush.bf16.msrb.mxu2 %v3334_v27  ;;  %v3341_v27 = vld [vmem:[#allocation11 + $0xa4] sm:$0xf0] }
 0xbcb   :  { %v1591_v31 = vpop.f32.mrf.mxu3 }
 0xc30   :  { %v1682_v32 = vpop.f32.mrf.mxu2 }
 0xc31   :  { %v1683_v33 = vadd.f32 %v1682_v32, %v3920_v29 }
 0xc32   :  { %v1595_v34 = vpop.xlane.xlu2 %1594 }
 0xc33   :  { %v1599_v38 = vsub.f32 %v1571_v24, %v1595_v34  ;;  %v1715_v12 = vsel %vm624_vm13, %v1683_v33, -inf  ;;  %v3332_v34 = vld [vmem:[#allocation9 + $0x60] sm:$0xff] }
 0xc34   :  { %1716 = vmax.xlane.f32.xlu0 %v1715_v12  ;;  %v3330_v12 = vld [vmem:[#allocation9 + $0x50] sm:$0xff] }
 0xc35   :  { %v1601_v39 = vmul.f32 1.442695, %v1599_v38  ;;  %v3331_v38 = vld [vmem:[#allocation9 + $0x58] sm:$0xff] }
 0xc37   :  { %3456 = vpow2.f32 %v1601_v39  ;;  %v3329_v39 = vld [vmem:[#allocation9 + $0x48] sm:$0xff] }
 0xc38   :  { %v1684_v40 = vpop.f32.mrf.mxu2 }
 0xc39   :  { %v3328_v40 = vld [vmem:[#allocation9 + $0x40] sm:$0xff] }
 0xc3a   :  { %v1711_v18 = vpop.f32.mrf.mxu3  ;;  %v1598_v41 = vpop.xlane.xlu1 %1597 }
 0xc3b   :  { %v1712_v42 = vadd.f32 %v1711_v18, %v3924_v35  ;;  %v1600_v45 = vsub.f32 %v1590_v28, %v1598_v41  ;;  %v3333_v28 = vld [vmem:[#allocation9 + $0x68] sm:$0xff] }
 0xc3c   :  { %1870 = vmatpush.bf16.msrb.mxu2 %v3333_v28  ;;  %v3340_v28 = vld [vmem:[#allocation11 + $0xa4] sm:$0xf] }
 0xc3d   :  { %v3457_v13 = vpop.eup %3456  ;;  %v1603_v46 = vmul.f32 1.442695, %v1600_v45  ;;  %v1718_v59 = vsel %vm624_vm13, %v1712_v42, -inf }
 0xc3e   :  { %1719 = vmax.xlane.f32.xlu2 %v1718_v59  ;;  %v1605_v29 = vsel %vm624_vm13, %v3457_v13, 0.0 }
 0xc3f   :  { %3458 = vpow2.f32 %v1603_v46  ;;  %1606 = vadd.xlane.f32.xlu1 %v1605_v29  ;;  %v4070_v46 = vld [vmem:[%s4151_s14 + $0x8] sm:$0x3f] }
 0xc40   :  { %1871 = vmatpush.bf16.msrb.mxu2 %v3332_v34  ;;  %v1819_v59 = vperm.slane %v4070_v46, 0  ;;  %v3339_v34 = vld [vmem:[#allocation11 + $0x94] sm:$0xf0] }
 0xc42   :  { %v1713_v47 = vpop.f32.mrf.mxu3 }
 0xc44   :  { %1872 = vmatpush.bf16.msrb.mxu2 %v3331_v38  ;;  %v3338_v38 = vld [vmem:[#allocation11 + $0x94] sm:$0xf] }
 0xc45   :  { %v3459_v9 = vpop.eup %3458 }
 0xc46   :  { %v1608_v1 = vsel %vm624_vm13, %v3459_v9, 0.0 }
 0xc47   :  { %1609 = vadd.xlane.f32.xlu0 %v1608_v1 }
 0xc48   :  { %1873 = vmatpush.bf16.msrb.mxu2 %v3330_v12 }
 0xc4c   :  { %1874 = vmatpush.bf16.msrb.mxu2 %v3329_v39  ;;  %v3028_v39 = vld [vmem:[#allocation11 + $0x98] sm:$0xf0] }
 0xc50   :  { %1875 = vmatpush.bf16.msrb.mxu2 %v3328_v40  ;;  %v3018_v40 = vld [vmem:[#allocation11 + $0x80] sm:$0xf] }
 0xc5b   :  { %1742 = vrot.lane.b32.xlu0 %v1741_v49, %s3702_s24 }
 0xca7   :  { %v1717_v35 = vpop.xlane.xlu0 %1716 }
 0xca8   :  { %v1721_v50 = vsub.f32 %v1683_v33, %v1717_v35 }
 0xcaa   :  { %v1723_v52 = vmul.f32 1.442695, %v1721_v50 }
 0xcac   :  { %3460 = vpow2.f32 %v1723_v52 }
 0xcb1   :  { %v1720_v53 = vpop.xlane.xlu2 %1719 }
 0xcb2   :  { %v3461_v54 = vpop.eup %3460  ;;  %v1722_v55 = vsub.f32 %v1712_v42, %v1720_v53  ;;  %v1607_v17 = vpop.xlane.xlu1 %1606 }
 0xcb3   :  { %3462 = vrcp.f32 %v1607_v17  ;;  %v1727_v58 = vsel %vm624_vm13, %v3461_v54, 0.0 }
 0xcb4   :  { %v1725_v36 = vmul.f32 1.442695, %v1722_v55  ;;  %1728 = vadd.xlane.f32.xlu2 %v1727_v58  ;;  %v3351_v58 = vld [vmem:[#allocation11 + $0xf4] sm:$0xf0] }
 0xcb6   :  { %3464 = vpow2.f32 %v1725_v36  ;;  %v3350_v36 = vld [vmem:[#allocation11 + $0xf4] sm:$0xf] }
 0xcb9   :  { %v3463_v60 = vpop.eup %3462 }
 0xcba   :  { %v1613_v37 = vmul.f32 %v3463_v60, %v3457_v13  ;;  %v1610_v51 = vpop.xlane.xlu0 %1609 }
 0xcbb   :  { %3466 = vrcp.f32 %v1610_v51 }
 0xcbc   :  { %v3465_v61 = vpop.eup %3464  ;;  %v1615_v63 = vpack.c.bf16 %v1613_v37, %v1613_v37  ;;  %v3076_v37 = vld [vmem:[#allocation11 + $0xf8] sm:$0xf0] }
 0xcbd   :  { %v1730_v0 = vsel %vm624_vm13, %v3465_v61, 0.0  ;;  %v3079_v51 = vor.u32 %v3350_v36, %v3076_v37 }
 0xcbe   :  { %2976 = vmatmul.msk.bf16.vlgmr.msrb.gmra.mxu0 %vm624_vm13, %v1615_v63  ;;  %1731 = vadd.xlane.f32.xlu1 %v1730_v0  ;;  %v3349_v63 = vld [vmem:[#allocation11 + $0xe4] sm:$0xf0]  ;;  %v3348_v0 = vld [vmem:[#allocation11 + $0xe4] sm:$0xf] }
 0xcc1   :  { %v3467_v2 = vpop.eup %3466 }
 0xcc2   :  { %v1614_v4 = vmul.f32 %v3467_v2, %v3459_v9 }
 0xcc4   :  { %v1616_v5 = vpack.c.bf16 %v1614_v4, %v1614_v4  ;;  %v3068_v4 = vld [vmem:[#allocation11 + $0xe8] sm:$0xf0] }
 0xcc6   :  { %2977 = vmatmul.msk.bf16.vlgmr.msra.gmra.mxu1 %vm624_vm13, %v1616_v5  ;;  %v3071_v5 = vor.u32 %v3348_v0, %v3068_v4 }
 0xccc   :  { %1766 = vrot.lane.b32.xlu2 %v1765_v62, %s3702_s24  ;;  %v3347_v62 = vld [vmem:[#allocation11 + $0xd4] sm:$0xf0] }
 0xccd   :  { %v1743_v7 = vpop.permute.xlu0 %1742 }
 0xcce   :  { %v1748_v8 = vsel %vm652_vm11, %v1743_v7, 0  ;;  %v3346_v7 = vld [vmem:[#allocation11 + $0xd4] sm:$0xf] }
 0xccf   :  { %1757 = vmatpush.bf16.msra.mxu0 %v1748_v8  ;;  %v3059_v8 = vor.u32 %v3347_v62, %v3058_v6  ;;  %v1927_v6 = vperm.slane %v4070_v46, 2 }
 0xcd3   :  { %2049 = vmatpush.bf16.msrb.mxu0 %v3079_v51 }
 0xcd7   :  { %2050 = vmatpush.bf16.msrb.mxu0 %v3071_v5 }
 0xd27   :  { %v1729_v11 = vpop.xlane.xlu2 %1728 }
 0xd28   :  { %3468 = vrcp.f32 %v1729_v11  ;;  %v3060_v11 = vld [vmem:[#allocation11 + $0xd8] sm:$0xf0] }
 0xd2e   :  { %v3469_v14 = vpop.eup %3468 }
 0xd2f   :  { %v1735_v15 = vmul.f32 %v3469_v14, %v3461_v54  ;;  %v1767_v16 = vpop.permute.xlu2 %1766  ;;  %v3063_v14 = vor.u32 %v3346_v7, %v3060_v11 }
 0xd30   :  { %v1772_v56 = vsel %vm652_vm11, %v1767_v16, 0  ;;  %v3345_v16 = vld [vmem:[#allocation11 + $0xc4] sm:$0xf0] }
 0xd31   :  { %v1737_v57 = vpack.c.bf16 %v1735_v15, %v1735_v15  ;;  %v1732_v19 = vpop.xlane.xlu1 %1731  ;;  %1781 = vmatpush.bf16.msrb.mxu1 %v1772_v56  ;;  %2051 = vmatpush.bf16.msrb.mxu0 %v3063_v14  ;;  %v3050_v15 = vld [vmem:[#allocation11 + $0xc0] sm:$0xf]  ;;  %v3344_v56 = vld [vmem:[#allocation11 + $0xc4] sm:$0xf]  ;;  %v3366_v14 = vld [vmem:[#allocation12 + $0xf0] sm:$0xff] }
 0xd32   :  { %3470 = vrcp.f32 %v1732_v19  ;;  %v3052_v19 = vld [vmem:[#allocation11 + $0xc8] sm:$0xf0] }
 0xd33   :  { %2980 = vmatmul.msk.bf16.vlgmr.msra.gmra.mxu0 %vm624_vm13, %v1737_v57  ;;  %v3051_v57 = vor.u32 %v3345_v16, %v3050_v15  ;;  %v3359_v15 = vld [vmem:[#allocation12 + $0xb8] sm:$0xff]  ;;  %v3358_v16 = vld [vmem:[#allocation12 + $0xb0] sm:$0xff] }
 0xd35   :  { %2231 = vmatpush.bf16.msra.mxu1 %v3359_v15 }
 0xd38   :  { %v3471_v3 = vpop.eup %3470 }
 0xd39   :  { %v1736_v20 = vmul.f32 %v3471_v3, %v3465_v61  ;;  %v3066_v61 = vld [vmem:[#allocation11 + $0xe0] sm:$0xf]  ;;  %v3055_v3 = vor.u32 %v3344_v56, %v3052_v19  ;;  %2232 = vmatpush.bf16.msra.mxu1 %v3358_v16  ;;  %v3363_v19 = vld [vmem:[#allocation12 + $0xd8] sm:$0xff] }
 0xd3a   :  { %v3067_v2 = vor.u32 %v3349_v63, %v3066_v61  ;;  %v1924_v63 = vperm.slane %v4070_v46, 1  ;;  %v3364_v56 = vld [vmem:[#allocation12 + $0xe0] sm:$0xff] }
 0xd3b   :  { %v1738_v21 = vpack.c.bf16 %v1736_v20, %v1736_v20  ;;  %v1632_v22 = vpop.f32.mrf.mxu0  ;;  %2052 = vmatpush.bf16.msrb.mxu0 %v3055_v3  ;;  %v3042_v20 = vld [vmem:[#allocation11 + $0xb0] sm:$0xf]  ;;  %v3356_v3 = vld [vmem:[#allocation12 + $0xa0] sm:$0xff] }
 0xd3c   :  { %1655 = vst.msk [vmem:[#allocation2] sm:$0xff] %vm585_vm12, %v1632_v22  ;;  %v3342_v22 = vld [vmem:[#allocation11 + $0xb4] sm:$0xf] }
 0xd3d   :  { %2981 = vmatmul.msk.bf16.vlgmr.msrb.gmra.mxu1 %vm624_vm13, %v1738_v21  ;;  %v3343_v21 = vld [vmem:[#allocation11 + $0xb4] sm:$0xf0] }
 0xd43   :  { %v1634_v23 = vpop.f32.mrf.mxu0  ;;  %v1651_v24 = vpop.f32.mrf.mxu1 }
 0xd44   :  { %1656 = vst.msk [vmem:[#allocation2 + $0x8] sm:$0xff] %vm585_vm12, %v1651_v24  ;;  %v3043_v23 = vor.u32 %v3343_v21, %v3042_v20  ;;  %v3044_v24 = vld [vmem:[#allocation11 + $0xb8] sm:$0xf0]  ;;  %v3362_v20 = vld [vmem:[#allocation12 + $0xd0] sm:$0xff] }
 0xd45   :  { %v3355_v21 = vld [vmem:[#allocation12 + $0x98] sm:$0xff] }
 0xd4b   :  { %v1653_v25 = vpop.f32.mrf.mxu1 }
 0xd4c   :  { %v3047_v25 = vor.u32 %v3342_v22, %v3044_v24  ;;  %v3361_v22 = vld [vmem:[#allocation12 + $0xc8] sm:$0xff]  ;;  %v3354_v24 = vld [vmem:[#allocation12 + $0x90] sm:$0xff] }
 0xd4e   :  { %2053 = vmatpush.bf16.msrb.mxu0 %v3047_v25  ;;  %v3360_v25 = vld [vmem:[#allocation12 + $0xc0] sm:$0xff] }
 0xdb0   :  { %v1759_v30 = vpop.f32.mrf.mxu0 }
 0xdb1   :  { %1789 = vrot.lane.b32.xlu1 %v1759_v30, %s3702_s24  ;;  %v3035_v30 = vor.u32 %v3341_v27, %v3034_v26  ;;  %v3353_v27 = vld [vmem:[#allocation12 + $0x88] sm:$0xff] }
 0xdb8   :  { %v1761_v31 = vpop.f32.mrf.mxu0 }
 0xdb9   :  { %v3036_v31 = vld [vmem:[#allocation11 + $0xa8] sm:$0xf0] }
 0xdba   :  { %v1783_v32 = vpop.f32.mrf.mxu1 }
 0xdbb   :  { %1791 = vrot.lane.b32.xlu0 %v1783_v32, %s3702_s24  ;;  %v3039_v32 = vor.u32 %v3340_v28, %v3036_v31  ;;  %v3352_v31 = vld [vmem:[#allocation12 + $0x80] sm:$0xff] }
 0xdbd   :  { %2054 = vmatpush.bf16.msrb.mxu0 %v3039_v32 }
 0xdc2   :  { %v1785_v33 = vpop.f32.mrf.mxu1 }
 0xdc3   :  { %v3026_v33 = vld [vmem:[#allocation11 + $0x90] sm:$0xf] }
 0xdc4   :  { %v3027_v12 = vor.u32 %v3339_v34, %v3026_v33 }
 0xe23   :  { %v1790_v18 = vpop.permute.xlu1 %1789 }
 0xe24   :  { %1795 = vst.msk [vmem:[#allocation2] sm:$0xff] %vm828_vm14, %v1790_v18  ;;  %v3337_v18 = vld [vmem:[#allocation11 + $0x84] sm:$0xf0] }
 0xe2b   :  { %v1799_v42 = vld [vmem:[#allocation2] sm:$0xff] }
 0xe2d   :  { %v1792_v41 = vpop.permute.xlu0 %1791 }
 0xe2e   :  { %1796 = vst.msk [vmem:[#allocation2 + $0x8] sm:$0xff] %vm828_vm14, %v1792_v41 }
 0xe35   :  { %v1800_v45 = vld [vmem:[#allocation2 + $0x8] sm:$0xff] }
 0xe36   :  { %v1801_v13 = vpack.c.bf16 %v1800_v45, %v1799_v42  ;;  %v3031_v42 = vor.u32 %v3338_v38, %v3028_v39  ;;  %v3336_v45 = vld [vmem:[#allocation11 + $0x84] sm:$0xf] }
 0xe38   :  { %1876 = vmatmul.bf16.vlgmr.msrb.gmra.mxu2 %v1801_v13  ;;  %v3020_v13 = vld [vmem:[#allocation11 + $0x88] sm:$0xf0]  ;;  %2055 = vmatpush.bf16.msrb.mxu0 %v3031_v42 }
 0xebb   :  { %v1877_v29 = vpop.f32.mrf.mxu2 }
 0xebc   :  { %v1878_v47 = vadd.f32 %v1877_v29, %v1819_v59  ;;  %v3019_v29 = vor.u32 %v3337_v18, %v3018_v40 }
 0xebe   :  { %v1882_v9 = vadd.f32 %v1878_v47, %v4010_v43  ;;  %v3023_v47 = vor.u32 %v3336_v45, %v3020_v13 }
 0xec0   :  { %1884 = vadd.xlane.f32.xlu2 %v1882_v9  ;;  %2056 = vmatpush.bf16.msrb.mxu0 %v3023_v47 }
 0xec3   :  { %v1879_v1 = vpop.f32.mrf.mxu2 }
 0xec4   :  { %v1880_v48 = vadd.f32 %v1879_v1, %v1819_v59 }
 0xec6   :  { %v1883_v49 = vadd.f32 %v1880_v48, %v4012_v44  ;;  %v3074_v44 = vld [vmem:[#allocation11 + $0xf0] sm:$0xf] }
 0xec7   :  { %v3075_v60 = vor.u32 %v3351_v58, %v3074_v44 }
 0xec8   :  { %1886 = vadd.xlane.f32.xlu0 %v1883_v49 }
 0xec9   :  { %2035 = vmatpush.bf16.msrb.mxu3 %v3075_v60 }
 0xecd   :  { %2036 = vmatpush.bf16.msrb.mxu3 %v3067_v2 }
 0xed1   :  { %2037 = vmatpush.bf16.msrb.mxu3 %v3059_v8 }
 0xed5   :  { %2038 = vmatpush.bf16.msrb.mxu3 %v3051_v57  ;;  %v3357_v57 = vld [vmem:[#allocation12 + $0xa8] sm:$0xff] }
 0xed6   :  { %2233 = vmatpush.bf16.msra.mxu1 %v3357_v57 }
 0xed9   :  { %2039 = vmatpush.bf16.msrb.mxu3 %v3043_v23  ;;  %v3015_v23 = vld [vmem:[%s4149_s12 + $0x2] sm:$0x3] }
 0xeda   :  { %2234 = vmatpush.bf16.msra.mxu1 %v3356_v3  ;;  %v1952_v26 = vperm.slane %v3015_v23, 1  ;;  %v1951_v33 = vperm.slane %v3015_v23, 0 }
 0xedd   :  { %2040 = vmatpush.bf16.msrb.mxu3 %v3035_v30 }
 0xede   :  { %2235 = vmatpush.bf16.msra.mxu1 %v3355_v21 }
 0xee1   :  { %2041 = vmatpush.bf16.msrb.mxu3 %v3027_v12 }
 0xee2   :  { %2236 = vmatpush.bf16.msra.mxu1 %v3354_v24 }
 0xee5   :  { %2042 = vmatpush.bf16.msrb.mxu3 %v3019_v29 }
 0xee6   :  { %2237 = vmatpush.bf16.msra.mxu1 %v3353_v27 }
 0xeea   :  { %2238 = vmatpush.bf16.msra.mxu1 %v3352_v31 }
 0xf33   :  { %v1885_v35 = vpop.xlane.xlu2 %1884 }
 0xf34   :  { %v1888_v50 = vmul.f32 %v1885_v35, %v3872_v10 }
 0xf36   :  { %v4076_v52 = vsub.f32 %v1882_v9, %v1888_v50 }
 0xf38   :  { %v1892_v53 = vmul.f32 %v4076_v52, %v4076_v52 }
 0xf3a   :  { %1894 = vadd.xlane.f32.xlu1 %v1892_v53 }
 0xf3b   :  { %v1887_v54 = vpop.xlane.xlu0 %1886 }
 0xf3c   :  { %v1889_v55 = vmul.f32 %v1887_v54, %v3872_v10 }
 0xf3e   :  { %v4081_v17 = vsub.f32 %v1883_v49, %v1889_v55 }
 0xf40   :  { %v1893_v43 = vmul.f32 %v4081_v17, %v4081_v17 }
 0xf42   :  { %1896 = vadd.xlane.f32.xlu2 %v1893_v43 }
 0xfad   :  { %v1895_v41 = vpop.xlane.xlu1 %1894 }
 0xfae   :  { %v1898_v59 = vmul.f32 %v1895_v41, %v3872_v10 }
 0xfb0   :  { %v1900_v9 = vadd.f32 1e-12, %v1898_v59 }
 0xfb2   :  { %3472 = vrsqrt.f32 %v1900_v9  ;;  %vm1908_vm12 = vweird.f32 %v1900_v9 }
 0xfb5   :  { %v1897_v1 = vpop.xlane.xlu2 %1896 }
 0xfb6   :  { %v1899_v48 = vmul.f32 %v1897_v1, %v3872_v10 }
 0xfb8   :  { %v3473_v49 = vpop.eup %3472  ;;  %v1901_v35 = vadd.f32 1e-12, %v1899_v48 }
 0xfb9   :  { %v1903_v50 = vmul.f32 %v3473_v49, %v1900_v9  ;;  %vm1909_vm11 = vweird.f32 %v3473_v49 }
 0xfba   :  { %3474 = vrsqrt.f32 %v1901_v35  ;;  %vm1910_vm13 = vmor %vm1908_vm12, %vm1909_vm11  ;;  %vm1918_vm15 = vweird.f32 %v1901_v35 }
 0xfbb   :  { %v1904_v53 = vmul.f32 %v3473_v49, %v1903_v50 }
 0xfbd   :  { %v1905_v54 = vmul.f32 0.5, %v1904_v53 }
 0xfbf   :  { %v1906_v55 = vsub.f32 1.5, %v1905_v54 }
 0xfc0   :  { %v3475_v43 = vpop.eup %3474 }
 0xfc1   :  { %v1907_v44 = vmul.f32 %v3473_v49, %v1906_v55  ;;  %v1913_v58 = vmul.f32 %v3475_v43, %v1901_v35  ;;  %vm1919_vm14 = vweird.f32 %v3475_v43 }
 0xfc2   :  { %vm1920_vm0 = vmor %vm1918_vm15, %vm1919_vm14 }
 0xfc3   :  { %v1914_v36 = vmul.f32 %v3475_v43, %v1913_v58  ;;  %v1911_v60 = vsel %vm1910_vm13, %v3473_v49, %v1907_v44 }
 0xfc4   :  { %v1922_v61 = vmul.f32 %v1911_v60, %v4076_v52  ;;  %v3367_v52 = vld [vmem:[#allocation12 + $0xf8] sm:$0xff] }
 0xfc5   :  { %v1915_v37 = vmul.f32 0.5, %v1914_v36  ;;  %2245 = vmatpush.bf16.msra.mxu2 %v3367_v52 }
 0xfc6   :  { %v1925_v5 = vmul.f32 %v1924_v63, %v1922_v61 }
 0xfc7   :  { %v1916_v51 = vsub.f32 1.5, %v1915_v37 }
 0xfc8   :  { %v4091_v7 = vadd.f32 %v1927_v6, %v1925_v5 }
 0xfc9   :  { %v1917_v0 = vmul.f32 %v3475_v43, %v1916_v51  ;;  %2246 = vmatpush.bf16.msra.mxu2 %v3366_v14 }
 0xfcb   :  { %v1921_v2 = vsel %vm1920_vm0, %v3475_v43, %v1917_v0 }
 0xfcc   :  { %v1923_v4 = vmul.f32 %v1921_v2, %v4081_v17  ;;  %v3365_v17 = vld [vmem:[#allocation12 + $0xe8] sm:$0xff] }
 0xfcd   :  { %2247 = vmatpush.bf16.msra.mxu2 %v3365_v17 }
 0xfce   :  { %v1926_v62 = vmul.f32 %v1924_v63, %v1923_v4 }
 0xfd0   :  { %v4093_v8 = vadd.f32 %v1927_v6, %v1926_v62 }
 0xfd1   :  { %2248 = vmatpush.bf16.msra.mxu2 %v3364_v56  ;;  %v2134_v56 = vperm.slane %v4070_v46, 3 }
 0xfd2   :  { %v1930_v11 = vpack.c.bf16 %v4093_v8, %v4091_v7 }
 0xfd4   :  { %2043 = vmatmul.bf16.vlgmr.msrb.gmra.mxu3 %v1930_v11  ;;  %2057 = vmatmul.bf16.vlgmr.msrb.gmra.mxu0 %v1930_v11 }
 0xfd5   :  { %2249 = vmatpush.bf16.msra.mxu2 %v3363_v19 }
 0xfd9   :  { %2250 = vmatpush.bf16.msra.mxu2 %v3362_v20 }
 0xfdd   :  { %2251 = vmatpush.bf16.msra.mxu2 %v3361_v22 }
 0xfe1   :  { %2252 = vmatpush.bf16.msra.mxu2 %v3360_v25 }
0x1051   :  { %v2058_v28 = vpop.f32.mrf.mxu0 }
0x1052   :  { %v2059_v30 = vadd.f32 %v2058_v28, %v1952_v26 }
0x1054   :  { %v2068_v32 = vmul.f32 0.044715, %v2059_v30  ;;  %v2064_v51 = vmul.f32 0.5, %v2059_v30 }
0x1056   :  { %v2072_v34 = vmul.f32 %v2068_v32, %v2059_v30 }
0x1057   :  { %v2044_v38 = vpop.f32.mrf.mxu3 }
0x1058   :  { %v2076_v12 = vmul.f32 %v2072_v34, %v2059_v30  ;;  %v2045_v39 = vadd.f32 %v2044_v38, %v1951_v33 }
0x1059   :  { %v2060_v40 = vpop.f32.mrf.mxu0 }
0x105a   :  { %v2080_v18 = vadd.f32 %v2076_v12, %v2059_v30  ;;  %v2067_v41 = vmul.f32 0.044715, %v2045_v39  ;;  %v2061_v42 = vadd.f32 %v2060_v40, %v1952_v26  ;;  %v2063_v11 = vmul.f32 0.5, %v2045_v39  ;;  %v3374_v12 = vld [vmem:[#allocation14 + $0x30] sm:$0xff]  ;;  %v3371_v40 = vld [vmem:[#allocation14 + $0x18] sm:$0xff] }
0x105c   :  { %v2071_v45 = vmul.f32 %v2067_v41, %v2045_v39  ;;  %v2070_v13 = vmul.f32 0.044715, %v2061_v42  ;;  %v2084_v59 = vmul.f32 0.7978846, %v2080_v18  ;;  %v2066_v61 = vmul.f32 0.5, %v2061_v42  ;;  %v3370_v18 = vld [vmem:[#allocation14 + $0x10] sm:$0xff] }
0x105d   :  { %v3369_v41 = vld [vmem:[#allocation14 + $0x8] sm:$0xff] }
0x105e   :  { %v2075_v29 = vmul.f32 %v2071_v45, %v2045_v39  ;;  %v2074_v47 = vmul.f32 %v2070_v13, %v2061_v42  ;;  %3476 = vtanh.f32 %v2084_v59  ;;  %v3368_v13 = vld [vmem:[#allocation14] sm:$0xff] }
0x105f   :  { %v2046_v9 = vpop.f32.mrf.mxu3 }
0x1060   :  { %v2079_v1 = vadd.f32 %v2075_v29, %v2045_v39  ;;  %v2078_v48 = vmul.f32 %v2074_v47, %v2061_v42  ;;  %v2047_v49 = vadd.f32 %v2046_v9, %v1951_v33  ;;  %v3373_v39 = vld [vmem:[#allocation14 + $0x28] sm:$0xff] }
0x1062   :  { %v2082_v35 = vadd.f32 %v2078_v48, %v2061_v42  ;;  %v2069_v50 = vmul.f32 0.044715, %v2047_v49  ;;  %v2083_v53 = vmul.f32 0.7978846, %v2079_v1  ;;  %v2065_v52 = vmul.f32 0.5, %v2047_v49 }
0x1064   :  { %v2086_v54 = vmul.f32 0.7978846, %v2082_v35  ;;  %v2073_v55 = vmul.f32 %v2069_v50, %v2047_v49  ;;  %v3477_v44 = vpop.eup %3476 }
0x1065   :  { %v2092_v60 = vadd.f32 1.0, %v3477_v44 }
0x1066   :  { %v2077_v43 = vmul.f32 %v2073_v55, %v2047_v49  ;;  %3478 = vtanh.f32 %v2086_v54 }
0x1067   :  { %3480 = vtanh.f32 %v2083_v53  ;;  %v2096_v2 = vmul.f32 %v2092_v60, %v2064_v51 }
0x1068   :  { %v2081_v58 = vadd.f32 %v2077_v43, %v2047_v49 }
0x106a   :  { %v2085_v36 = vmul.f32 0.7978846, %v2081_v58 }
0x106c   :  { %v3479_v37 = vpop.eup %3478  ;;  %3482 = vtanh.f32 %v2085_v36 }
0x106d   :  { %v2094_v63 = vadd.f32 1.0, %v3479_v37  ;;  %v3481_v0 = vpop.eup %3480  ;;  %v2301_v37 = vperm.slane %v4070_v46, 4 }
0x106e   :  { %v2091_v6 = vadd.f32 1.0, %v3481_v0 }
0x106f   :  { %v2098_v4 = vmul.f32 %v2094_v63, %v2066_v61 }
0x1070   :  { %v2095_v15 = vmul.f32 %v2091_v6, %v2063_v11  ;;  %v4112_v11 = vld [vmem:[%s4153_s16] sm:$0x7] }
0x1071   :  { %v2100_v5 = vpack.c.bf16 %v2098_v4, %v2096_v2  ;;  %v2304_v2 = vperm.slane %v4070_v46, 5 }
0x1072   :  { %v3483_v62 = vpop.eup %3482 }
0x1073   :  { %2253 = vmatmul.bf16.vlgmr.msra.gmra.mxu2 %v2100_v5  ;;  %v2093_v14 = vadd.f32 1.0, %v3483_v62 }
0x1075   :  { %v2097_v17 = vmul.f32 %v2093_v14, %v2065_v52  ;;  %v2325_v52 = vperm.slane %v4112_v11, 0 }
0x1077   :  { %v2099_v16 = vpack.c.bf16 %v2097_v17, %v2095_v15 }
0x1079   :  { %2239 = vmatmul.bf16.vlgmr.msra.gmra.mxu1 %v2099_v16 }
0x10f6   :  { %v2240_v57 = vpop.f32.mrf.mxu1  ;;  %v2254_v19 = vpop.f32.mrf.mxu2 }
0x10f7   :  { %v2241_v3 = vadd.f32 %v2240_v57, %v2134_v56 }
0x10f9   :  { %v2255_v20 = vadd.f32 %v2254_v19, %v2241_v3 }
0x10fb   :  { %v2259_v21 = vadd.f32 %v2255_v20, %v4091_v7  ;;  %v3375_v7 = vld [vmem:[#allocation14 + $0x38] sm:$0xff] }
0x10fc   :  { %2374 = vmatpush.bf16.msra.mxu3 %v3375_v7 }
0x10fd   :  { %2261 = vadd.xlane.f32.xlu0 %v2259_v21 }
0x10fe   :  { %v2242_v22 = vpop.f32.mrf.mxu1  ;;  %v2256_v24 = vpop.f32.mrf.mxu2 }
0x10ff   :  { %v2243_v23 = vadd.f32 %v2242_v22, %v2134_v56 }
0x1100   :  { %2375 = vmatpush.bf16.msra.mxu3 %v3374_v12 }
0x1101   :  { %v2257_v25 = vadd.f32 %v2256_v24, %v2243_v23 }
0x1103   :  { %v2260_v26 = vadd.f32 %v2257_v25, %v4093_v8  ;;  %v3372_v8 = vld [vmem:[#allocation14 + $0x20] sm:$0xff] }
0x1104   :  { %2376 = vmatpush.bf16.msra.mxu3 %v3373_v39 }
0x1105   :  { %2263 = vadd.xlane.f32.xlu2 %v2260_v26 }
0x1108   :  { %2377 = vmatpush.bf16.msra.mxu3 %v3372_v8 }
0x110c   :  { %2378 = vmatpush.bf16.msra.mxu3 %v3371_v40 }
0x1110   :  { %2379 = vmatpush.bf16.msra.mxu3 %v3370_v18 }
0x1114   :  { %2380 = vmatpush.bf16.msra.mxu3 %v3369_v41  ;;  %v3234_v41 = vld [vmem:[#allocation6 + $0x70] sm:$0xf] }
0x1118   :  { %2381 = vmatpush.bf16.msra.mxu3 %v3368_v13 }
0x1170   :  { %v2262_v27 = vpop.xlane.xlu0 %2261 }
0x1171   :  { %v2265_v28 = vmul.f32 %v2262_v27, %v3872_v10 }
0x1173   :  { %v2267_v30 = vsub.f32 %v2259_v21, %v2265_v28 }
0x1175   :  { %v2269_v31 = vmul.f32 %v2267_v30, %v2267_v30 }
0x1177   :  { %2271 = vadd.xlane.f32.xlu1 %v2269_v31 }
0x1178   :  { %v2264_v32 = vpop.xlane.xlu2 %2263 }
0x1179   :  { %v2266_v33 = vmul.f32 %v2264_v32, %v3872_v10 }
0x117b   :  { %v2268_v34 = vsub.f32 %v2260_v26, %v2266_v33 }
0x117d   :  { %v2270_v38 = vmul.f32 %v2268_v34, %v2268_v34 }
0x117f   :  { %2273 = vadd.xlane.f32.xlu0 %v2270_v38 }
0x11ea   :  { %v2272_v42 = vpop.xlane.xlu1 %2271 }
0x11eb   :  { %v2275_v45 = vmul.f32 %v2272_v42, %v3872_v10  ;;  %v3391_v42 = vld [vmem:[#allocation6 + $0x74] sm:$0xf0] }
0x11ec   :  { %v3235_v13 = vor.u32 %v3391_v42, %v3234_v41 }
0x11ed   :  { %v2277_v59 = vadd.f32 1e-12, %v2275_v45  ;;  %v3390_v45 = vld [vmem:[#allocation6 + $0x74] sm:$0xf] }
0x11ee   :  { %2555 = vmatpush.bf16.msra.mxu0 %v3235_v13 }
0x11ef   :  { %3484 = vrsqrt.f32 %v2277_v59  ;;  %vm2285_vm2 = vweird.f32 %v2277_v59 }
0x11f2   :  { %v2274_v29 = vpop.xlane.xlu0 %2273 }
0x11f3   :  { %v2276_v47 = vmul.f32 %v2274_v29, %v3872_v10 }
0x11f5   :  { %v3485_v9 = vpop.eup %3484  ;;  %v2278_v1 = vadd.f32 1e-12, %v2276_v47  ;;  %v3226_v47 = vld [vmem:[#allocation6 + $0x60] sm:$0xf] }
0x11f6   :  { %v2280_v48 = vmul.f32 %v3485_v9, %v2277_v59  ;;  %vm2286_vm1 = vweird.f32 %v3485_v9  ;;  %v3236_v59 = vld [vmem:[#allocation6 + $0x78] sm:$0xf0] }
0x11f7   :  { %3486 = vrsqrt.f32 %v2278_v1  ;;  %vm2287_vm3 = vmor %vm2285_vm2, %vm2286_vm1  ;;  %vm2295_vm5 = vweird.f32 %v2278_v1  ;;  %v3239_v29 = vor.u32 %v3390_v45, %v3236_v59 }
0x11f8   :  { %v2281_v49 = vmul.f32 %v3485_v9, %v2280_v48 }
0x11f9   :  { %2569 = vmatpush.bf16.msrb.mxu1 %v3239_v29 }
0x11fa   :  { %v2282_v35 = vmul.f32 0.5, %v2281_v49  ;;  %v3228_v49 = vld [vmem:[#allocation6 + $0x68] sm:$0xf0] }
0x11fc   :  { %v2283_v50 = vsub.f32 1.5, %v2282_v35 }
0x11fd   :  { %v3487_v53 = vpop.eup %3486 }
0x11fe   :  { %v2284_v54 = vmul.f32 %v3485_v9, %v2283_v50  ;;  %v2290_v55 = vmul.f32 %v3487_v53, %v2278_v1  ;;  %vm2296_vm4 = vweird.f32 %v3487_v53  ;;  %v3388_v1 = vld [vmem:[#allocation6 + $0x64] sm:$0xf]  ;;  %v3218_v50 = vld [vmem:[#allocation6 + $0x50] sm:$0xf] }
0x11ff   :  { %vm2297_vm6 = vmor %vm2295_vm5, %vm2296_vm4  ;;  %v3231_v35 = vor.u32 %v3388_v1, %v3228_v49 }
0x1200   :  { %v2291_v43 = vmul.f32 %v3487_v53, %v2290_v55  ;;  %v2288_v44 = vsel %vm2287_vm3, %v3485_v9, %v2284_v54  ;;  %v3389_v9 = vld [vmem:[#allocation6 + $0x64] sm:$0xf0]  ;;  %v3386_v54 = vld [vmem:[#allocation6 + $0x54] sm:$0xf] }
0x1201   :  { %v2299_v60 = vmul.f32 %v2288_v44, %v2267_v30  ;;  %v3227_v48 = vor.u32 %v3389_v9, %v3226_v47  ;;  %2570 = vmatpush.bf16.msrb.mxu1 %v3231_v35 }
0x1202   :  { %v2292_v58 = vmul.f32 0.5, %v2291_v43  ;;  %v3220_v43 = vld [vmem:[#allocation6 + $0x58] sm:$0xf0] }
0x1203   :  { %v2302_v0 = vmul.f32 %v2301_v37, %v2299_v60  ;;  %2556 = vmatpush.bf16.msra.mxu0 %v3227_v48  ;;  %v3223_v44 = vor.u32 %v3386_v54, %v3220_v43  ;;  %v3384_v60 = vld [vmem:[#allocation6 + $0x44] sm:$0xf]  ;;  %v2449_v48 = vperm.slane %v4112_v11, 2  ;;  %v2469_v43 = vld [vmem:[%s4154_s17] sm:$0x3]  ;;  %s3715_s17 = smov 256  }
0x1204   :  { %v2293_v36 = vsub.f32 1.5, %v2292_v58  ;;  %v3210_v58 = vld [vmem:[#allocation6 + $0x40] sm:$0xf] }
0x1205   :  { %v2305_v5 = vadd.f32 %v2304_v2, %v2302_v0  ;;  %2571 = vmatpush.bf16.msrb.mxu1 %v3223_v44  ;;  %v3383_v0 = vld [vmem:[#allocation6 + $0x34] sm:$0xf0]  ;;  %v2472_v44 = vperm.slane %v2469_v43, 1 }
0x1206   :  { %v2294_v51 = vmul.f32 %v3487_v53, %v2293_v36  ;;  %v3385_v36 = vld [vmem:[#allocation6 + $0x44] sm:$0xf0] }
0x1208   :  { %v2298_v61 = vsel %vm2297_vm6, %v3487_v53, %v2294_v51  ;;  %v3387_v53 = vld [vmem:[#allocation6 + $0x54] sm:$0xf0]  ;;  %v3212_v51 = vld [vmem:[#allocation6 + $0x48] sm:$0xf0] }
0x1209   :  { %v2300_v63 = vmul.f32 %v2298_v61, %v2268_v34  ;;  %v3219_v55 = vor.u32 %v3387_v53, %v3218_v50  ;;  %v3215_v61 = vor.u32 %v3384_v60, %v3212_v51 }
0x120b   :  { %v2303_v4 = vmul.f32 %v2301_v37, %v2300_v63  ;;  %2557 = vmatpush.bf16.msra.mxu0 %v3219_v55  ;;  %v3211_v37 = vor.u32 %v3385_v36, %v3210_v58  ;;  %2572 = vmatpush.bf16.msrb.mxu1 %v3215_v61  ;;  %v3202_v63 = vld [vmem:[#allocation6 + $0x30] sm:$0xf] }
0x120d   :  { %v2306_v6 = vadd.f32 %v2304_v2, %v2303_v4  ;;  %v3382_v2 = vld [vmem:[#allocation6 + $0x34] sm:$0xf]  ;;  %v3203_v4 = vor.u32 %v3383_v0, %v3202_v63 }
0x120f   :  { %v2308_v62 = vpack.c.bf16 %v2306_v6, %v2305_v5  ;;  %2558 = vmatpush.bf16.msra.mxu0 %v3211_v37  ;;  %v3204_v5 = vld [vmem:[#allocation6 + $0x38] sm:$0xf0] }
0x1210   :  { %v3207_v6 = vor.u32 %v3382_v2, %v3204_v5 }
0x1211   :  { %2382 = vmatmul.bf16.vlgmr.msra.gmra.mxu3 %v2308_v62  ;;  %v3194_v62 = vld [vmem:[#allocation6 + $0x20] sm:$0xf] }
0x1212   :  { %2573 = vmatpush.bf16.msrb.mxu1 %v3207_v6 }
0x1213   :  { %2559 = vmatpush.bf16.msra.mxu0 %v3203_v4 }
0x1294   :  { %v2383_v14 = vpop.f32.mrf.mxu3 }
0x1295   :  { %v2384_v15 = vadd.f32 %v2383_v14, %v2325_v52  ;;  %v3380_v14 = vld [vmem:[#allocation6 + $0x24] sm:$0xf] }
0x1297   :  { %v2390_v17 = vmul.f32 0.044715, %v2384_v15  ;;  %v2388_v26 = vmul.f32 0.5, %v2384_v15 }
0x1299   :  { %v2392_v16 = vmul.f32 %v2390_v17, %v2384_v15  ;;  %v3196_v17 = vld [vmem:[#allocation6 + $0x28] sm:$0xf0] }
0x129b   :  { %v2394_v56 = vmul.f32 %v2392_v16, %v2384_v15  ;;  %v3199_v16 = vor.u32 %v3380_v14, %v3196_v17 }
0x129c   :  { %v2385_v57 = vpop.f32.mrf.mxu3 }
0x129d   :  { %v2386_v19 = vadd.f32 %v2385_v57, %v2325_v52  ;;  %v2396_v46 = vadd.f32 %v2394_v56, %v2384_v15  ;;  %v3381_v52 = vld [vmem:[#allocation6 + $0x24] sm:$0xf0]  ;;  %2574 = vmatpush.bf16.msrb.mxu1 %v3199_v16  ;;  %v3186_v56 = vld [vmem:[#allocation6 + $0x10] sm:$0xf]  ;;  %v3379_v57 = vld [vmem:[#allocation6 + $0x14] sm:$0xf0] }
0x129e   :  { %v3195_v15 = vor.u32 %v3381_v52, %v3194_v62 }
0x129f   :  { %v2398_v3 = vmul.f32 0.7978846, %v2396_v46  ;;  %v2391_v20 = vmul.f32 0.044715, %v2386_v19  ;;  %v2389_v31 = vmul.f32 0.5, %v2386_v19  ;;  %v3187_v46 = vor.u32 %v3379_v57, %v3186_v56 }
0x12a0   :  { %2560 = vmatpush.bf16.msra.mxu0 %v3195_v15 }
0x12a1   :  { %3488 = vtanh.f32 %v2398_v3  ;;  %v2393_v21 = vmul.f32 %v2391_v20, %v2386_v19  ;;  %v3188_v3 = vld [vmem:[#allocation6 + $0x18] sm:$0xf0]  ;;  %v3178_v20 = vld [vmem:[#allocation6] sm:$0xf] }
0x12a3   :  { %v2395_v22 = vmul.f32 %v2393_v21, %v2386_v19  ;;  %v3377_v21 = vld [vmem:[#allocation6 + $0x4] sm:$0xf0] }
0x12a4   :  { %2561 = vmatpush.bf16.msra.mxu0 %v3187_v46 }
0x12a5   :  { %v2397_v23 = vadd.f32 %v2395_v22, %v2386_v19  ;;  %v3378_v19 = vld [vmem:[#allocation6 + $0x14] sm:$0xf] }
0x12a7   :  { %v3489_v24 = vpop.eup %3488  ;;  %v2399_v25 = vmul.f32 0.7978846, %v2397_v23  ;;  %v3191_v23 = vor.u32 %v3378_v19, %v3188_v3 }
0x12a8   :  { %v2402_v27 = vadd.f32 1.0, %v3489_v24  ;;  %v3376_v24 = vld [vmem:[#allocation6 + $0x4] sm:$0xf] }
0x12a9   :  { %3490 = vtanh.f32 %v2399_v25  ;;  %v3180_v25 = vld [vmem:[#allocation6 + $0x8] sm:$0xf0]  ;;  %2575 = vmatpush.bf16.msrb.mxu1 %v3191_v23 }
0x12aa   :  { %v2404_v28 = vmul.f32 %v2402_v27, %v2388_v26  ;;  %v3179_v27 = vor.u32 %v3377_v21, %v3178_v20 }
0x12ac   :  { %2406 = vadd.xlane.f32.xlu2 %v2404_v28  ;;  %2562 = vmatpush.bf16.msra.mxu0 %v3179_v27 }
0x12af   :  { %v3491_v30 = vpop.eup %3490 }
0x12b0   :  { %v2403_v32 = vadd.f32 1.0, %v3491_v30 }
0x12b2   :  { %v2405_v33 = vmul.f32 %v2403_v32, %v2389_v31 }
0x12b4   :  { %2408 = vadd.xlane.f32.xlu1 %v2405_v33 }
0x131f   :  { %v2407_v34 = vpop.xlane.xlu2 %2406 }
0x1320   :  { %v2410_v38 = vmul.f32 %v2407_v34, %v3872_v10 }
0x1322   :  { %v4116_v7 = vsub.f32 %v2404_v28, %v2410_v38  ;;  %v3183_v28 = vor.u32 %v3376_v24, %v3180_v25 }
0x1324   :  { %v2414_v12 = vmul.f32 %v4116_v7, %v4116_v7  ;;  %2576 = vmatpush.bf16.msrb.mxu1 %v3183_v28 }
0x1326   :  { %2416 = vadd.xlane.f32.xlu0 %v2414_v12 }
0x1327   :  { %v2409_v39 = vpop.xlane.xlu1 %2408 }
0x1328   :  { %v2411_v8 = vmul.f32 %v2409_v39, %v3872_v10 }
0x132a   :  { %v4121_v40 = vsub.f32 %v2405_v33, %v2411_v8 }
0x132c   :  { %v2415_v18 = vmul.f32 %v4121_v40, %v4121_v40 }
0x132e   :  { %2418 = vadd.xlane.f32.xlu2 %v2415_v18 }
0x1399   :  { %v2417_v22 = vpop.xlane.xlu0 %2416 }
0x139a   :  { %v2420_v26 = vmul.f32 %v2417_v22, %v3872_v10 }
0x139c   :  { %v2422_v30 = vadd.f32 1e-12, %v2420_v26 }
0x139e   :  { %3492 = vrsqrt.f32 %v2422_v30  ;;  %vm2430_vm8 = vweird.f32 %v2422_v30 }
0x13a1   :  { %v2419_v31 = vpop.xlane.xlu2 %2418 }
0x13a2   :  { %v2421_v32 = vmul.f32 %v2419_v31, %v3872_v10  ;;  %v2446_v10 = vperm.slane %v4112_v11, 1 }
0x13a4   :  { %v3493_v33 = vpop.eup %3492  ;;  %v2423_v34 = vadd.f32 1e-12, %v2421_v32 }
0x13a5   :  { %v2425_v38 = vmul.f32 %v3493_v33, %v2422_v30  ;;  %vm2431_vm7 = vweird.f32 %v3493_v33 }
0x13a6   :  { %3494 = vrsqrt.f32 %v2423_v34  ;;  %vm2432_vm9 = vmor %vm2430_vm8, %vm2431_vm7  ;;  %vm2440_vm11 = vweird.f32 %v2423_v34 }
0x13a7   :  { %v2426_v12 = vmul.f32 %v3493_v33, %v2425_v38 }
0x13a9   :  { %v2427_v39 = vmul.f32 0.5, %v2426_v12 }
0x13ab   :  { %v2428_v8 = vsub.f32 1.5, %v2427_v39 }
0x13ac   :  { %v3495_v18 = vpop.eup %3494 }
0x13ad   :  { %v2429_v41 = vmul.f32 %v3493_v33, %v2428_v8  ;;  %v2435_v42 = vmul.f32 %v3495_v18, %v2423_v34  ;;  %vm2441_vm10 = vweird.f32 %v3495_v18 }
0x13ae   :  { %vm2442_vm12 = vmor %vm2440_vm11, %vm2441_vm10 }
0x13af   :  { %v2436_v45 = vmul.f32 %v3495_v18, %v2435_v42  ;;  %v2433_v13 = vsel %vm2432_vm9, %v3493_v33, %v2429_v41 }
0x13b0   :  { %v2444_v47 = vmul.f32 %v2433_v13, %v4116_v7  ;;  %v2471_v7 = vperm.slane %v2469_v43, 0 }
0x13b1   :  { %v2437_v59 = vmul.f32 0.5, %v2436_v45 }
0x13b2   :  { %v2447_v35 = vmul.f32 %v2446_v10, %v2444_v47 }
0x13b3   :  { %v2438_v29 = vsub.f32 1.5, %v2437_v59 }
0x13b4   :  { %v2450_v53 = vadd.f32 %v2449_v48, %v2447_v35 }
0x13b5   :  { %v2439_v9 = vmul.f32 %v3495_v18, %v2438_v29 }
0x13b7   :  { %v2443_v1 = vsel %vm2442_vm12, %v3495_v18, %v2439_v9 }
0x13b8   :  { %v2445_v49 = vmul.f32 %v2443_v1, %v4121_v40 }
0x13ba   :  { %v2448_v50 = vmul.f32 %v2446_v10, %v2445_v49 }
0x13bc   :  { %v2451_v54 = vadd.f32 %v2449_v48, %v2448_v50 }
0x13be   :  { %v2452_v55 = vpack.c.bf16 %v2451_v54, %v2450_v53 }
0x13c0   :  { %2563 = vmatmul.bf16.vlgmr.msra.gmra.mxu0 %v2452_v55  ;;  %2577 = vmatmul.bf16.vlgmr.msrb.gmra.mxu1 %v2452_v55 }
0x143d   :  { %v2564_v58 = vpop.f32.mrf.mxu0  ;;  %v2578_v36 = vpop.f32.mrf.mxu1 }
0x143e   :  { %v2565_v60 = vadd.f32 %v2564_v58, %v2471_v7  ;;  %v2579_v37 = vadd.f32 %v2578_v36, %v2472_v44 }
0x1440   :  { %2583 = vst [vmem:[#allocation15] sm:$0xff] %v2565_v60 }
0x1441   :  { %2584 = vst [vmem:[#allocation15 + $0x8] sm:$0xff] %v2579_v37 }
0x1445   :  { %v2566_v11 = vpop.f32.mrf.mxu0  ;;  %v2580_v40 = vpop.f32.mrf.mxu1 }
0x1446   :  { %v2567_v51 = vadd.f32 %v2566_v11, %v2471_v7  ;;  %v2581_v61 = vadd.f32 %v2580_v40, %v2472_v44 }
0x1448   :  { %2585 = vst [vmem:[#allocation15 + $0x10] sm:$0xff] %v2567_v51 }
0x1449   :  { %2586 = vst [vmem:[#allocation15 + $0x18] sm:$0xff] %v2581_v61 }
0x144a   :  { %2599 = dma.vmem_to_hbm [thread:$0]  %s2592_s10, 512, %s2594_s30, [#allocation5], %s3715_s17, %s3715_s17, %s3716_s29  }
0x144b   :  { %3696 = dma.done.wait [#allocation5], 512  }
0x144c   :  { %3697 = vsyncadd [#allocation5], 4294966784 }
0x144d   :  { %2604 = vsyncpa [#allocation4], 1 }
0x144e   :  { %2605 = vsyncpa [#allocation7], 1 }
0x144f   :  { %2606 = vsyncpa [#allocation10], 1 }
0x1450   :  { %2607 = vsyncpa [#allocation13], 1 }
0x1451   :  { %2608 = vsyncpa [#allocation5], 1 }

</bundles_post_ra>
